<compile_context>
chip_gen: v7x
topology: tpu7x:2x2x1
jax: 0.10.0
libtpu: 0.0.40
codegen_flags: <defaults>
</compile_context>

<pallas_src>
import math

import jax
import jax.numpy as jnp
from jax import lax
from jax.experimental import pallas as pl
from jax.experimental.pallas import tpu as pltpu

NEG_INF = -1e9  # additive mask value (stands in for -inf; avoids inf-inf NaNs)

# Raw (PyTorch-style) per-block parameter names; weight matrices pre-transposed to (in, out).
PARAM_NAMES = (
    'sa_wq', 'sa_wk', 'sa_wv', 'sa_bq', 'sa_bk', 'sa_bv', 'sa_wo', 'sa_bo',
    'ln1_g', 'ln1_b',
    'na_wq', 'na_wk', 'na_wv', 'na_bq', 'na_bk', 'na_bv', 'na_wo', 'na_bo',
    'pa_wq', 'pa_wk', 'pa_wv', 'pa_bq', 'pa_bk', 'pa_bv', 'pa_wo', 'pa_bo',
    'comb_w', 'comb_b',
    'ln2_g', 'ln2_b',
    'ff1_w', 'ff1_b', 'ff2_w', 'ff2_b',
)

# Packed parameter names actually fed to the kernel (lane-dense fused projections).
PACKED_NAMES = (
    'sa_wqkv', 'sa_bqkv', 'sa_wo', 'sa_bo',
    'ln1_g', 'ln1_b',
    'cx_wq', 'cx_bq',
    'na_wkv', 'na_bkv', 'na_wo', 'na_bo',
    'pa_wkv', 'pa_bkv', 'pa_wo', 'pa_bo',
    'comb_wp', 'comb_wn', 'comb_b',
    'ln2_g', 'ln2_b',
    'ff1_w', 'ff1_b', 'ff2_w', 'ff2_b',
)


# ----------------------------------------------------------------------------------
# Shared math (traced inside the Pallas kernel; reused verbatim for the JAX reference)
# ----------------------------------------------------------------------------------
def _dot(a, b):
    # bf16 MXU matmul with f32 accumulation.
    return jnp.dot(a.astype(jnp.bfloat16), b.astype(jnp.bfloat16),
                   preferred_element_type=jnp.float32)


def _bmm_qk(a, b):
    # 'bqd,bkd->bqk' : leading batch dim, contract last dims of both operands.
    return lax.dot_general(a.astype(jnp.bfloat16), b.astype(jnp.bfloat16),
                           dimension_numbers=(((2,), (2,)), ((0,), (0,))),
                           preferred_element_type=jnp.float32)


def _bmm_pv(a, b):
    # 'bqk,bkd->bqd' : leading batch dim, contract lhs dim 2 with rhs dim 1.
    return lax.dot_general(a.astype(jnp.bfloat16), b.astype(jnp.bfloat16),
                           dimension_numbers=(((2,), (1,)), ((0,), (0,))),
                           preferred_element_type=jnp.float32)


def layer_norm(x, gamma, beta, eps=1e-5):
    mu = jnp.mean(x, axis=-1, keepdims=True)
    var = jnp.mean((x - mu) ** 2, axis=-1, keepdims=True)
    return (x - mu) * lax.rsqrt(var + eps) * gamma + beta


def _split_heads(x2, tb, seq, nh, hd):
    # (tb*seq, nh*hd) -> (tb*nh, seq, hd); heads become a batch dim only for the
    # score/context dots.  (pltpu.einshape could do this relayout at large shapes.)
    x4 = x2.reshape(tb, seq, nh, hd)
    return jnp.transpose(x4, (0, 2, 1, 3)).reshape(tb * nh, seq, hd)


def _merge_heads(x3, tb, nh, seq, hd):
    # (tb*nh, seq, hd) -> (tb*seq, nh*hd) merged context for the fused output projection.
    x4 = x3.reshape(tb, nh, seq, hd)
    return jnp.transpose(x4, (0, 2, 1, 3)).reshape(tb * seq, nh * hd)


def attention_core(q3, k3, v3, bias, tb, nh):
    """Head-batched attention.  q3: (tb*nh, Sq, hd); k3/v3: (tb*nh, Sk, hd);
    bias: None or (tb, 1|Sq, Sk) additive.  The 1/sqrt(hd) scale is already folded
    into the packed Q-projection weights."""
    sq, sk = q3.shape[1], k3.shape[1]
    scores = _bmm_qk(q3, k3)                                     # (tb*nh, Sq, Sk) f32
    if bias is not None:
        scores = (scores.reshape(tb, nh, sq, sk)
                  + bias[:, None, :, :]).reshape(tb * nh, sq, sk)
    scores = scores - jnp.max(scores, axis=-1, keepdims=True)
    e = jnp.exp(scores)
    p = e / jnp.sum(e, axis=-1, keepdims=True)                   # exact division (matches ref)
    return _bmm_pv(p, v3)                                        # (tb*nh, Sq, hd)


def decoder_block_math(x, in_mask_q, self_bias, node_h, prev_h, prev_bias,
                       pos_sig, getp, num_heads):
    """One TextDecoderBlock applied to a batch tile.

    x: (TB,S,H)  in_mask_q: (TB,S,1)  self_bias: (TB,S,S)  node_h: (TB,N,H)
    prev_h: (TB,P,H)  prev_bias: (TB,1,P)  pos_sig: (S,H)
    getp(name) returns the packed parameter value (weights already bf16).
    """
    TB, S, H = x.shape
    nh = num_heads
    hd = H // nh
    N = node_h.shape[1]
    P = prev_h.shape[1]

    # Positional encoding is (re-)applied at the start of every block, matching the
    # PyTorch TextDecoderBlock (each block owns a pos_encoder applied to its input).
    pos_x = x + pos_sig[None, :, :]
    residual = pos_x
    x2 = pos_x.reshape(TB * S, H)

    # --- masked causal self-attention: one lane-dense fused QKV projection ---
    qkv = _dot(x2, getp('sa_wqkv')) + getp('sa_bqkv')            # (TB*S, 3H)
    q3 = _split_heads(qkv[:, :H], TB, S, nh, hd)
    k3 = _split_heads(qkv[:, H:2 * H], TB, S, nh, hd)
    v3 = _split_heads(qkv[:, 2 * H:], TB, S, nh, hd)
    sa_ctx = _merge_heads(attention_core(q3, k3, v3, self_bias, TB, nh), TB, nh, S, hd)
    sa_out = _dot(sa_ctx, getp('sa_wo')) + getp('sa_bo')         # (TB*S, H)
    input_attn = sa_out.reshape(TB, S, H) * in_mask_q + residual

    query = layer_norm(input_attn, getp('ln1_g'), getp('ln1_b'))
    q2 = query.reshape(TB * S, H)

    # --- node / prev-action cross attention: fused lane-dense query & KV projections ---
    qnp = _dot(q2, getp('cx_wq')) + getp('cx_bq')                # (TB*S, 2H)
    q_node = _split_heads(qnp[:, :H], TB, S, nh, hd)
    q_prev = _split_heads(qnp[:, H:], TB, S, nh, hd)

    nkv = _dot(node_h.reshape(TB * N, H), getp('na_wkv')) + getp('na_bkv')   # (TB*N, 2H)
    k_node = _split_heads(nkv[:, :H], TB, N, nh, hd)
    v_node = _split_heads(nkv[:, H:], TB, N, nh, hd)
    node_ctx = _merge_heads(attention_core(q_node, k_node, v_node, None, TB, nh),
                            TB, nh, S, hd)
    node_attn = _dot(node_ctx, getp('na_wo')) + getp('na_bo')    # (TB*S, H)

    pkv = _dot(prev_h.reshape(TB * P, H), getp('pa_wkv')) + getp('pa_bkv')   # (TB*P, 2H)
    k_prev = _split_heads(pkv[:, :H], TB, P, nh, hd)
    v_prev = _split_heads(pkv[:, H:], TB, P, nh, hd)
    prev_ctx = _merge_heads(attention_core(q_prev, k_prev, v_prev, prev_bias, TB, nh),
                            TB, nh, S, hd)
    prev_attn = _dot(prev_ctx, getp('pa_wo')) + getp('pa_bo')    # (TB*S, H)

    # combine MLP: split weight instead of concatenating activations along lanes
    combined = (_dot(prev_attn, getp('comb_wp')) + _dot(node_attn, getp('comb_wn'))
                + getp('comb_b'))
    combined = jnp.maximum(combined, 0.0).reshape(TB, S, H)
    combined = combined * in_mask_q + input_attn

    out = layer_norm(combined, getp('ln2_g'), getp('ln2_b'))
    o2 = out.reshape(TB * S, H)
    o2 = jnp.maximum(_dot(o2, getp('ff1_w')) + getp('ff1_b'), 0.0)
    o2 = _dot(o2, getp('ff2_w')) + getp('ff2_b')
    return o2.reshape(TB, S, H) + combined


# ----------------------------------------------------------------------------------
# Host-side helpers: attention biases (mask-only) and parameter packing.
# ----------------------------------------------------------------------------------
def _build_attention_biases(input_mask, prev_mask):
    """Additive biases computed once in the wrapper and reused by every decoder block."""
    B, S = input_mask.shape
    row = lax.broadcasted_iota(jnp.int32, (S, S), 0)
    col = lax.broadcasted_iota(jnp.int32, (S, S), 1)
    causal = jnp.where(col <= row, 0.0, NEG_INF).astype(jnp.float32)        # (S, S)
    key_pad = jnp.where(input_mask[:, None, :] > 0.5, 0.0, NEG_INF)         # (B, 1, S)
    self_bias = (causal[None, :, :] + key_pad).astype(jnp.float32)          # (B, S, S)
    prev_bias = jnp.where(prev_mask[:, None, :] > 0.5, 0.0,
                          NEG_INF).astype(jnp.float32)                      # (B, 1, P)
    return self_bias, prev_bias


def pack_block_params(p, num_heads):
    """Lane-dense fused projections, bf16 weights (f32 biases / LN params),
    1/sqrt(head_dim) folded into the Q projections, combine weight split in two."""
    wdt = jnp.bfloat16
    H = p['sa_wq'].shape[0]
    scale = 1.0 / math.sqrt(H // num_heads)

    def wcat(*ws):
        return jnp.concatenate(ws, axis=1).astype(wdt)

    def bcat(*bs):
        return jnp.concatenate(bs, axis=1).astype(jnp.float32)

    return {
        'sa_wqkv': wcat(p['sa_wq'] * scale, p['sa_wk'], p['sa_wv']),   # (H, 3H) bf16
        'sa_bqkv': bcat(p['sa_bq'] * scale, p['sa_bk'], p['sa_bv']),   # (1, 3H) f32
        'sa_wo': p['sa_wo'].astype(wdt),
        'sa_bo': p['sa_bo'].astype(jnp.float32),
        'ln1_g': p['ln1_g'].astype(jnp.float32),
        'ln1_b': p['ln1_b'].astype(jnp.float32),
        'cx_wq': wcat(p['na_wq'] * scale, p['pa_wq'] * scale),         # node-q | prev-q
        'cx_bq': bcat(p['na_bq'] * scale, p['pa_bq'] * scale),
        'na_wkv': wcat(p['na_wk'], p['na_wv']),
        'na_bkv': bcat(p['na_bk'], p['na_bv']),
        'na_wo': p['na_wo'].astype(wdt),
        'na_bo': p['na_bo'].astype(jnp.float32),
        'pa_wkv': wcat(p['pa_wk'], p['pa_wv']),
        'pa_bkv': bcat(p['pa_bk'], p['pa_bv']),
        'pa_wo': p['pa_wo'].astype(wdt),
        'pa_bo': p['pa_bo'].astype(jnp.float32),
        'comb_wp': p['comb_w'][:H].astype(wdt),    # applied to prev_action_attn
        'comb_wn': p['comb_w'][H:].astype(wdt),    # applied to node_attn
        'comb_b': p['comb_b'].astype(jnp.float32),
        'ln2_g': p['ln2_g'].astype(jnp.float32),
        'ln2_b': p['ln2_b'].astype(jnp.float32),
        'ff1_w': p['ff1_w'].astype(wdt),
        'ff1_b': p['ff1_b'].astype(jnp.float32),
        'ff2_w': p['ff2_w'].astype(wdt),
        'ff2_b': p['ff2_b'].astype(jnp.float32),
    }


def pos_encoding(seq_len, channels, min_timescale=1.0, max_timescale=1.0e4):
    """PositionalEncoderTensor2Tensor signal: [sin | cos] over half the channels each."""
    position = jnp.arange(seq_len, dtype=jnp.float32)
    num_timescales = channels // 2
    log_inc = math.log(float(max_timescale) / float(min_timescale)) / (num_timescales - 1)
    inv_timescales = min_timescale * jnp.exp(
        jnp.arange(num_timescales, dtype=jnp.float32) * -log_inc)
    scaled = position[:, None] * inv_timescales[None, :]
    return jnp.concatenate([jnp.sin(scaled), jnp.cos(scaled)], axis=1)  # (seq_len, channels)


# ----------------------------------------------------------------------------------
# Pallas wrapper: WHOLE decoder stack as one pallas_call, grid = (batch_tiles, num_blocks).
# ----------------------------------------------------------------------------------
def text_decoder_forward(x, input_mask, node_h, prev_h, prev_mask, blocks_params,
                         num_heads, *, batch_tile=None):
    B, S, H = x.shape
    N = node_h.shape[1]
    P = prev_h.shape[1]
    L = len(blocks_params)

    TB = B if batch_tile is None else batch_tile
    assert B % TB == 0, "batch_tile must divide batch"
    nb = B // TB

    pos_sig = pos_encoding(S, H)                                  # (S, H)
    in_mask_q = input_mask[:, :, None].astype(jnp.float32)        # (B, S, 1)
    self_bias, prev_bias = _build_attention_biases(input_mask, prev_mask)

    packed = [pack_block_params(p, num_heads) for p in blocks_params]
    stacked = [jnp.stack([pb[name] for pb in packed], axis=0) for name in PACKED_NAMES]
    n_params = len(PACKED_NAMES)
    n_fixed = 7

    # VMEM budgeting: keep the full weight stack resident if it comfortably fits even on
    # v7x (64 MiB physical VMEM per TC); otherwise stream one block's weights per step.
    weight_bytes = sum(int(a.size) * a.dtype.itemsize for a in stacked)
    params_resident = weight_bytes <= 24 * 1024 * 1024
    act_bytes = 4 * (2 * TB * S * H + TB * S * S + TB * N * H + TB * P * H
                     + TB * S + TB * P + S * H)
    resident_param_bytes = (weight_bytes if params_resident
                            else 2 * (weight_bytes // max(L, 1)))
    vmem_limit = int(min(100 * 1024 * 1024,
                         max(32 * 1024 * 1024,
                             2 * act_bytes + resident_param_bytes + 8 * 1024 * 1024)))

    def kernel(*refs):
        (x_ref, imq_ref, sbias_ref, node_ref, prev_ref, pbias_ref, pos_ref) = refs[:n_fixed]
        p_refs = refs[n_fixed:n_fixed + n_params]
        out_ref = refs[n_fixed + n_params]
        p_map = dict(zip(PACKED_NAMES, p_refs))

        l = pl.program_id(1)

        # Block 0 seeds the resident output block with the decoder input; afterwards the
        # running activation lives in the output VMEM block across the block axis.
        @pl.when(l == 0)
        def _():
            out_ref[...] = x_ref[...]

        if params_resident:
            getp = lambda name: p_map[name][l]    # whole stack VMEM-resident; slice block l
        else:
            getp = lambda name: p_map[name][0]    # per-block streamed tile

        new_x = decoder_block_math(
            out_ref[...],     # (TB, S, H) running activation (resident across block axis)
            imq_ref[...],     # (TB, S, 1)
            sbias_ref[...],   # (TB, S, S) causal + key-padding additive bias
            node_ref[...],    # (TB, N, H)
            prev_ref[...],    # (TB, P, H)
            pbias_ref[...],   # (TB, 1, P)
            pos_ref[...],     # (S, H)
            getp, num_heads)
        out_ref[...] = new_x.astype(out_ref.dtype)

    def param_spec(arr):
        if params_resident:
            nd = arr.ndim
            return pl.BlockSpec(arr.shape, lambda b, l, _nd=nd: (0,) * _nd)
        nz = arr.ndim - 1
        return pl.BlockSpec((1,) + arr.shape[1:],
                            lambda b, l, _nz=nz: (l,) + (0,) * _nz)

    in_specs = [
        pl.BlockSpec((TB, S, H), lambda b, l: (b, 0, 0)),   # x (consumed at block 0)
        pl.BlockSpec((TB, S, 1), lambda b, l: (b, 0, 0)),   # input mask, query orientation
        pl.BlockSpec((TB, S, S), lambda b, l: (b, 0, 0)),   # causal + key-pad additive bias
        pl.BlockSpec((TB, N, H), lambda b, l: (b, 0, 0)),   # node hidden
        pl.BlockSpec((TB, P, H), lambda b, l: (b, 0, 0)),   # prev action hidden
        pl.BlockSpec((TB, 1, P), lambda b, l: (b, 0, 0)),   # prev action additive bias
        pl.BlockSpec((S, H), lambda b, l: (0, 0)),          # positional encoding table
    ] + [param_spec(a) for a in stacked]

    out_specs = pl.BlockSpec((TB, S, H), lambda b, l: (b, 0, 0))

    return pl.pallas_call(
        kernel,
        out_shape=jax.ShapeDtypeStruct((B, S, H), jnp.float32),
        grid_spec=pltpu.PrefetchScalarGridSpec(
            num_scalar_prefetch=0,
            grid=(nb, L),                      # batch tiles outer (parallel), blocks inner
            in_specs=in_specs,
            out_specs=out_specs,
        ),
        compiler_params=pltpu.CompilerParams(
            dimension_semantics=("parallel", "arbitrary"),
            vmem_limit_bytes=vmem_limit,
        ),
    )(x, in_mask_q, self_bias, node_h, prev_h, prev_bias, pos_sig, *stacked)


def text_decoder_reference(x, input_mask, node_h, prev_h, prev_mask, blocks_params, num_heads):
    """Pure-JAX reference (identical packed math, no Pallas) for validation."""
    B, S, H = x.shape
    pos_sig = pos_encoding(S, H)
    in_mask_q = input_mask[:, :, None].astype(jnp.float32)
    self_bias, prev_bias = _build_attention_biases(input_mask, prev_mask)
    out = x
    for bp in blocks_params:
        p = pack_block_params(bp, num_heads)
        out = decoder_block_math(out, in_mask_q, self_bias, node_h, prev_h, prev_bias,
                                 pos_sig, lambda name, _p=p: _p[name], num_heads)
    return out


# ----------------------------------------------------------------------------------
# Deterministic synthetic parameter init (shapes follow TextDecoderBlock.__init__).
# ----------------------------------------------------------------------------------
def _param_shapes(H):
    sh = {}
    for pre in ('sa', 'na', 'pa'):
        for suf in ('wq', 'wk', 'wv', 'wo'):
            sh[f'{pre}_{suf}'] = (H, H)
        for suf in ('bq', 'bk', 'bv', 'bo'):
            sh[f'{pre}_{suf}'] = (1, H)
    for n in ('ln1_g', 'ln1_b', 'ln2_g', 'ln2_b'):
        sh[n] = (1, H)
    sh['comb_w'] = (2 * H, H)
    sh['comb_b'] = (1, H)
    sh['ff1_w'] = sh['ff2_w'] = (H, H)
    sh['ff1_b'] = sh['ff2_b'] = (1, H)
    return sh


def init_block_params(key, H):
    shapes = _param_shapes(H)
    keys = jax.random.split(key, len(PARAM_NAMES))
    params = {}
    for name, k in zip(PARAM_NAMES, keys):
        shp = shapes[name]
        if name in ('ln1_g', 'ln2_g'):
            params[name] = jnp.ones(shp, jnp.float32)
        elif name in ('ln1_b', 'ln2_b'):
            params[name] = jnp.zeros(shp, jnp.float32)
        else:
            fan_in = shp[0] if shp[0] > 1 else H
            params[name] = (jax.random.normal(k, shp, dtype=jnp.float32)
                            * (1.0 / math.sqrt(fan_in)))
    return params


if __name__ == "__main__":
    B, S, H, NH = 2, 8, 32, 4
    N_NODE, P_LEN = 6, 5
    NUM_BLOCKS = 2

    root = jax.random.PRNGKey(0)
    k_in, k_node, k_prev, k_params = jax.random.split(root, 4)
    x = jax.random.normal(k_in, (B, S, H), dtype=jnp.float32)
    node_h = jax.random.normal(k_node, (B, N_NODE, H), dtype=jnp.float32)
    prev_h = jax.random.normal(k_prev, (B, P_LEN, H), dtype=jnp.float32)

    # padding masks: 1.0 = valid, 0.0 = padded (prefix-valid so no fully-masked rows)
    input_lens = jnp.array([8, 5])
    prev_lens = jnp.array([5, 3])
    input_mask = (jnp.arange(S)[None, :] < input_lens[:, None]).astype(jnp.float32)
    prev_mask = (jnp.arange(P_LEN)[None, :] < prev_lens[:, None]).astype(jnp.float32)

    block_keys = jax.random.split(k_params, NUM_BLOCKS)
    blocks_params = [init_block_params(k, H) for k in block_keys]

    out = text_decoder_forward(x, input_mask, node_h, prev_h, prev_mask, blocks_params, NH)
    out = jax.block_until_ready(out)

    ref = text_decoder_reference(x, input_mask, node_h, prev_h, prev_mask, blocks_params, NH)
    ref = jax.block_until_ready(ref)

    err = float(jnp.max(jnp.abs(out - ref)))
    assert bool(jnp.all(jnp.isfinite(out))), "non-finite kernel output"
    assert err < 2e-2, f"kernel vs reference mismatch: {err}"
    print("KERNEL_OK")
</pallas_src>

<mosaic_0001>
module attributes {stable_mosaic.version = 11 : i64} {
  func.func @kernel(%arg0: i32, %arg1: i32, %arg2: memref<2x8x32xf32, #tpu.memory_space<vmem>>, %arg3: memref<2x8x1xf32, #tpu.memory_space<vmem>>, %arg4: memref<2x8x8xf32, #tpu.memory_space<vmem>>, %arg5: memref<2x6x32xf32, #tpu.memory_space<vmem>>, %arg6: memref<2x5x32xf32, #tpu.memory_space<vmem>>, %arg7: memref<2x1x5xf32, #tpu.memory_space<vmem>>, %arg8: memref<8x32xf32, #tpu.memory_space<vmem>>, %arg9: memref<2x32x96xbf16, #tpu.memory_space<vmem>>, %arg10: memref<2x1x96xf32, #tpu.memory_space<vmem>>, %arg11: memref<2x32x32xbf16, #tpu.memory_space<vmem>>, %arg12: memref<2x1x32xf32, #tpu.memory_space<vmem>>, %arg13: memref<2x1x32xf32, #tpu.memory_space<vmem>>, %arg14: memref<2x1x32xf32, #tpu.memory_space<vmem>>, %arg15: memref<2x32x64xbf16, #tpu.memory_space<vmem>>, %arg16: memref<2x1x64xf32, #tpu.memory_space<vmem>>, %arg17: memref<2x32x64xbf16, #tpu.memory_space<vmem>>, %arg18: memref<2x1x64xf32, #tpu.memory_space<vmem>>, %arg19: memref<2x32x32xbf16, #tpu.memory_space<vmem>>, %arg20: memref<2x1x32xf32, #tpu.memory_space<vmem>>, %arg21: memref<2x32x64xbf16, #tpu.memory_space<vmem>>, %arg22: memref<2x1x64xf32, #tpu.memory_space<vmem>>, %arg23: memref<2x32x32xbf16, #tpu.memory_space<vmem>>, %arg24: memref<2x1x32xf32, #tpu.memory_space<vmem>>, %arg25: memref<2x32x32xbf16, #tpu.memory_space<vmem>>, %arg26: memref<2x32x32xbf16, #tpu.memory_space<vmem>>, %arg27: memref<2x1x32xf32, #tpu.memory_space<vmem>>, %arg28: memref<2x1x32xf32, #tpu.memory_space<vmem>>, %arg29: memref<2x1x32xf32, #tpu.memory_space<vmem>>, %arg30: memref<2x32x32xbf16, #tpu.memory_space<vmem>>, %arg31: memref<2x1x32xf32, #tpu.memory_space<vmem>>, %arg32: memref<2x32x32xbf16, #tpu.memory_space<vmem>>, %arg33: memref<2x1x32xf32, #tpu.memory_space<vmem>>, %arg34: memref<2x8x32xf32, #tpu.memory_space<vmem>>) attributes {dimension_semantics = [#tpu.dimension_semantics<parallel>, #tpu.dimension_semantics<arbitrary>], iteration_bounds = array<i64: 1, 2>, scalar_prefetch = 0 : i64, scratch_operands = 0 : i64, tpu.core_type = #tpu.core_type<tc>, window_params = [{transform_indices = @transform_0, window_bounds = array<i64: 2, 8, 32>}, {transform_indices = @transform_1, window_bounds = array<i64: 2, 8, 1>}, {transform_indices = @transform_2, window_bounds = array<i64: 2, 8, 8>}, {transform_indices = @transform_3, window_bounds = array<i64: 2, 6, 32>}, {transform_indices = @transform_4, window_bounds = array<i64: 2, 5, 32>}, {transform_indices = @transform_5, window_bounds = array<i64: 2, 1, 5>}, {pipeline_mode = #tpu.pipeline_mode<synchronous>, transform_indices = @transform_6, window_bounds = array<i64: 8, 32>}, {pipeline_mode = #tpu.pipeline_mode<synchronous>, transform_indices = @transform_7, window_bounds = array<i64: 2, 32, 96>}, {pipeline_mode = #tpu.pipeline_mode<synchronous>, transform_indices = @transform_8, window_bounds = array<i64: 2, 1, 96>}, {pipeline_mode = #tpu.pipeline_mode<synchronous>, transform_indices = @transform_9, window_bounds = array<i64: 2, 32, 32>}, {pipeline_mode = #tpu.pipeline_mode<synchronous>, transform_indices = @transform_10, window_bounds = array<i64: 2, 1, 32>}, {pipeline_mode = #tpu.pipeline_mode<synchronous>, transform_indices = @transform_11, window_bounds = array<i64: 2, 1, 32>}, {pipeline_mode = #tpu.pipeline_mode<synchronous>, transform_indices = @transform_12, window_bounds = array<i64: 2, 1, 32>}, {pipeline_mode = #tpu.pipeline_mode<synchronous>, transform_indices = @transform_13, window_bounds = array<i64: 2, 32, 64>}, {pipeline_mode = #tpu.pipeline_mode<synchronous>, transform_indices = @transform_14, window_bounds = array<i64: 2, 1, 64>}, {pipeline_mode = #tpu.pipeline_mode<synchronous>, transform_indices = @transform_15, window_bounds = array<i64: 2, 32, 64>}, {pipeline_mode = #tpu.pipeline_mode<synchronous>, transform_indices = @transform_16, window_bounds = array<i64: 2, 1, 64>}, {pipeline_mode = #tpu.pipeline_mode<synchronous>, transform_indices = @transform_17, window_bounds = array<i64: 2, 32, 32>}, {pipeline_mode = #tpu.pipeline_mode<synchronous>, transform_indices = @transform_18, window_bounds = array<i64: 2, 1, 32>}, {pipeline_mode = #tpu.pipeline_mode<synchronous>, transform_indices = @transform_19, window_bounds = array<i64: 2, 32, 64>}, {pipeline_mode = #tpu.pipeline_mode<synchronous>, transform_indices = @transform_20, window_bounds = array<i64: 2, 1, 64>}, {pipeline_mode = #tpu.pipeline_mode<synchronous>, transform_indices = @transform_21, window_bounds = array<i64: 2, 32, 32>}, {pipeline_mode = #tpu.pipeline_mode<synchronous>, transform_indices = @transform_22, window_bounds = array<i64: 2, 1, 32>}, {pipeline_mode = #tpu.pipeline_mode<synchronous>, transform_indices = @transform_23, window_bounds = array<i64: 2, 32, 32>}, {pipeline_mode = #tpu.pipeline_mode<synchronous>, transform_indices = @transform_24, window_bounds = array<i64: 2, 32, 32>}, {pipeline_mode = #tpu.pipeline_mode<synchronous>, transform_indices = @transform_25, window_bounds = array<i64: 2, 1, 32>}, {pipeline_mode = #tpu.pipeline_mode<synchronous>, transform_indices = @transform_26, window_bounds = array<i64: 2, 1, 32>}, {pipeline_mode = #tpu.pipeline_mode<synchronous>, transform_indices = @transform_27, window_bounds = array<i64: 2, 1, 32>}, {pipeline_mode = #tpu.pipeline_mode<synchronous>, transform_indices = @transform_28, window_bounds = array<i64: 2, 32, 32>}, {pipeline_mode = #tpu.pipeline_mode<synchronous>, transform_indices = @transform_29, window_bounds = array<i64: 2, 1, 32>}, {pipeline_mode = #tpu.pipeline_mode<synchronous>, transform_indices = @transform_30, window_bounds = array<i64: 2, 32, 32>}, {pipeline_mode = #tpu.pipeline_mode<synchronous>, transform_indices = @transform_31, window_bounds = array<i64: 2, 1, 32>}, {transform_indices = @transform_32, window_bounds = array<i64: 2, 8, 32>}]} {
    %c0_i32 = arith.constant 0 : i32
    %0 = arith.cmpi eq, %arg1, %c0_i32 : i32
    %1 = arith.extui %0 : i1 to i32
    %c0_i32_0 = arith.constant 0 : i32
    %2 = arith.cmpi ne, %1, %c0_i32_0 : i32
    scf.if %2 {
      %c0_107 = arith.constant 0 : index
      %c0_108 = arith.constant 0 : index
      %c0_109 = arith.constant 0 : index
      %299 = vector.load %arg2[%c0_107, %c0_108, %c0_109] : memref<2x8x32xf32, #tpu.memory_space<vmem>>, vector<2x8x32xf32>
      %c0_110 = arith.constant 0 : index
      %c0_111 = arith.constant 0 : index
      %c0_112 = arith.constant 0 : index
      %300 = vector.load %arg34[%c0_110, %c0_111, %c0_112] : memref<2x8x32xf32, #tpu.memory_space<vmem>>, vector<2x8x32xf32>
      tpu.vector_store %arg34[%c0_110, %c0_111, %c0_112], %299 {strides = array<i32>} : memref<2x8x32xf32, #tpu.memory_space<vmem>>, vector<2x8x32xf32>,
    } else {
    }
    %c0 = arith.constant 0 : index
    %c0_1 = arith.constant 0 : index
    %c0_2 = arith.constant 0 : index
    %3 = vector.load %arg34[%c0, %c0_1, %c0_2] : memref<2x8x32xf32, #tpu.memory_space<vmem>>, vector<2x8x32xf32>
    %c0_3 = arith.constant 0 : index
    %c0_4 = arith.constant 0 : index
    %c0_5 = arith.constant 0 : index
    %4 = vector.load %arg3[%c0_3, %c0_4, %c0_5] : memref<2x8x1xf32, #tpu.memory_space<vmem>>, vector<2x8x1xf32>
    %c0_6 = arith.constant 0 : index
    %c0_7 = arith.constant 0 : index
    %c0_8 = arith.constant 0 : index
    %5 = vector.load %arg4[%c0_6, %c0_7, %c0_8] : memref<2x8x8xf32, #tpu.memory_space<vmem>>, vector<2x8x8xf32>
    %c0_9 = arith.constant 0 : index
    %c0_10 = arith.constant 0 : index
    %c0_11 = arith.constant 0 : index
    %6 = vector.load %arg5[%c0_9, %c0_10, %c0_11] : memref<2x6x32xf32, #tpu.memory_space<vmem>>, vector<2x6x32xf32>
    %c0_12 = arith.constant 0 : index
    %c0_13 = arith.constant 0 : index
    %c0_14 = arith.constant 0 : index
    %7 = vector.load %arg6[%c0_12, %c0_13, %c0_14] : memref<2x5x32xf32, #tpu.memory_space<vmem>>, vector<2x5x32xf32>
    %c0_15 = arith.constant 0 : index
    %c0_16 = arith.constant 0 : index
    %c0_17 = arith.constant 0 : index
    %8 = vector.load %arg7[%c0_15, %c0_16, %c0_17] : memref<2x1x5xf32, #tpu.memory_space<vmem>>, vector<2x1x5xf32>
    %c0_18 = arith.constant 0 : index
    %c0_19 = arith.constant 0 : index
    %9 = vector.load %arg8[%c0_18, %c0_19] : memref<8x32xf32, #tpu.memory_space<vmem>>, vector<8x32xf32>
    %10 = vector.shape_cast %9 : vector<8x32xf32> to vector<1x8x32xf32>
    %11 = vector.broadcast %10 : vector<1x8x32xf32> to vector<2x8x32xf32>
    %12 = arith.addf %3, %11 : vector<2x8x32xf32>
    %13 = vector.shape_cast %12 : vector<2x8x32xf32> to vector<16x32xf32>
    %14 = arith.index_cast %arg1 : i32 to index
    %c0_20 = arith.constant 0 : index
    %c0_21 = arith.constant 0 : index
    %15 = vector.load %arg9[%14, %c0_20, %c0_21] : memref<2x32x96xbf16, #tpu.memory_space<vmem>>, vector<1x32x96xbf16>
    %16 = vector.shape_cast %15 : vector<1x32x96xbf16> to vector<32x96xbf16>
    %17 = arith.truncf %13 : vector<16x32xf32> to vector<16x32xbf16>
    %cst = arith.constant dense<0.000000e+00> : vector<16x96xf32>
    %18 = tpu.matmul %17, %16, %cst {dimension_numbers = #tpu.dot_dimension_numbers<[1], [0], [0], [1], [0, 0, 1, 1], [], []>} : vector<16x32xbf16>, vector<32x96xbf16>, vector<16x96xf32> -> vector<16x96xf32>
    %19 = arith.index_cast %arg1 : i32 to index
    %c0_22 = arith.constant 0 : index
    %c0_23 = arith.constant 0 : index
    %20 = vector.load %arg10[%19, %c0_22, %c0_23] : memref<2x1x96xf32, #tpu.memory_space<vmem>>, vector<1x1x96xf32>
    %21 = vector.shape_cast %20 : vector<1x1x96xf32> to vector<1x96xf32>
    %22 = vector.broadcast %21 : vector<1x96xf32> to vector<16x96xf32>
    %23 = arith.addf %18, %22 : vector<16x96xf32>
    %24 = vector.extract_strided_slice %23 {offsets = [0, 0], sizes = [16, 32], strides = [1, 1]} : vector<16x96xf32> to vector<16x32xf32>
    %25 = vector.shape_cast %24 : vector<16x32xf32> to vector<2x8x4x8xf32>
    %26 = tpu.transpose %25, [0, 2, 1, 3] : vector<2x8x4x8xf32> -> vector<2x4x8x8xf32>
    %27 = vector.shape_cast %26 : vector<2x4x8x8xf32> to vector<8x8x8xf32>
    %28 = vector.extract_strided_slice %23 {offsets = [0, 32], sizes = [16, 32], strides = [1, 1]} : vector<16x96xf32> to vector<16x32xf32>
    %29 = vector.shape_cast %28 : vector<16x32xf32> to vector<2x8x4x8xf32>
    %30 = tpu.transpose %29, [0, 2, 1, 3] : vector<2x8x4x8xf32> -> vector<2x4x8x8xf32>
    %31 = vector.shape_cast %30 : vector<2x4x8x8xf32> to vector<8x8x8xf32>
    %32 = vector.extract_strided_slice %23 {offsets = [0, 64], sizes = [16, 32], strides = [1, 1]} : vector<16x96xf32> to vector<16x32xf32>
    %33 = vector.shape_cast %32 : vector<16x32xf32> to vector<2x8x4x8xf32>
    %34 = tpu.transpose %33, [0, 2, 1, 3] : vector<2x8x4x8xf32> -> vector<2x4x8x8xf32>
    %35 = vector.shape_cast %34 : vector<2x4x8x8xf32> to vector<8x8x8xf32>
    %36 = arith.truncf %27 : vector<8x8x8xf32> to vector<8x8x8xbf16>
    %37 = arith.truncf %31 : vector<8x8x8xf32> to vector<8x8x8xbf16>
    %cst_24 = arith.constant dense<0.000000e+00> : vector<8x8x8xf32>
    %38 = tpu.matmul %36, %37, %cst_24 {dimension_numbers = #tpu.dot_dimension_numbers<[2], [2], [1], [1], [0, 0, 0, 1, 1, 1], [0], [0]>} : vector<8x8x8xbf16>, vector<8x8x8xbf16>, vector<8x8x8xf32> -> vector<8x8x8xf32>
    %39 = vector.shape_cast %38 : vector<8x8x8xf32> to vector<2x4x8x8xf32>
    %40 = vector.shape_cast %5 : vector<2x8x8xf32> to vector<2x1x8x8xf32>
    %41 = vector.broadcast %40 : vector<2x1x8x8xf32> to vector<2x4x8x8xf32>
    %42 = arith.addf %39, %41 : vector<2x4x8x8xf32>
    %43 = vector.shape_cast %42 : vector<2x4x8x8xf32> to vector<8x8x8xf32>
    %cst_25 = arith.constant dense<0xFF800000> : vector<8x8xf32>
    %44 = vector.multi_reduction <maximumf>, %43, %cst_25 [2] : vector<8x8x8xf32> to vector<8x8xf32>
    %45 = vector.shape_cast %44 : vector<8x8xf32> to vector<8x8x1xf32>
    %46 = vector.broadcast %45 : vector<8x8x1xf32> to vector<8x8x8xf32>
    %47 = arith.subf %43, %46 : vector<8x8x8xf32>
    %48 = math.exp %47 : vector<8x8x8xf32>
    %cst_26 = arith.constant dense<0.000000e+00> : vector<8x8xf32>
    %49 = vector.multi_reduction <add>, %48, %cst_26 [2] : vector<8x8x8xf32> to vector<8x8xf32>
    %50 = vector.shape_cast %49 : vector<8x8xf32> to vector<8x8x1xf32>
    %51 = vector.broadcast %50 : vector<8x8x1xf32> to vector<8x8x8xf32>
    %52 = arith.divf %48, %51 : vector<8x8x8xf32>
    %53 = arith.truncf %52 : vector<8x8x8xf32> to vector<8x8x8xbf16>
    %54 = arith.truncf %35 : vector<8x8x8xf32> to vector<8x8x8xbf16>
    %cst_27 = arith.constant dense<0.000000e+00> : vector<8x8x8xf32>
    %55 = tpu.matmul %53, %54, %cst_27 {dimension_numbers = #tpu.dot_dimension_numbers<[2], [1], [1], [2], [0, 0, 0, 1, 1, 2], [0], [0]>} : vector<8x8x8xbf16>, vector<8x8x8xbf16>, vector<8x8x8xf32> -> vector<8x8x8xf32>
    %56 = vector.shape_cast %55 : vector<8x8x8xf32> to vector<2x4x8x8xf32>
    %57 = tpu.transpose %56, [0, 2, 1, 3] : vector<2x4x8x8xf32> -> vector<2x8x4x8xf32>
    %58 = vector.shape_cast %57 : vector<2x8x4x8xf32> to vector<16x32xf32>
    %59 = arith.index_cast %arg1 : i32 to index
    %c0_28 = arith.constant 0 : index
    %c0_29 = arith.constant 0 : index
    %60 = vector.load %arg11[%59, %c0_28, %c0_29] : memref<2x32x32xbf16, #tpu.memory_space<vmem>>, vector<1x32x32xbf16>
    %61 = vector.shape_cast %60 : vector<1x32x32xbf16> to vector<32x32xbf16>
    %62 = arith.truncf %58 : vector<16x32xf32> to vector<16x32xbf16>
    %cst_30 = arith.constant dense<0.000000e+00> : vector<16x32xf32>
    %63 = tpu.matmul %62, %61, %cst_30 {dimension_numbers = #tpu.dot_dimension_numbers<[1], [0], [0], [1], [0, 0, 1, 1], [], []>} : vector<16x32xbf16>, vector<32x32xbf16>, vector<16x32xf32> -> vector<16x32xf32>
    %64 = arith.index_cast %arg1 : i32 to index
    %c0_31 = arith.constant 0 : index
    %c0_32 = arith.constant 0 : index
    %65 = vector.load %arg12[%64, %c0_31, %c0_32] : memref<2x1x32xf32, #tpu.memory_space<vmem>>, vector<1x1x32xf32>
    %66 = vector.shape_cast %65 : vector<1x1x32xf32> to vector<1x32xf32>
    %67 = vector.broadcast %66 : vector<1x32xf32> to vector<16x32xf32>
    %68 = arith.addf %63, %67 : vector<16x32xf32>
    %69 = vector.shape_cast %68 : vector<16x32xf32> to vector<2x8x32xf32>
    %70 = vector.broadcast %4 : vector<2x8x1xf32> to vector<2x8x32xf32>
    %71 = arith.mulf %69, %70 : vector<2x8x32xf32>
    %72 = arith.addf %71, %12 : vector<2x8x32xf32>
    %73 = arith.index_cast %arg1 : i32 to index
    %c0_33 = arith.constant 0 : index
    %c0_34 = arith.constant 0 : index
    %74 = vector.load %arg13[%73, %c0_33, %c0_34] : memref<2x1x32xf32, #tpu.memory_space<vmem>>, vector<1x1x32xf32>
    %75 = vector.shape_cast %74 : vector<1x1x32xf32> to vector<1x32xf32>
    %76 = arith.index_cast %arg1 : i32 to index
    %c0_35 = arith.constant 0 : index
    %c0_36 = arith.constant 0 : index
    %77 = vector.load %arg14[%76, %c0_35, %c0_36] : memref<2x1x32xf32, #tpu.memory_space<vmem>>, vector<1x1x32xf32>
    %78 = vector.shape_cast %77 : vector<1x1x32xf32> to vector<1x32xf32>
    %cst_37 = arith.constant dense<0.000000e+00> : vector<2x8xf32>
    %79 = vector.multi_reduction <add>, %72, %cst_37 [2] : vector<2x8x32xf32> to vector<2x8xf32>
    %80 = vector.shape_cast %79 : vector<2x8xf32> to vector<2x8x1xf32>
    %cst_38 = arith.constant 3.200000e+01 : f32
    %81 = vector.broadcast %cst_38 : f32 to vector<2x8x1xf32>
    %82 = arith.divf %80, %81 : vector<2x8x1xf32>
    %83 = vector.broadcast %82 : vector<2x8x1xf32> to vector<2x8x32xf32>
    %84 = arith.subf %72, %83 : vector<2x8x32xf32>
    %85 = arith.mulf %84, %84 : vector<2x8x32xf32>
    %cst_39 = arith.constant dense<0.000000e+00> : vector<2x8xf32>
    %86 = vector.multi_reduction <add>, %85, %cst_39 [2] : vector<2x8x32xf32> to vector<2x8xf32>
    %87 = vector.shape_cast %86 : vector<2x8xf32> to vector<2x8x1xf32>
    %cst_40 = arith.constant 3.200000e+01 : f32
    %88 = vector.broadcast %cst_40 : f32 to vector<2x8x1xf32>
    %89 = arith.divf %87, %88 : vector<2x8x1xf32>
    %90 = vector.broadcast %82 : vector<2x8x1xf32> to vector<2x8x32xf32>
    %91 = arith.subf %72, %90 : vector<2x8x32xf32>
    %cst_41 = arith.constant 9.99999974E-6 : f32
    %92 = vector.broadcast %cst_41 : f32 to vector<2x8x1xf32>
    %93 = arith.addf %89, %92 : vector<2x8x1xf32>
    %94 = math.rsqrt %93 : vector<2x8x1xf32>
    %95 = vector.broadcast %94 : vector<2x8x1xf32> to vector<2x8x32xf32>
    %96 = arith.mulf %91, %95 : vector<2x8x32xf32>
    %97 = vector.shape_cast %75 : vector<1x32xf32> to vector<1x1x32xf32>
    %98 = vector.broadcast %97 : vector<1x1x32xf32> to vector<2x8x32xf32>
    %99 = arith.mulf %96, %98 : vector<2x8x32xf32>
    %100 = vector.shape_cast %78 : vector<1x32xf32> to vector<1x1x32xf32>
    %101 = vector.broadcast %100 : vector<1x1x32xf32> to vector<2x8x32xf32>
    %102 = arith.addf %99, %101 : vector<2x8x32xf32>
    %103 = vector.shape_cast %102 : vector<2x8x32xf32> to vector<16x32xf32>
    %104 = arith.index_cast %arg1 : i32 to index
    %c0_42 = arith.constant 0 : index
    %c0_43 = arith.constant 0 : index
    %105 = vector.load %arg15[%104, %c0_42, %c0_43] : memref<2x32x64xbf16, #tpu.memory_space<vmem>>, vector<1x32x64xbf16>
    %106 = vector.shape_cast %105 : vector<1x32x64xbf16> to vector<32x64xbf16>
    %107 = arith.truncf %103 : vector<16x32xf32> to vector<16x32xbf16>
    %cst_44 = arith.constant dense<0.000000e+00> : vector<16x64xf32>
    %108 = tpu.matmul %107, %106, %cst_44 {dimension_numbers = #tpu.dot_dimension_numbers<[1], [0], [0], [1], [0, 0, 1, 1], [], []>} : vector<16x32xbf16>, vector<32x64xbf16>, vector<16x64xf32> -> vector<16x64xf32>
    %109 = arith.index_cast %arg1 : i32 to index
    %c0_45 = arith.constant 0 : index
    %c0_46 = arith.constant 0 : index
    %110 = vector.load %arg16[%109, %c0_45, %c0_46] : memref<2x1x64xf32, #tpu.memory_space<vmem>>, vector<1x1x64xf32>
    %111 = vector.shape_cast %110 : vector<1x1x64xf32> to vector<1x64xf32>
    %112 = vector.broadcast %111 : vector<1x64xf32> to vector<16x64xf32>
    %113 = arith.addf %108, %112 : vector<16x64xf32>
    %114 = vector.extract_strided_slice %113 {offsets = [0, 0], sizes = [16, 32], strides = [1, 1]} : vector<16x64xf32> to vector<16x32xf32>
    %115 = vector.shape_cast %114 : vector<16x32xf32> to vector<2x8x4x8xf32>
    %116 = tpu.transpose %115, [0, 2, 1, 3] : vector<2x8x4x8xf32> -> vector<2x4x8x8xf32>
    %117 = vector.shape_cast %116 : vector<2x4x8x8xf32> to vector<8x8x8xf32>
    %118 = vector.extract_strided_slice %113 {offsets = [0, 32], sizes = [16, 32], strides = [1, 1]} : vector<16x64xf32> to vector<16x32xf32>
    %119 = vector.shape_cast %118 : vector<16x32xf32> to vector<2x8x4x8xf32>
    %120 = tpu.transpose %119, [0, 2, 1, 3] : vector<2x8x4x8xf32> -> vector<2x4x8x8xf32>
    %121 = vector.shape_cast %120 : vector<2x4x8x8xf32> to vector<8x8x8xf32>
    %122 = vector.shape_cast %6 : vector<2x6x32xf32> to vector<12x32xf32>
    %123 = arith.index_cast %arg1 : i32 to index
    %c0_47 = arith.constant 0 : index
    %c0_48 = arith.constant 0 : index
    %124 = vector.load %arg17[%123, %c0_47, %c0_48] : memref<2x32x64xbf16, #tpu.memory_space<vmem>>, vector<1x32x64xbf16>
    %125 = vector.shape_cast %124 : vector<1x32x64xbf16> to vector<32x64xbf16>
    %126 = arith.truncf %122 : vector<12x32xf32> to vector<12x32xbf16>
    %cst_49 = arith.constant dense<0.000000e+00> : vector<12x64xf32>
    %127 = tpu.matmul %126, %125, %cst_49 {dimension_numbers = #tpu.dot_dimension_numbers<[1], [0], [0], [1], [0, 0, 1, 1], [], []>} : vector<12x32xbf16>, vector<32x64xbf16>, vector<12x64xf32> -> vector<12x64xf32>
    %128 = arith.index_cast %arg1 : i32 to index
    %c0_50 = arith.constant 0 : index
    %c0_51 = arith.constant 0 : index
    %129 = vector.load %arg18[%128, %c0_50, %c0_51] : memref<2x1x64xf32, #tpu.memory_space<vmem>>, vector<1x1x64xf32>
    %130 = vector.shape_cast %129 : vector<1x1x64xf32> to vector<1x64xf32>
    %131 = vector.broadcast %130 : vector<1x64xf32> to vector<12x64xf32>
    %132 = arith.addf %127, %131 : vector<12x64xf32>
    %133 = vector.extract_strided_slice %132 {offsets = [0, 0], sizes = [12, 32], strides = [1, 1]} : vector<12x64xf32> to vector<12x32xf32>
    %134 = vector.shape_cast %133 : vector<12x32xf32> to vector<2x6x4x8xf32>
    %135 = tpu.transpose %134, [0, 2, 1, 3] : vector<2x6x4x8xf32> -> vector<2x4x6x8xf32>
    %136 = vector.shape_cast %135 : vector<2x4x6x8xf32> to vector<8x6x8xf32>
    %137 = vector.extract_strided_slice %132 {offsets = [0, 32], sizes = [12, 32], strides = [1, 1]} : vector<12x64xf32> to vector<12x32xf32>
    %138 = vector.shape_cast %137 : vector<12x32xf32> to vector<2x6x4x8xf32>
    %139 = tpu.transpose %138, [0, 2, 1, 3] : vector<2x6x4x8xf32> -> vector<2x4x6x8xf32>
    %140 = vector.shape_cast %139 : vector<2x4x6x8xf32> to vector<8x6x8xf32>
    %141 = arith.truncf %117 : vector<8x8x8xf32> to vector<8x8x8xbf16>
    %142 = arith.truncf %136 : vector<8x6x8xf32> to vector<8x6x8xbf16>
    %cst_52 = arith.constant dense<0.000000e+00> : vector<8x8x6xf32>
    %143 = tpu.matmul %141, %142, %cst_52 {dimension_numbers = #tpu.dot_dimension_numbers<[2], [2], [1], [1], [0, 0, 0, 1, 1, 1], [0], [0]>} : vector<8x8x8xbf16>, vector<8x6x8xbf16>, vector<8x8x6xf32> -> vector<8x8x6xf32>
    %cst_53 = arith.constant dense<0xFF800000> : vector<8x8xf32>
    %144 = vector.multi_reduction <maximumf>, %143, %cst_53 [2] : vector<8x8x6xf32> to vector<8x8xf32>
    %145 = vector.shape_cast %144 : vector<8x8xf32> to vector<8x8x1xf32>
    %146 = vector.broadcast %145 : vector<8x8x1xf32> to vector<8x8x6xf32>
    %147 = arith.subf %143, %146 : vector<8x8x6xf32>
    %148 = math.exp %147 : vector<8x8x6xf32>
    %cst_54 = arith.constant dense<0.000000e+00> : vector<8x8xf32>
    %149 = vector.multi_reduction <add>, %148, %cst_54 [2] : vector<8x8x6xf32> to vector<8x8xf32>
    %150 = vector.shape_cast %149 : vector<8x8xf32> to vector<8x8x1xf32>
    %151 = vector.broadcast %150 : vector<8x8x1xf32> to vector<8x8x6xf32>
    %152 = arith.divf %148, %151 : vector<8x8x6xf32>
    %153 = arith.truncf %152 : vector<8x8x6xf32> to vector<8x8x6xbf16>
    %154 = arith.truncf %140 : vector<8x6x8xf32> to vector<8x6x8xbf16>
    %cst_55 = arith.constant dense<0.000000e+00> : vector<8x8x8xf32>
    %155 = tpu.matmul %153, %154, %cst_55 {dimension_numbers = #tpu.dot_dimension_numbers<[2], [1], [1], [2], [0, 0, 0, 1, 1, 2], [0], [0]>} : vector<8x8x6xbf16>, vector<8x6x8xbf16>, vector<8x8x8xf32> -> vector<8x8x8xf32>
    %156 = vector.shape_cast %155 : vector<8x8x8xf32> to vector<2x4x8x8xf32>
    %157 = tpu.transpose %156, [0, 2, 1, 3] : vector<2x4x8x8xf32> -> vector<2x8x4x8xf32>
    %158 = vector.shape_cast %157 : vector<2x8x4x8xf32> to vector<16x32xf32>
    %159 = arith.index_cast %arg1 : i32 to index
    %c0_56 = arith.constant 0 : index
    %c0_57 = arith.constant 0 : index
    %160 = vector.load %arg19[%159, %c0_56, %c0_57] : memref<2x32x32xbf16, #tpu.memory_space<vmem>>, vector<1x32x32xbf16>
    %161 = vector.shape_cast %160 : vector<1x32x32xbf16> to vector<32x32xbf16>
    %162 = arith.truncf %158 : vector<16x32xf32> to vector<16x32xbf16>
    %cst_58 = arith.constant dense<0.000000e+00> : vector<16x32xf32>
    %163 = tpu.matmul %162, %161, %cst_58 {dimension_numbers = #tpu.dot_dimension_numbers<[1], [0], [0], [1], [0, 0, 1, 1], [], []>} : vector<16x32xbf16>, vector<32x32xbf16>, vector<16x32xf32> -> vector<16x32xf32>
    %164 = arith.index_cast %arg1 : i32 to index
    %c0_59 = arith.constant 0 : index
    %c0_60 = arith.constant 0 : index
    %165 = vector.load %arg20[%164, %c0_59, %c0_60] : memref<2x1x32xf32, #tpu.memory_space<vmem>>, vector<1x1x32xf32>
    %166 = vector.shape_cast %165 : vector<1x1x32xf32> to vector<1x32xf32>
    %167 = vector.broadcast %166 : vector<1x32xf32> to vector<16x32xf32>
    %168 = arith.addf %163, %167 : vector<16x32xf32>
    %169 = vector.shape_cast %7 : vector<2x5x32xf32> to vector<10x32xf32>
    %170 = arith.index_cast %arg1 : i32 to index
    %c0_61 = arith.constant 0 : index
    %c0_62 = arith.constant 0 : index
    %171 = vector.load %arg21[%170, %c0_61, %c0_62] : memref<2x32x64xbf16, #tpu.memory_space<vmem>>, vector<1x32x64xbf16>
    %172 = vector.shape_cast %171 : vector<1x32x64xbf16> to vector<32x64xbf16>
    %173 = arith.truncf %169 : vector<10x32xf32> to vector<10x32xbf16>
    %cst_63 = arith.constant dense<0.000000e+00> : vector<10x64xf32>
    %174 = tpu.matmul %173, %172, %cst_63 {dimension_numbers = #tpu.dot_dimension_numbers<[1], [0], [0], [1], [0, 0, 1, 1], [], []>} : vector<10x32xbf16>, vector<32x64xbf16>, vector<10x64xf32> -> vector<10x64xf32>
    %175 = arith.index_cast %arg1 : i32 to index
    %c0_64 = arith.constant 0 : index
    %c0_65 = arith.constant 0 : index
    %176 = vector.load %arg22[%175, %c0_64, %c0_65] : memref<2x1x64xf32, #tpu.memory_space<vmem>>, vector<1x1x64xf32>
    %177 = vector.shape_cast %176 : vector<1x1x64xf32> to vector<1x64xf32>
    %178 = vector.broadcast %177 : vector<1x64xf32> to vector<10x64xf32>
    %179 = arith.addf %174, %178 : vector<10x64xf32>
    %180 = vector.extract_strided_slice %179 {offsets = [0, 0], sizes = [10, 32], strides = [1, 1]} : vector<10x64xf32> to vector<10x32xf32>
    %181 = vector.shape_cast %180 : vector<10x32xf32> to vector<2x5x4x8xf32>
    %182 = tpu.transpose %181, [0, 2, 1, 3] : vector<2x5x4x8xf32> -> vector<2x4x5x8xf32>
    %183 = vector.shape_cast %182 : vector<2x4x5x8xf32> to vector<8x5x8xf32>
    %184 = vector.extract_strided_slice %179 {offsets = [0, 32], sizes = [10, 32], strides = [1, 1]} : vector<10x64xf32> to vector<10x32xf32>
    %185 = vector.shape_cast %184 : vector<10x32xf32> to vector<2x5x4x8xf32>
    %186 = tpu.transpose %185, [0, 2, 1, 3] : vector<2x5x4x8xf32> -> vector<2x4x5x8xf32>
    %187 = vector.shape_cast %186 : vector<2x4x5x8xf32> to vector<8x5x8xf32>
    %188 = arith.truncf %121 : vector<8x8x8xf32> to vector<8x8x8xbf16>
    %189 = arith.truncf %183 : vector<8x5x8xf32> to vector<8x5x8xbf16>
    %cst_66 = arith.constant dense<0.000000e+00> : vector<8x8x5xf32>
    %190 = tpu.matmul %188, %189, %cst_66 {dimension_numbers = #tpu.dot_dimension_numbers<[2], [2], [1], [1], [0, 0, 0, 1, 1, 1], [0], [0]>} : vector<8x8x8xbf16>, vector<8x5x8xbf16>, vector<8x8x5xf32> -> vector<8x8x5xf32>
    %191 = vector.shape_cast %190 : vector<8x8x5xf32> to vector<2x4x8x5xf32>
    %192 = vector.shape_cast %8 : vector<2x1x5xf32> to vector<2x1x1x5xf32>
    %193 = vector.broadcast %192 : vector<2x1x1x5xf32> to vector<2x4x8x5xf32>
    %194 = arith.addf %191, %193 : vector<2x4x8x5xf32>
    %195 = vector.shape_cast %194 : vector<2x4x8x5xf32> to vector<8x8x5xf32>
    %cst_67 = arith.constant dense<0xFF800000> : vector<8x8xf32>
    %196 = vector.multi_reduction <maximumf>, %195, %cst_67 [2] : vector<8x8x5xf32> to vector<8x8xf32>
    %197 = vector.shape_cast %196 : vector<8x8xf32> to vector<8x8x1xf32>
    %198 = vector.broadcast %197 : vector<8x8x1xf32> to vector<8x8x5xf32>
    %199 = arith.subf %195, %198 : vector<8x8x5xf32>
    %200 = math.exp %199 : vector<8x8x5xf32>
    %cst_68 = arith.constant dense<0.000000e+00> : vector<8x8xf32>
    %201 = vector.multi_reduction <add>, %200, %cst_68 [2] : vector<8x8x5xf32> to vector<8x8xf32>
    %202 = vector.shape_cast %201 : vector<8x8xf32> to vector<8x8x1xf32>
    %203 = vector.broadcast %202 : vector<8x8x1xf32> to vector<8x8x5xf32>
    %204 = arith.divf %200, %203 : vector<8x8x5xf32>
    %205 = arith.truncf %204 : vector<8x8x5xf32> to vector<8x8x5xbf16>
    %206 = arith.truncf %187 : vector<8x5x8xf32> to vector<8x5x8xbf16>
    %cst_69 = arith.constant dense<0.000000e+00> : vector<8x8x8xf32>
    %207 = tpu.matmul %205, %206, %cst_69 {dimension_numbers = #tpu.dot_dimension_numbers<[2], [1], [1], [2], [0, 0, 0, 1, 1, 2], [0], [0]>} : vector<8x8x5xbf16>, vector<8x5x8xbf16>, vector<8x8x8xf32> -> vector<8x8x8xf32>
    %208 = vector.shape_cast %207 : vector<8x8x8xf32> to vector<2x4x8x8xf32>
    %209 = tpu.transpose %208, [0, 2, 1, 3] : vector<2x4x8x8xf32> -> vector<2x8x4x8xf32>
    %210 = vector.shape_cast %209 : vector<2x8x4x8xf32> to vector<16x32xf32>
    %211 = arith.index_cast %arg1 : i32 to index
    %c0_70 = arith.constant 0 : index
    %c0_71 = arith.constant 0 : index
    %212 = vector.load %arg23[%211, %c0_70, %c0_71] : memref<2x32x32xbf16, #tpu.memory_space<vmem>>, vector<1x32x32xbf16>
    %213 = vector.shape_cast %212 : vector<1x32x32xbf16> to vector<32x32xbf16>
    %214 = arith.truncf %210 : vector<16x32xf32> to vector<16x32xbf16>
    %cst_72 = arith.constant dense<0.000000e+00> : vector<16x32xf32>
    %215 = tpu.matmul %214, %213, %cst_72 {dimension_numbers = #tpu.dot_dimension_numbers<[1], [0], [0], [1], [0, 0, 1, 1], [], []>} : vector<16x32xbf16>, vector<32x32xbf16>, vector<16x32xf32> -> vector<16x32xf32>
    %216 = arith.index_cast %arg1 : i32 to index
    %c0_73 = arith.constant 0 : index
    %c0_74 = arith.constant 0 : index
    %217 = vector.load %arg24[%216, %c0_73, %c0_74] : memref<2x1x32xf32, #tpu.memory_space<vmem>>, vector<1x1x32xf32>
    %218 = vector.shape_cast %217 : vector<1x1x32xf32> to vector<1x32xf32>
    %219 = vector.broadcast %218 : vector<1x32xf32> to vector<16x32xf32>
    %220 = arith.addf %215, %219 : vector<16x32xf32>
    %221 = arith.index_cast %arg1 : i32 to index
    %c0_75 = arith.constant 0 : index
    %c0_76 = arith.constant 0 : index
    %222 = vector.load %arg25[%221, %c0_75, %c0_76] : memref<2x32x32xbf16, #tpu.memory_space<vmem>>, vector<1x32x32xbf16>
    %223 = vector.shape_cast %222 : vector<1x32x32xbf16> to vector<32x32xbf16>
    %224 = arith.truncf %220 : vector<16x32xf32> to vector<16x32xbf16>
    %cst_77 = arith.constant dense<0.000000e+00> : vector<16x32xf32>
    %225 = tpu.matmul %224, %223, %cst_77 {dimension_numbers = #tpu.dot_dimension_numbers<[1], [0], [0], [1], [0, 0, 1, 1], [], []>} : vector<16x32xbf16>, vector<32x32xbf16>, vector<16x32xf32> -> vector<16x32xf32>
    %226 = arith.index_cast %arg1 : i32 to index
    %c0_78 = arith.constant 0 : index
    %c0_79 = arith.constant 0 : index
    %227 = vector.load %arg26[%226, %c0_78, %c0_79] : memref<2x32x32xbf16, #tpu.memory_space<vmem>>, vector<1x32x32xbf16>
    %228 = vector.shape_cast %227 : vector<1x32x32xbf16> to vector<32x32xbf16>
    %229 = arith.truncf %168 : vector<16x32xf32> to vector<16x32xbf16>
    %cst_80 = arith.constant dense<0.000000e+00> : vector<16x32xf32>
    %230 = tpu.matmul %229, %228, %cst_80 {dimension_numbers = #tpu.dot_dimension_numbers<[1], [0], [0], [1], [0, 0, 1, 1], [], []>} : vector<16x32xbf16>, vector<32x32xbf16>, vector<16x32xf32> -> vector<16x32xf32>
    %231 = arith.addf %225, %230 : vector<16x32xf32>
    %232 = arith.index_cast %arg1 : i32 to index
    %c0_81 = arith.constant 0 : index
    %c0_82 = arith.constant 0 : index
    %233 = vector.load %arg27[%232, %c0_81, %c0_82] : memref<2x1x32xf32, #tpu.memory_space<vmem>>, vector<1x1x32xf32>
    %234 = vector.shape_cast %233 : vector<1x1x32xf32> to vector<1x32xf32>
    %235 = vector.broadcast %234 : vector<1x32xf32> to vector<16x32xf32>
    %236 = arith.addf %231, %235 : vector<16x32xf32>
    %cst_83 = arith.constant 0.000000e+00 : f32
    %237 = vector.broadcast %cst_83 : f32 to vector<16x32xf32>
    %238 = arith.maximumf %236, %237 : vector<16x32xf32>
    %239 = vector.shape_cast %238 : vector<16x32xf32> to vector<2x8x32xf32>
    %240 = vector.broadcast %4 : vector<2x8x1xf32> to vector<2x8x32xf32>
    %241 = arith.mulf %239, %240 : vector<2x8x32xf32>
    %242 = arith.addf %241, %72 : vector<2x8x32xf32>
    %243 = arith.index_cast %arg1 : i32 to index
    %c0_84 = arith.constant 0 : index
    %c0_85 = arith.constant 0 : index
    %244 = vector.load %arg28[%243, %c0_84, %c0_85] : memref<2x1x32xf32, #tpu.memory_space<vmem>>, vector<1x1x32xf32>
    %245 = vector.shape_cast %244 : vector<1x1x32xf32> to vector<1x32xf32>
    %246 = arith.index_cast %arg1 : i32 to index
    %c0_86 = arith.constant 0 : index
    %c0_87 = arith.constant 0 : index
    %247 = vector.load %arg29[%246, %c0_86, %c0_87] : memref<2x1x32xf32, #tpu.memory_space<vmem>>, vector<1x1x32xf32>
    %248 = vector.shape_cast %247 : vector<1x1x32xf32> to vector<1x32xf32>
    %cst_88 = arith.constant dense<0.000000e+00> : vector<2x8xf32>
    %249 = vector.multi_reduction <add>, %242, %cst_88 [2] : vector<2x8x32xf32> to vector<2x8xf32>
    %250 = vector.shape_cast %249 : vector<2x8xf32> to vector<2x8x1xf32>
    %cst_89 = arith.constant 3.200000e+01 : f32
    %251 = vector.broadcast %cst_89 : f32 to vector<2x8x1xf32>
    %252 = arith.divf %250, %251 : vector<2x8x1xf32>
    %253 = vector.broadcast %252 : vector<2x8x1xf32> to vector<2x8x32xf32>
    %254 = arith.subf %242, %253 : vector<2x8x32xf32>
    %255 = arith.mulf %254, %254 : vector<2x8x32xf32>
    %cst_90 = arith.constant dense<0.000000e+00> : vector<2x8xf32>
    %256 = vector.multi_reduction <add>, %255, %cst_90 [2] : vector<2x8x32xf32> to vector<2x8xf32>
    %257 = vector.shape_cast %256 : vector<2x8xf32> to vector<2x8x1xf32>
    %cst_91 = arith.constant 3.200000e+01 : f32
    %258 = vector.broadcast %cst_91 : f32 to vector<2x8x1xf32>
    %259 = arith.divf %257, %258 : vector<2x8x1xf32>
    %260 = vector.broadcast %252 : vector<2x8x1xf32> to vector<2x8x32xf32>
    %261 = arith.subf %242, %260 : vector<2x8x32xf32>
    %cst_92 = arith.constant 9.99999974E-6 : f32
    %262 = vector.broadcast %cst_92 : f32 to vector<2x8x1xf32>
    %263 = arith.addf %259, %262 : vector<2x8x1xf32>
    %264 = math.rsqrt %263 : vector<2x8x1xf32>
    %265 = vector.broadcast %264 : vector<2x8x1xf32> to vector<2x8x32xf32>
    %266 = arith.mulf %261, %265 : vector<2x8x32xf32>
    %267 = vector.shape_cast %245 : vector<1x32xf32> to vector<1x1x32xf32>
    %268 = vector.broadcast %267 : vector<1x1x32xf32> to vector<2x8x32xf32>
    %269 = arith.mulf %266, %268 : vector<2x8x32xf32>
    %270 = vector.shape_cast %248 : vector<1x32xf32> to vector<1x1x32xf32>
    %271 = vector.broadcast %270 : vector<1x1x32xf32> to vector<2x8x32xf32>
    %272 = arith.addf %269, %271 : vector<2x8x32xf32>
    %273 = vector.shape_cast %272 : vector<2x8x32xf32> to vector<16x32xf32>
    %274 = arith.index_cast %arg1 : i32 to index
    %c0_93 = arith.constant 0 : index
    %c0_94 = arith.constant 0 : index
    %275 = vector.load %arg30[%274, %c0_93, %c0_94] : memref<2x32x32xbf16, #tpu.memory_space<vmem>>, vector<1x32x32xbf16>
    %276 = vector.shape_cast %275 : vector<1x32x32xbf16> to vector<32x32xbf16>
    %277 = arith.truncf %273 : vector<16x32xf32> to vector<16x32xbf16>
    %cst_95 = arith.constant dense<0.000000e+00> : vector<16x32xf32>
    %278 = tpu.matmul %277, %276, %cst_95 {dimension_numbers = #tpu.dot_dimension_numbers<[1], [0], [0], [1], [0, 0, 1, 1], [], []>} : vector<16x32xbf16>, vector<32x32xbf16>, vector<16x32xf32> -> vector<16x32xf32>
    %279 = arith.index_cast %arg1 : i32 to index
    %c0_96 = arith.constant 0 : index
    %c0_97 = arith.constant 0 : index
    %280 = vector.load %arg31[%279, %c0_96, %c0_97] : memref<2x1x32xf32, #tpu.memory_space<vmem>>, vector<1x1x32xf32>
    %281 = vector.shape_cast %280 : vector<1x1x32xf32> to vector<1x32xf32>
    %282 = vector.broadcast %281 : vector<1x32xf32> to vector<16x32xf32>
    %283 = arith.addf %278, %282 : vector<16x32xf32>
    %cst_98 = arith.constant 0.000000e+00 : f32
    %284 = vector.broadcast %cst_98 : f32 to vector<16x32xf32>
    %285 = arith.maximumf %283, %284 : vector<16x32xf32>
    %286 = arith.index_cast %arg1 : i32 to index
    %c0_99 = arith.constant 0 : index
    %c0_100 = arith.constant 0 : index
    %287 = vector.load %arg32[%286, %c0_99, %c0_100] : memref<2x32x32xbf16, #tpu.memory_space<vmem>>, vector<1x32x32xbf16>
    %288 = vector.shape_cast %287 : vector<1x32x32xbf16> to vector<32x32xbf16>
    %289 = arith.truncf %285 : vector<16x32xf32> to vector<16x32xbf16>
    %cst_101 = arith.constant dense<0.000000e+00> : vector<16x32xf32>
    %290 = tpu.matmul %289, %288, %cst_101 {dimension_numbers = #tpu.dot_dimension_numbers<[1], [0], [0], [1], [0, 0, 1, 1], [], []>} : vector<16x32xbf16>, vector<32x32xbf16>, vector<16x32xf32> -> vector<16x32xf32>
    %291 = arith.index_cast %arg1 : i32 to index
    %c0_102 = arith.constant 0 : index
    %c0_103 = arith.constant 0 : index
    %292 = vector.load %arg33[%291, %c0_102, %c0_103] : memref<2x1x32xf32, #tpu.memory_space<vmem>>, vector<1x1x32xf32>
    %293 = vector.shape_cast %292 : vector<1x1x32xf32> to vector<1x32xf32>
    %294 = vector.broadcast %293 : vector<1x32xf32> to vector<16x32xf32>
    %295 = arith.addf %290, %294 : vector<16x32xf32>
    %296 = vector.shape_cast %295 : vector<16x32xf32> to vector<2x8x32xf32>
    %297 = arith.addf %296, %242 : vector<2x8x32xf32>
    %c0_104 = arith.constant 0 : index
    %c0_105 = arith.constant 0 : index
    %c0_106 = arith.constant 0 : index
    %298 = vector.load %arg34[%c0_104, %c0_105, %c0_106] : memref<2x8x32xf32, #tpu.memory_space<vmem>>, vector<2x8x32xf32>
    tpu.vector_store %arg34[%c0_104, %c0_105, %c0_106], %297 {strides = array<i32>} : memref<2x8x32xf32, #tpu.memory_space<vmem>>, vector<2x8x32xf32>,
    return
  }
  func.func @transform_0(%arg0: i32, %arg1: i32) -> (i32, i32, i32) {
    %c0_i32 = arith.constant 0 : i32
    %c0_i32_0 = arith.constant 0 : i32
    %c0_i32_1 = arith.constant 0 : i32
    return %arg0, %c0_i32, %c0_i32_0 : i32, i32, i32
  }
  func.func @transform_1(%arg0: i32, %arg1: i32) -> (i32, i32, i32) {
    %c0_i32 = arith.constant 0 : i32
    %c0_i32_0 = arith.constant 0 : i32
    %c0_i32_1 = arith.constant 0 : i32
    return %arg0, %c0_i32, %c0_i32_0 : i32, i32, i32
  }
  func.func @transform_2(%arg0: i32, %arg1: i32) -> (i32, i32, i32) {
    %c0_i32 = arith.constant 0 : i32
    %c0_i32_0 = arith.constant 0 : i32
    %c0_i32_1 = arith.constant 0 : i32
    return %arg0, %c0_i32, %c0_i32_0 : i32, i32, i32
  }
  func.func @transform_3(%arg0: i32, %arg1: i32) -> (i32, i32, i32) {
    %c0_i32 = arith.constant 0 : i32
    %c0_i32_0 = arith.constant 0 : i32
    %c0_i32_1 = arith.constant 0 : i32
    return %arg0, %c0_i32, %c0_i32_0 : i32, i32, i32
  }
  func.func @transform_4(%arg0: i32, %arg1: i32) -> (i32, i32, i32) {
    %c0_i32 = arith.constant 0 : i32
    %c0_i32_0 = arith.constant 0 : i32
    %c0_i32_1 = arith.constant 0 : i32
    return %arg0, %c0_i32, %c0_i32_0 : i32, i32, i32
  }
  func.func @transform_5(%arg0: i32, %arg1: i32) -> (i32, i32, i32) {
    %c0_i32 = arith.constant 0 : i32
    %c0_i32_0 = arith.constant 0 : i32
    %c0_i32_1 = arith.constant 0 : i32
    return %arg0, %c0_i32, %c0_i32_0 : i32, i32, i32
  }
  func.func @transform_6(%arg0: i32, %arg1: i32) -> (i32, i32) {
    %c0_i32 = arith.constant 0 : i32
    %c0_i32_0 = arith.constant 0 : i32
    %c0_i32_1 = arith.constant 0 : i32
    return %c0_i32, %c0_i32_0 : i32, i32
  }
  func.func @transform_7(%arg0: i32, %arg1: i32) -> (i32, i32, i32) {
    %c0_i32 = arith.constant 0 : i32
    %c0_i32_0 = arith.constant 0 : i32
    %c0_i32_1 = arith.constant 0 : i32
    %c0_i32_2 = arith.constant 0 : i32
    return %c0_i32, %c0_i32_0, %c0_i32_1 : i32, i32, i32
  }
  func.func @transform_8(%arg0: i32, %arg1: i32) -> (i32, i32, i32) {
    %c0_i32 = arith.constant 0 : i32
    %c0_i32_0 = arith.constant 0 : i32
    %c0_i32_1 = arith.constant 0 : i32
    %c0_i32_2 = arith.constant 0 : i32
    return %c0_i32, %c0_i32_0, %c0_i32_1 : i32, i32, i32
  }
  func.func @transform_9(%arg0: i32, %arg1: i32) -> (i32, i32, i32) {
    %c0_i32 = arith.constant 0 : i32
    %c0_i32_0 = arith.constant 0 : i32
    %c0_i32_1 = arith.constant 0 : i32
    %c0_i32_2 = arith.constant 0 : i32
    return %c0_i32, %c0_i32_0, %c0_i32_1 : i32, i32, i32
  }
  func.func @transform_10(%arg0: i32, %arg1: i32) -> (i32, i32, i32) {
    %c0_i32 = arith.constant 0 : i32
    %c0_i32_0 = arith.constant 0 : i32
    %c0_i32_1 = arith.constant 0 : i32
    %c0_i32_2 = arith.constant 0 : i32
    return %c0_i32, %c0_i32_0, %c0_i32_1 : i32, i32, i32
  }
  func.func @transform_11(%arg0: i32, %arg1: i32) -> (i32, i32, i32) {
    %c0_i32 = arith.constant 0 : i32
    %c0_i32_0 = arith.constant 0 : i32
    %c0_i32_1 = arith.constant 0 : i32
    %c0_i32_2 = arith.constant 0 : i32
    return %c0_i32, %c0_i32_0, %c0_i32_1 : i32, i32, i32
  }
  func.func @transform_12(%arg0: i32, %arg1: i32) -> (i32, i32, i32) {
    %c0_i32 = arith.constant 0 : i32
    %c0_i32_0 = arith.constant 0 : i32
    %c0_i32_1 = arith.constant 0 : i32
    %c0_i32_2 = arith.constant 0 : i32
    return %c0_i32, %c0_i32_0, %c0_i32_1 : i32, i32, i32
  }
  func.func @transform_13(%arg0: i32, %arg1: i32) -> (i32, i32, i32) {
    %c0_i32 = arith.constant 0 : i32
    %c0_i32_0 = arith.constant 0 : i32
    %c0_i32_1 = arith.constant 0 : i32
    %c0_i32_2 = arith.constant 0 : i32
    return %c0_i32, %c0_i32_0, %c0_i32_1 : i32, i32, i32
  }
  func.func @transform_14(%arg0: i32, %arg1: i32) -> (i32, i32, i32) {
    %c0_i32 = arith.constant 0 : i32
    %c0_i32_0 = arith.constant 0 : i32
    %c0_i32_1 = arith.constant 0 : i32
    %c0_i32_2 = arith.constant 0 : i32
    return %c0_i32, %c0_i32_0, %c0_i32_1 : i32, i32, i32
  }
  func.func @transform_15(%arg0: i32, %arg1: i32) -> (i32, i32, i32) {
    %c0_i32 = arith.constant 0 : i32
    %c0_i32_0 = arith.constant 0 : i32
    %c0_i32_1 = arith.constant 0 : i32
    %c0_i32_2 = arith.constant 0 : i32
    return %c0_i32, %c0_i32_0, %c0_i32_1 : i32, i32, i32
  }
  func.func @transform_16(%arg0: i32, %arg1: i32) -> (i32, i32, i32) {
    %c0_i32 = arith.constant 0 : i32
    %c0_i32_0 = arith.constant 0 : i32
    %c0_i32_1 = arith.constant 0 : i32
    %c0_i32_2 = arith.constant 0 : i32
    return %c0_i32, %c0_i32_0, %c0_i32_1 : i32, i32, i32
  }
  func.func @transform_17(%arg0: i32, %arg1: i32) -> (i32, i32, i32) {
    %c0_i32 = arith.constant 0 : i32
    %c0_i32_0 = arith.constant 0 : i32
    %c0_i32_1 = arith.constant 0 : i32
    %c0_i32_2 = arith.constant 0 : i32
    return %c0_i32, %c0_i32_0, %c0_i32_1 : i32, i32, i32
  }
  func.func @transform_18(%arg0: i32, %arg1: i32) -> (i32, i32, i32) {
    %c0_i32 = arith.constant 0 : i32
    %c0_i32_0 = arith.constant 0 : i32
    %c0_i32_1 = arith.constant 0 : i32
    %c0_i32_2 = arith.constant 0 : i32
    return %c0_i32, %c0_i32_0, %c0_i32_1 : i32, i32, i32
  }
  func.func @transform_19(%arg0: i32, %arg1: i32) -> (i32, i32, i32) {
    %c0_i32 = arith.constant 0 : i32
    %c0_i32_0 = arith.constant 0 : i32
    %c0_i32_1 = arith.constant 0 : i32
    %c0_i32_2 = arith.constant 0 : i32
    return %c0_i32, %c0_i32_0, %c0_i32_1 : i32, i32, i32
  }
  func.func @transform_20(%arg0: i32, %arg1: i32) -> (i32, i32, i32) {
    %c0_i32 = arith.constant 0 : i32
    %c0_i32_0 = arith.constant 0 : i32
    %c0_i32_1 = arith.constant 0 : i32
    %c0_i32_2 = arith.constant 0 : i32
    return %c0_i32, %c0_i32_0, %c0_i32_1 : i32, i32, i32
  }
  func.func @transform_21(%arg0: i32, %arg1: i32) -> (i32, i32, i32) {
    %c0_i32 = arith.constant 0 : i32
    %c0_i32_0 = arith.constant 0 : i32
    %c0_i32_1 = arith.constant 0 : i32
    %c0_i32_2 = arith.constant 0 : i32
    return %c0_i32, %c0_i32_0, %c0_i32_1 : i32, i32, i32
  }
  func.func @transform_22(%arg0: i32, %arg1: i32) -> (i32, i32, i32) {
    %c0_i32 = arith.constant 0 : i32
    %c0_i32_0 = arith.constant 0 : i32
    %c0_i32_1 = arith.constant 0 : i32
    %c0_i32_2 = arith.constant 0 : i32
    return %c0_i32, %c0_i32_0, %c0_i32_1 : i32, i32, i32
  }
  func.func @transform_23(%arg0: i32, %arg1: i32) -> (i32, i32, i32) {
    %c0_i32 = arith.constant 0 : i32
    %c0_i32_0 = arith.constant 0 : i32
    %c0_i32_1 = arith.constant 0 : i32
    %c0_i32_2 = arith.constant 0 : i32
    return %c0_i32, %c0_i32_0, %c0_i32_1 : i32, i32, i32
  }
  func.func @transform_24(%arg0: i32, %arg1: i32) -> (i32, i32, i32) {
    %c0_i32 = arith.constant 0 : i32
    %c0_i32_0 = arith.constant 0 : i32
    %c0_i32_1 = arith.constant 0 : i32
    %c0_i32_2 = arith.constant 0 : i32
    return %c0_i32, %c0_i32_0, %c0_i32_1 : i32, i32, i32
  }
  func.func @transform_25(%arg0: i32, %arg1: i32) -> (i32, i32, i32) {
    %c0_i32 = arith.constant 0 : i32
    %c0_i32_0 = arith.constant 0 : i32
    %c0_i32_1 = arith.constant 0 : i32
    %c0_i32_2 = arith.constant 0 : i32
    return %c0_i32, %c0_i32_0, %c0_i32_1 : i32, i32, i32
  }
  func.func @transform_26(%arg0: i32, %arg1: i32) -> (i32, i32, i32) {
    %c0_i32 = arith.constant 0 : i32
    %c0_i32_0 = arith.constant 0 : i32
    %c0_i32_1 = arith.constant 0 : i32
    %c0_i32_2 = arith.constant 0 : i32
    return %c0_i32, %c0_i32_0, %c0_i32_1 : i32, i32, i32
  }
  func.func @transform_27(%arg0: i32, %arg1: i32) -> (i32, i32, i32) {
    %c0_i32 = arith.constant 0 : i32
    %c0_i32_0 = arith.constant 0 : i32
    %c0_i32_1 = arith.constant 0 : i32
    %c0_i32_2 = arith.constant 0 : i32
    return %c0_i32, %c0_i32_0, %c0_i32_1 : i32, i32, i32
  }
  func.func @transform_28(%arg0: i32, %arg1: i32) -> (i32, i32, i32) {
    %c0_i32 = arith.constant 0 : i32
    %c0_i32_0 = arith.constant 0 : i32
    %c0_i32_1 = arith.constant 0 : i32
    %c0_i32_2 = arith.constant 0 : i32
    return %c0_i32, %c0_i32_0, %c0_i32_1 : i32, i32, i32
  }
  func.func @transform_29(%arg0: i32, %arg1: i32) -> (i32, i32, i32) {
    %c0_i32 = arith.constant 0 : i32
    %c0_i32_0 = arith.constant 0 : i32
    %c0_i32_1 = arith.constant 0 : i32
    %c0_i32_2 = arith.constant 0 : i32
    return %c0_i32, %c0_i32_0, %c0_i32_1 : i32, i32, i32
  }
  func.func @transform_30(%arg0: i32, %arg1: i32) -> (i32, i32, i32) {
    %c0_i32 = arith.constant 0 : i32
    %c0_i32_0 = arith.constant 0 : i32
    %c0_i32_1 = arith.constant 0 : i32
    %c0_i32_2 = arith.constant 0 : i32
    return %c0_i32, %c0_i32_0, %c0_i32_1 : i32, i32, i32
  }
  func.func @transform_31(%arg0: i32, %arg1: i32) -> (i32, i32, i32) {
    %c0_i32 = arith.constant 0 : i32
    %c0_i32_0 = arith.constant 0 : i32
    %c0_i32_1 = arith.constant 0 : i32
    %c0_i32_2 = arith.constant 0 : i32
    return %c0_i32, %c0_i32_0, %c0_i32_1 : i32, i32, i32
  }
  func.func @transform_32(%arg0: i32, %arg1: i32) -> (i32, i32, i32) {
    %c0_i32 = arith.constant 0 : i32
    %c0_i32_0 = arith.constant 0 : i32
    %c0_i32_1 = arith.constant 0 : i32
    return %arg0, %c0_i32, %c0_i32_0 : i32, i32, i32
  }
}

</mosaic_0001>

<bundles_post_ra>
// kernel: tpu_custom_call.1
= control target key start
LH: loop header
LB: loop body
LE: loop exit
PB: predicated region body
PF: predicated region fallthrough
CT: control target
= control target key end

     0   :  { %s10507_s6 = smov 1   ;;  %s10508_s10 = smov 2   ;;  %s12536_s0 = inlined_call_operand.smem [shape: u32[33], index: -1, kind: input, shape index: {}] }
   0x1   :  { %s10588_s5 = sld [smem:[%s12536_s0]]   ;;  %s10509_s14 = smov 3  }
   0x2   :  { %s10593_s9 = sld [smem:[%s12536_s0 + %s10507_s6]]   ;;  %s10510_s18 = smov 4  }
   0x3   :  { %s10598_s13 = sld [smem:[%s12536_s0 + %s10508_s10]]   ;;  %s10511_s22 = smov 5  }
   0x4   :  { %s10603_s17 = sld [smem:[%s12536_s0 + %s10509_s14]]   ;;  %s10512_s26 = smov 6  }
   0x5   :  { %s10608_s21 = sld [smem:[%s12536_s0 + %s10510_s18]]   ;;  %s10513_s30 = smov 7  }
   0x6   :  { %s10613_s25 = sld [smem:[%s12536_s0 + %s10511_s22]]   ;;  %s10514_s4 = smov 8  }
   0x7   :  { %12566 = sst [smem:[#allocation43_spill]] %s10588_s5  ;;  %s10515_s10 = smov 9  }
   0x8   :  { %12567 = sst [smem:[#allocation44_spill]] %s10593_s9  ;;  %s10516_s15 = smov 10  }
   0x9   :  { %12568 = sst [smem:[#allocation45_spill]] %s10598_s13  ;;  %s10517_s20 = smov 11  }
   0xa   :  { %12569 = sst [smem:[#allocation46_spill]] %s10603_s17  ;;  %s10519_s1 = smov 13  }
   0xb   :  { %12570 = sst [smem:[#allocation47_spill]] %s10608_s21  ;;  %s10520_s7 = smov 14  }
   0xc   :  { %s10618_s29 = sld [smem:[%s12536_s0 + %s10512_s26]]   ;;  %s10518_s26 = smov 12  }
   0xd   :  { %s10623_s3 = sld [smem:[%s12536_s0 + %s10513_s30]]   ;;  %s10522_s22 = smov 16  }
   0xe   :  { %s10628_s8 = sld [smem:[%s12536_s0 + %s10514_s4]]   ;;  %s10523_s28 = smov 17  }
   0xf   :  { %s10633_s14 = sld [smem:[%s12536_s0 + %s10515_s10]]  }
  0x10   :  { %s10638_s19 = sld [smem:[%s12536_s0 + %s10516_s15]]   ;;  %s10521_s15 = smov 15  }
  0x11   :  { %s10643_s24 = sld [smem:[%s12536_s0 + %s10517_s20]]  }
  0x12   :  { %s10648_s30 = sld [smem:[%s12536_s0 + %s10518_s26]]  }
  0x13   :  { %12571 = sst [smem:[#allocation48_spill]] %s10623_s3 }
  0x14   :  { %12572 = sst [smem:[#allocation49_spill]] %s10628_s8 }
  0x15   :  { %12573 = sst [smem:[#allocation50_spill]] %s10633_s14 }
  0x16   :  { %12574 = sst [smem:[#allocation51_spill]] %s10638_s19 }
  0x17   :  { %s10653_s6 = sld [smem:[%s12536_s0 + %s10519_s1]]  }
  0x18   :  { %s10658_s12 = sld [smem:[%s12536_s0 + %s10520_s7]]   ;;  %s10524_s7 = smov 18  }
  0x19   :  { %s10663_s20 = sld [smem:[%s12536_s0 + %s10521_s15]]   ;;  %s10525_s15 = smov 19  }
  0x1a   :  { %s10668_s27 = sld [smem:[%s12536_s0 + %s10522_s22]]   ;;  %s10526_s22 = smov 20  }
  0x1b   :  { %s10673_s4 = sld [smem:[%s12536_s0 + %s10523_s28]]   ;;  %s10527_s28 = smov 21  }
  0x1c   :  { %s10678_s21 = sld [smem:[%s12536_s0 + %s10524_s7]]   ;;  %s10528_s7 = smov 22  }
  0x1d   :  { %12575 = sst [smem:[#allocation52_spill]] %s10653_s6 }
  0x1e   :  { %s10683_s6 = sld [smem:[%s12536_s0 + %s10525_s15]]   ;;  %s10529_s15 = smov 23  }
  0x1f   :  { %12576 = sst [smem:[#allocation53_spill]] %s10663_s20 }
  0x20   :  { %12577 = sst [smem:[#allocation54_spill]] %s10668_s27 }
  0x21   :  { %12578 = sst [smem:[#allocation55_spill]] %s10673_s4 }
  0x22   :  { %s10688_s27 = sld [smem:[%s12536_s0 + %s10526_s22]]   ;;  %s10530_s22 = smov 24  }
  0x23   :  { %s10693_s17 = sld [smem:[%s12536_s0 + %s10527_s28]]   ;;  %s10531_s28 = smov 25  }
  0x24   :  { %12579 = sst [smem:[#allocation56_spill]] %s10683_s6 }
  0x25   :  { %s10698_s20 = sld [smem:[%s12536_s0 + %s10528_s7]]   ;;  %s10532_s7 = smov 26  }
  0x26   :  { %s10703_s9 = sld [smem:[%s12536_s0 + %s10529_s15]]   ;;  %s10533_s15 = smov 27  }
  0x27   :  { %s10708_s14 = sld [smem:[%s12536_s0 + %s10530_s22]]   ;;  %s10534_s22 = smov 28  }
  0x28   :  { %12580 = sst [smem:[#allocation57_spill]] %s10688_s27 }
  0x29   :  { %s10713_s3 = sld [smem:[%s12536_s0 + %s10531_s28]]   ;;  %s10535_s28 = smov 29  }
  0x2a   :  { %s10723_s27 = sld [smem:[%s12536_s0 + %s10533_s15]]   ;;  %s10537_s15 = smov 31  }
  0x2b   :  { %12581 = sst [smem:[#allocation58_spill]] %s10698_s20 }
  0x2c   :  { %s10718_s20 = sld [smem:[%s12536_s0 + %s10532_s7]]   ;;  %s10536_s7 = smov 30  }
  0x2d   :  { %12582 = sst [smem:[#allocation59_spill]] %s10708_s14 }
  0x2e   :  { %s10728_s14 = sld [smem:[%s12536_s0 + %s10534_s22]]   ;;  %s10538_s22 = smov 32  }
  0x2f   :  { %12583 = sst [smem:[#allocation60_spill]] %s10713_s3 }
  0x30   :  { %12585 = sst [smem:[#allocation62_spill]] %s10723_s27 }
  0x31   :  { %s10733_s3 = sld [smem:[%s12536_s0 + %s10535_s28]]  }
  0x32   :  { %12584 = sst [smem:[#allocation61_spill]] %s10718_s20 }
  0x33   :  { %s10738_s20 = sld [smem:[%s12536_s0 + %s10536_s7]]  }
  0x34   :  { %12586 = sst [smem:[#allocation63_spill]] %s10728_s14 }
  0x35   :  { %s10743_s27 = sld [smem:[%s12536_s0 + %s10537_s15]]  }
  0x36   :  { %s10748_s14 = sld [smem:[%s12536_s0 + %s10538_s22]]  }
  0x3c   :  { %12587 = sst [smem:[#allocation64_spill]] %s10748_s14 }
  0x3d   :  { %70 = vsyncpa [#allocation3], 0 }
  0x3e   :  { %71 = vsyncpa [#allocation6], 0 }
  0x3f   :  { %72 = vsyncpa [#allocation9], 0 }
  0x40   :  { %73 = vsyncpa [#allocation12], 0 }
  0x41   :  { %74 = vsyncpa [#allocation15], 0 }
  0x42   :  { %75 = vsyncpa [#allocation18], 0 }
  0x43   :  { %76 = vsyncpa [#allocation21], 0 }
  0x44   :  { %77 = vsyncpa [#allocation24], 0 }
  0x45   :  { %78 = vsyncpa [#allocation27], 0 }
  0x46   :  { %79 = vsyncpa [#allocation30], 0 }
  0x47   :  { %80 = vsyncpa [#allocation4], 0  ;;  %s10750_s28 = smov 0   ;;  %s10752_s1 = smov 0  }
  0x48   :  { %s10754_s2 = smov 0  }
  0x49 LB: > { %s12588_s8 = sld [smem:[#allocation49_spill]]  ;;  %s12589_s6 = sld [smem:[#allocation56_spill]]  ;;  %s10505_s2 = sphi %s10754_s2, %s86_s2   ;;  %s10501_s1 = sphi %s10752_s1, %s12626_s1   ;;  %s10497_s28 = sphi %s10750_s28, %s12625_s28  }
  0x4a   : > { %s12590_s5 = sld [smem:[#allocation43_spill]]  ;;  %s12591_s4 = sld [smem:[#allocation55_spill]] }
  0x4b   : > { %s12592_s19 = sld [smem:[#allocation51_spill]]  ;;  %s12593_s13 = sld [smem:[#allocation45_spill]] }
  0x4c   : > { %s12543_s0 = sadd.s32 4294967295, %s10505_s2   ;;  %p8754_p0 = scmp.ge.s32.totalorder %s10505_s2, 1 }
  0x4d   : > { %p831_p1 = scmp.lt.s32.totalorder %s10505_s2, 3  ;;  %p10770_p2 = scmp.eq.s32.totalorder %s12543_s0, 0 }
  0x4e   : > { %s10539_s11 = smov [#allocation5]   ;;  %s10540_s16 = smov [#allocation8]  }
  0x4f   : > { %s12594_s7 = scalar_select %p10770_p2, 1, 0 }
  0x50   : > { %p10774_p3 = pnand %p8754_p0, %p831_p1  ;;  %s871_s15 = sshll.u32 %s10539_s11, 4  ;;  %s10778_s15 = int_to_ptr.vmem [resolvable:$true] %s871_s15 }
  0x51   : > { %s919_s18 = sshll.u32 %s10540_s16, 4  ;;  %s10541_s23 = smov [#allocation11]   ;;  %s10782_s18 = int_to_ptr.vmem [resolvable:$true] %s919_s18 }
  0x52   : > { %s12595_s10 = scalar_select %p10774_p3, 1, 0 }
  0x53   : > { %p9542_p4 = pneg %p10774_p3  ;;  %s10790_s26 = sshll.u32 %s10541_s23, 4  ;;  %s949_s26 = int_to_ptr.vmem [resolvable:$true] %s10790_s26 }
  0x54   : > { %s9909_s0 = scalar_lea.hbm %s12593_s13, 256 }
  0x55   : > { %p10786_p5 = pnand %p10770_p2, %p9542_p4  ;;  %p9910_p6 = scmp.ne.s32.totalorder %s12593_s13, %s9909_s0 }
  0x56   : > { %p9916_p10 = scmp.lt.u32.totalorder %s9909_s0, %s12593_s13 }
  0x57   : > { %p10796_p7 = pneg %p10786_p5 }
  0x59   : > { %p9912_p8 = pnand %p10796_p7, %p9910_p6 }
  0x5b   : > { %p9913_p9 = pneg %p9912_p8 }
  0x5d   : > { %p9918_p11 = pnand %p9916_p10, %p9913_p9 }
  0x5f   : > { %9921 = shalt.err (!%p9918_p11)
}
  0x60   : > { %s9922_s16 = scalar_lea.vmem %s10778_s15, 256  ;;  %p9930_p1 = scmp.lt.s32.totalorder %s10778_s15, %s10778_s15 }
  0x61   : > { %p9923_p12 = scmp.ne.s32.totalorder %s10778_s15, %s9922_s16  ;;  %p9931_p4 = scmp.lt.s32.totalorder %s9922_s16, %s9922_s16 }
  0x63   : > { %p9925_p13 = pnand %p9923_p12, %p10796_p7  ;;  %p9932_p2 = por %p9931_p4, %p9930_p1 }
  0x65   : > { %p9926_p0 = pneg %p9925_p13 }
  0x67   : > { %p9933_p3 = pnand %p9932_p2, %p9926_p0 }
  0x69   : > { %9936 = shalt.err (!%p9933_p3)
}
  0x6a   : > { %s12548_s23 = smov 128   ;;  %s12549_s0 = smov 8  }
  0x6b   : > { %9548 = dma.hbm_to_vmem [thread:$0]  (!%p10786_p5), %s12593_s13, 256, %s10778_s15, [#allocation6], %s12548_s23, %s12548_s23, %s12549_s0  }
  0x6c   : > { %s9937_s14 = scalar_lea.hbm %s10618_s29, 128 }
  0x6d   : > { %p9938_p6 = scmp.ne.s32.totalorder %s10618_s29, %s9937_s14  ;;  %p9944_p3 = scmp.lt.u32.totalorder %s9937_s14, %s10618_s29 }
  0x6f   : > { %p9940_p8 = pnand %p9938_p6, %p10796_p7 }
  0x71   : > { %p9941_p2 = pneg %p9940_p8 }
  0x73   : > { %p9946_p9 = pnand %p9944_p3, %p9941_p2 }
  0x75   : > { %9949 = shalt.err (!%p9946_p9)
}
  0x76   : > { %s9950_s16 = scalar_lea.vmem %s10782_s18, 128  ;;  %p9958_p13 = scmp.lt.s32.totalorder %s10782_s18, %s10782_s18 }
  0x77   : > { %p9951_p10 = scmp.ne.s32.totalorder %s10782_s18, %s9950_s16  ;;  %p9959_p0 = scmp.lt.s32.totalorder %s9950_s16, %s9950_s16 }
  0x79   : > { %p9953_p11 = pnand %p9951_p10, %p10796_p7  ;;  %p9960_p1 = por %p9959_p0, %p9958_p13 }
  0x7b   : > { %p9954_p12 = pneg %p9953_p11 }
  0x7d   : > { %p9961_p4 = pnand %p9960_p1, %p9954_p12 }
  0x7f   : > { %9964 = shalt.err (!%p9961_p4)
}
  0x80   : > { %9554 = dma.hbm_to_vmem [thread:$0]  (!%p10786_p5), %s10618_s29, 128, %s10782_s18, [#allocation9]  }
  0x81   : > { %s10544_s14 = smov [#allocation14]   ;;  %s9965_s23 = scalar_lea.hbm %s12592_s19, 32 }
  0x82   : > { %s974_s15 = sshll.u32 %s10544_s14, 4  ;;  %p9966_p6 = scmp.ne.s32.totalorder %s12592_s19, %s9965_s23  ;;  %s975_s15 = int_to_ptr.vmem [resolvable:$true] %s974_s15 }
  0x83   : > { %p9972_p3 = scmp.lt.u32.totalorder %s9965_s23, %s12592_s19 }
  0x84   : > { %p9968_p8 = pnand %p9966_p6, %p10796_p7 }
  0x86   : > { %p9969_p2 = pneg %p9968_p8 }
  0x88   : > { %p9974_p9 = pnand %p9972_p3, %p9969_p2 }
  0x8a   : > { %9977 = shalt.err (!%p9974_p9)
}
  0x8b   : > { %s9978_s16 = scalar_lea.vmem %s949_s26, 32  ;;  %p9986_p13 = scmp.lt.s32.totalorder %s949_s26, %s949_s26 }
  0x8c   : > { %p9979_p10 = scmp.ne.s32.totalorder %s949_s26, %s9978_s16  ;;  %p9987_p0 = scmp.lt.s32.totalorder %s9978_s16, %s9978_s16 }
  0x8e   : > { %p9981_p11 = pnand %p9979_p10, %p10796_p7  ;;  %p9988_p1 = por %p9987_p0, %p9986_p13 }
  0x90   : > { %p9982_p12 = pneg %p9981_p11 }
  0x92   : > { %p9989_p4 = pnand %p9988_p1, %p9982_p12 }
  0x94   : > { %9992 = shalt.err (!%p9989_p4)
}
  0x95   : > { %s12550_s18 = smov 16   ;;  %s12552_s23 = smov 1  }
  0x96   : > { %9560 = dma.hbm_to_vmem [thread:$0]  (!%p10786_p5), %s12592_s19, 32, %s949_s26, [#allocation12], %s12550_s18, %s12550_s18, %s12552_s23  }
  0x97   : > { %s9993_s14 = scalar_lea.hbm %s10648_s30, 32 }
  0x98   : > { %p9994_p6 = scmp.ne.s32.totalorder %s10648_s30, %s9993_s14  ;;  %p10000_p3 = scmp.lt.u32.totalorder %s9993_s14, %s10648_s30 }
  0x9a   : > { %p9996_p8 = pnand %p9994_p6, %p10796_p7 }
  0x9c   : > { %p9997_p2 = pneg %p9996_p8 }
  0x9e   : > { %p10002_p9 = pnand %p10000_p3, %p9997_p2 }
  0xa0   : > { %10005 = shalt.err (!%p10002_p9)
}
  0xa1   : > { %s10006_s16 = scalar_lea.vmem %s975_s15, 32  ;;  %p10014_p13 = scmp.lt.s32.totalorder %s975_s15, %s975_s15 }
  0xa2   : > { %p10007_p10 = scmp.ne.s32.totalorder %s975_s15, %s10006_s16  ;;  %p10015_p0 = scmp.lt.s32.totalorder %s10006_s16, %s10006_s16 }
  0xa4   : > { %p10009_p11 = pnand %p10007_p10, %p10796_p7  ;;  %p10016_p1 = por %p10015_p0, %p10014_p13 }
  0xa6   : > { %p10010_p12 = pneg %p10009_p11 }
  0xa8   : > { %p10017_p4 = pnand %p10016_p1, %p10010_p12 }
  0xaa   : > { %10020 = shalt.err (!%p10017_p4)
}
  0xab   : > { %9566 = dma.hbm_to_vmem [thread:$0]  (!%p10786_p5), %s10648_s30, 32, %s975_s15, [#allocation15], %s12550_s18, %s12550_s18, %s12552_s23  }
  0xac   : > { %s10547_s26 = smov [#allocation17]   ;;  %s10021_s0 = scalar_lea.hbm %s12591_s4, 512 }
  0xad   : > { %s1009_s14 = sshll.u32 %s10547_s26, 4  ;;  %p10022_p6 = scmp.ne.s32.totalorder %s12591_s4, %s10021_s0  ;;  %s1010_s14 = int_to_ptr.vmem [resolvable:$true] %s1009_s14 }
  0xae   : > { %p10028_p3 = scmp.lt.u32.totalorder %s10021_s0, %s12591_s4 }
  0xaf   : > { %p10024_p8 = pnand %p10022_p6, %p10796_p7 }
  0xb1   : > { %p10025_p2 = pneg %p10024_p8 }
  0xb3   : > { %p10030_p9 = pnand %p10028_p3, %p10025_p2 }
  0xb5   : > { %10033 = shalt.err (!%p10030_p9)
}
  0xb6   : > { %s10034_s16 = scalar_lea.vmem %s1010_s14, 512  ;;  %p10042_p13 = scmp.lt.s32.totalorder %s1010_s14, %s1010_s14 }
  0xb7   : > { %p10035_p10 = scmp.ne.s32.totalorder %s1010_s14, %s10034_s16  ;;  %p10043_p0 = scmp.lt.s32.totalorder %s10034_s16, %s10034_s16 }
  0xb9   : > { %p10037_p11 = pnand %p10035_p10, %p10796_p7  ;;  %p10044_p1 = por %p10043_p0, %p10042_p13 }
  0xbb   : > { %p10038_p12 = pneg %p10037_p11 }
  0xbd   : > { %p10045_p4 = pnand %p10044_p1, %p10038_p12 }
  0xbf   : > { %10048 = shalt.err (!%p10045_p4)
}
  0xc0   : > { %s12557_s15 = smov 64   ;;  %s12559_s0 = smov 4  }
  0xc1   : > { %9572 = dma.hbm_to_vmem [thread:$0]  (!%p10786_p5), %s12591_s4, 512, %s1010_s14, [#allocation18], %s12557_s15, %s12557_s15, %s12559_s0  }
  0xc2   : > { %s10550_s26 = smov [#allocation20]   ;;  %s10551_s23 = smov [#allocation23]  }
  0xc3   : > { %s1035_s18 = sshll.u32 %s10550_s26, 4  ;;  %s1061_s16 = sshll.u32 %s10551_s23, 4  ;;  %s1036_s18 = int_to_ptr.vmem [resolvable:$true] %s1035_s18  ;;  %s10871_s16 = int_to_ptr.vmem [resolvable:$true] %s1061_s16 }
  0xc4   : > { %s10049_s13 = scalar_lea.hbm %s12589_s6, 512 }
  0xc5   : > { %p10050_p6 = scmp.ne.s32.totalorder %s12589_s6, %s10049_s13  ;;  %p10056_p3 = scmp.lt.u32.totalorder %s10049_s13, %s12589_s6 }
  0xc7   : > { %p10052_p8 = pnand %p10050_p6, %p10796_p7 }
  0xc9   : > { %p10053_p2 = pneg %p10052_p8 }
  0xcb   : > { %p10058_p9 = pnand %p10056_p3, %p10053_p2 }
  0xcd   : > { %10061 = shalt.err (!%p10058_p9)
}
  0xce   : > { %s10062_s19 = scalar_lea.vmem %s1036_s18, 512  ;;  %p10070_p13 = scmp.lt.s32.totalorder %s1036_s18, %s1036_s18 }
  0xcf   : > { %p10063_p10 = scmp.ne.s32.totalorder %s1036_s18, %s10062_s19  ;;  %p10071_p0 = scmp.lt.s32.totalorder %s10062_s19, %s10062_s19 }
  0xd1   : > { %p10065_p11 = pnand %p10063_p10, %p10796_p7  ;;  %p10072_p1 = por %p10071_p0, %p10070_p13 }
  0xd3   : > { %p10066_p12 = pneg %p10065_p11 }
  0xd5   : > { %p10073_p4 = pnand %p10072_p1, %p10066_p12 }
  0xd7   : > { %10076 = shalt.err (!%p10073_p4)
}
  0xd8   : > { %9578 = dma.hbm_to_vmem [thread:$0]  (!%p10786_p5), %s12589_s6, 512, %s1036_s18, [#allocation21], %s12557_s15, %s12557_s15, %s12559_s0  }
  0xd9   : > { %s10077_s13 = scalar_lea.hbm %s10693_s17, 512 }
  0xda   : > { %p10078_p6 = scmp.ne.s32.totalorder %s10693_s17, %s10077_s13  ;;  %p10084_p3 = scmp.lt.u32.totalorder %s10077_s13, %s10693_s17 }
  0xdc   : > { %p10080_p8 = pnand %p10078_p6, %p10796_p7 }
  0xde   : > { %p10081_p2 = pneg %p10080_p8 }
  0xe0   : > { %p10086_p9 = pnand %p10084_p3, %p10081_p2 }
  0xe2   : > { %10089 = shalt.err (!%p10086_p9)
}
  0xe3   : > { %s10090_s19 = scalar_lea.vmem %s10871_s16, 512  ;;  %p10098_p13 = scmp.lt.s32.totalorder %s10871_s16, %s10871_s16 }
  0xe4   : > { %p10091_p10 = scmp.ne.s32.totalorder %s10871_s16, %s10090_s19  ;;  %p10099_p0 = scmp.lt.s32.totalorder %s10090_s19, %s10090_s19 }
  0xe6   : > { %p10093_p11 = pnand %p10091_p10, %p10796_p7  ;;  %p10100_p1 = por %p10099_p0, %p10098_p13 }
  0xe8   : > { %p10094_p12 = pneg %p10093_p11 }
  0xea   : > { %p10101_p4 = pnand %p10100_p1, %p10094_p12 }
  0xec   : > { %10104 = shalt.err (!%p10101_p4)
}
  0xed   : > { %9584 = dma.hbm_to_vmem [thread:$0]  (!%p10786_p5), %s10693_s17, 512, %s10871_s16, [#allocation24], %s12557_s15, %s12557_s15, %s12559_s0  }
  0xee   : > { %s10552_s18 = smov [#allocation26]   ;;  %s10105_s14 = scalar_lea.hbm %s10703_s9, 512 }
  0xef   : > { %s1087_s23 = sshll.u32 %s10552_s18, 4  ;;  %p10106_p6 = scmp.ne.s32.totalorder %s10703_s9, %s10105_s14  ;;  %s1088_s23 = int_to_ptr.vmem [resolvable:$true] %s1087_s23 }
  0xf0   : > { %p10112_p3 = scmp.lt.u32.totalorder %s10105_s14, %s10703_s9 }
  0xf1   : > { %p10108_p8 = pnand %p10106_p6, %p10796_p7 }
  0xf3   : > { %p10109_p2 = pneg %p10108_p8 }
  0xf5   : > { %p10114_p9 = pnand %p10112_p3, %p10109_p2 }
  0xf7   : > { %10117 = shalt.err (!%p10114_p9)
}
  0xf8   : > { %s10118_s26 = scalar_lea.vmem %s1088_s23, 512  ;;  %p10126_p13 = scmp.lt.s32.totalorder %s1088_s23, %s1088_s23 }
  0xf9   : > { %p10119_p10 = scmp.ne.s32.totalorder %s1088_s23, %s10118_s26  ;;  %p10127_p0 = scmp.lt.s32.totalorder %s10118_s26, %s10118_s26 }
  0xfb   : > { %p10121_p11 = pnand %p10119_p10, %p10796_p7  ;;  %p10128_p1 = por %p10127_p0, %p10126_p13 }
  0xfd   : > { %p10122_p12 = pneg %p10121_p11 }
  0xff   : > { %p10129_p4 = pnand %p10128_p1, %p10122_p12 }
 0x101   : > { %10132 = shalt.err (!%p10129_p4)
}
 0x102   : > { %9590 = dma.hbm_to_vmem [thread:$0]  (!%p10786_p5), %s10703_s9, 512, %s1088_s23, [#allocation27], %s12557_s15, %s12557_s15, %s12559_s0  }
 0x103   : > { %s95_s16 = sadd.s32 1, %s10501_s1  ;;  %s10553_s13 = smov [#allocation2]  }
 0x104   : > { %p96_p6 = scmp.ge.s32.totalorder %s95_s16, 2  ;;  %s846_s19 = sshll.u32 %s10553_s13, 4  ;;  %s847_s19 = int_to_ptr.vmem [resolvable:$true] %s846_s19 }
 0x105   : > { %s10554_s18 = smov [#allocation7]   ;;  %s10133_s26 = scalar_lea.hbm %s12590_s5, 256 }
 0x106   : > { %s12628_s16 = smov (%p96_p6, %s95_s16), 0  ;;  %s905_s14 = sshll.u32 %s10554_s18, 4  ;;  %s906_s14 = int_to_ptr.vmem [resolvable:$true] %s905_s14 }
 0x107   : > { %p10134_p8 = scmp.ne.s32.totalorder %s12590_s5, %s10133_s26  ;;  %p10140_p9 = scmp.lt.u32.totalorder %s10133_s26, %s12590_s5 }
 0x109   : > { %p10136_p2 = pnand %p10134_p8, %p10796_p7 }
 0x10b   : > { %p10137_p3 = pneg %p10136_p2 }
 0x10d   : > { %p10142_p10 = pnand %p10140_p9, %p10137_p3 }
 0x10f   : > { %10145 = shalt.err (!%p10142_p10)
}
 0x110   : > { %s10146_s4 = scalar_lea.vmem %s847_s19, 256  ;;  %p10154_p0 = scmp.lt.s32.totalorder %s847_s19, %s847_s19 }
 0x111   : > { %p10147_p11 = scmp.ne.s32.totalorder %s847_s19, %s10146_s4  ;;  %p10155_p1 = scmp.lt.s32.totalorder %s10146_s4, %s10146_s4 }
 0x113   : > { %p10149_p12 = pnand %p10147_p11, %p10796_p7  ;;  %p10156_p4 = por %p10155_p1, %p10154_p0 }
 0x115   : > { %p10150_p13 = pneg %p10149_p12 }
 0x117   : > { %p10157_p6 = pnand %p10156_p4, %p10150_p13 }
 0x119   : > { %10160 = shalt.err (!%p10157_p6)
}
 0x11a   : > { %s12598_s23 = smov 8   ;;  %s12599_s13 = smov 128  }
 0x11b   : > { %9545 = dma.hbm_to_vmem [thread:$0]  (!%p10786_p5), %s12590_s5, 256, %s847_s19, [#allocation3], %s12599_s13, %s12599_s13, %s12598_s23  }
 0x11c   : > { %s10161_s18 = scalar_lea.hbm %s10613_s25, 32 }
 0x11d   : > { %p10162_p8 = scmp.ne.s32.totalorder %s10613_s25, %s10161_s18  ;;  %p10168_p9 = scmp.lt.u32.totalorder %s10161_s18, %s10613_s25 }
 0x11f   : > { %p10164_p2 = pnand %p10162_p8, %p10796_p7 }
 0x121   : > { %p10165_p3 = pneg %p10164_p2 }
 0x123   : > { %p10170_p10 = pnand %p10168_p9, %p10165_p3 }
 0x125   : > { %10173 = shalt.err (!%p10170_p10)
}
 0x126   : > { %s10174_s4 = scalar_lea.vmem %s906_s14, 32  ;;  %p10182_p0 = scmp.lt.s32.totalorder %s906_s14, %s906_s14 }
 0x127   : > { %p10175_p11 = scmp.ne.s32.totalorder %s906_s14, %s10174_s4  ;;  %p10183_p1 = scmp.lt.s32.totalorder %s10174_s4, %s10174_s4 }
 0x129   : > { %p10177_p12 = pnand %p10175_p11, %p10796_p7  ;;  %p10184_p4 = por %p10183_p1, %p10182_p0 }
 0x12b   : > { %p10178_p13 = pneg %p10177_p12 }
 0x12d   : > { %p10185_p6 = pnand %p10184_p4, %p10178_p13 }
 0x12f   : > { %10188 = shalt.err (!%p10185_p6)
}
 0x130   : > { %s12600_s19 = smov 1   ;;  %s12601_s26 = smov 16  }
 0x131   : > { %9551 = dma.hbm_to_vmem [thread:$0]  (!%p10786_p5), %s10613_s25, 32, %s906_s14, [#allocation6], %s12601_s26, %s12601_s26, %s12600_s19  }
 0x132   : > { %s10555_s23 = smov [#allocation10]   ;;  %s10556_s18 = smov [#allocation13]  }
 0x133   : > { %s932_s13 = sshll.u32 %s10555_s23, 4  ;;  %s961_s15 = sshll.u32 %s10556_s18, 4  ;;  %s933_s13 = int_to_ptr.vmem [resolvable:$true] %s932_s13  ;;  %s962_s15 = int_to_ptr.vmem [resolvable:$true] %s961_s15 }
 0x134   : > { %s10189_s4 = scalar_lea.hbm %s12588_s8, 32 }
 0x135   : > { %p10190_p8 = scmp.ne.s32.totalorder %s12588_s8, %s10189_s4  ;;  %p10196_p9 = scmp.lt.u32.totalorder %s10189_s4, %s12588_s8 }
 0x137   : > { %p10192_p2 = pnand %p10190_p8, %p10796_p7 }
 0x139   : > { %p10193_p3 = pneg %p10192_p2 }
 0x13b   : > { %p10198_p10 = pnand %p10196_p9, %p10193_p3 }
 0x13d   : > { %10201 = shalt.err (!%p10198_p10)
}
 0x13e   : > { %s10202_s0 = scalar_lea.vmem %s933_s13, 32  ;;  %p10210_p0 = scmp.lt.s32.totalorder %s933_s13, %s933_s13 }
 0x13f   : > { %p10203_p11 = scmp.ne.s32.totalorder %s933_s13, %s10202_s0  ;;  %p10211_p1 = scmp.lt.s32.totalorder %s10202_s0, %s10202_s0 }
 0x141   : > { %p10205_p12 = pnand %p10203_p11, %p10796_p7  ;;  %p10212_p4 = por %p10211_p1, %p10210_p0 }
 0x143   : > { %p10206_p13 = pneg %p10205_p12 }
 0x145   : > { %p10213_p6 = pnand %p10212_p4, %p10206_p13 }
 0x147   : > { %10216 = shalt.err (!%p10213_p6)
}
 0x148   : > { %9557 = dma.hbm_to_vmem [thread:$0]  (!%p10786_p5), %s12588_s8, 32, %s933_s13, [#allocation9], %s12601_s26, %s12601_s26, %s12600_s19  }
 0x149   : > { %s10217_s14 = scalar_lea.hbm %s10643_s24, 32 }
 0x14a   : > { %p10218_p8 = scmp.ne.s32.totalorder %s10643_s24, %s10217_s14  ;;  %p10224_p9 = scmp.lt.u32.totalorder %s10217_s14, %s10643_s24 }
 0x14c   : > { %p10220_p2 = pnand %p10218_p8, %p10796_p7 }
 0x14e   : > { %p10221_p3 = pneg %p10220_p2 }
 0x150   : > { %p10226_p10 = pnand %p10224_p9, %p10221_p3 }
 0x152   : > { %10229 = shalt.err (!%p10226_p10)
}
 0x153   : > { %s10230_s0 = scalar_lea.vmem %s962_s15, 32  ;;  %p10238_p0 = scmp.lt.s32.totalorder %s962_s15, %s962_s15 }
 0x154   : > { %p10231_p11 = scmp.ne.s32.totalorder %s962_s15, %s10230_s0  ;;  %p10239_p1 = scmp.lt.s32.totalorder %s10230_s0, %s10230_s0 }
 0x156   : > { %p10233_p12 = pnand %p10231_p11, %p10796_p7  ;;  %p10240_p4 = por %p10239_p1, %p10238_p0 }
 0x158   : > { %p10234_p13 = pneg %p10233_p12 }
 0x15a   : > { %p10241_p6 = pnand %p10240_p4, %p10234_p13 }
 0x15c   : > { %10244 = shalt.err (!%p10241_p6)
}
 0x15d   : > { %9563 = dma.hbm_to_vmem [thread:$0]  (!%p10786_p5), %s10643_s24, 32, %s962_s15, [#allocation12], %s12601_s26, %s12601_s26, %s12600_s19  }
 0x15e   : > { %s10557_s23 = smov [#allocation16]   ;;  %s10558_s18 = smov [#allocation19]  }
 0x15f   : > { %s990_s13 = sshll.u32 %s10557_s23, 4  ;;  %s1022_s4 = sshll.u32 %s10558_s18, 4  ;;  %s991_s13 = int_to_ptr.vmem [resolvable:$true] %s990_s13  ;;  %s1023_s4 = int_to_ptr.vmem [resolvable:$true] %s1022_s4 }
 0x160   : > { %s10245_s14 = scalar_lea.hbm %s10658_s12, 32 }
 0x161   : > { %p10246_p8 = scmp.ne.s32.totalorder %s10658_s12, %s10245_s14  ;;  %p10252_p9 = scmp.lt.u32.totalorder %s10245_s14, %s10658_s12 }
 0x163   : > { %p10248_p2 = pnand %p10246_p8, %p10796_p7 }
 0x165   : > { %p10249_p3 = pneg %p10248_p2 }
 0x167   : > { %p10254_p10 = pnand %p10252_p9, %p10249_p3 }
 0x169   : > { %10257 = shalt.err (!%p10254_p10)
}
 0x16a   : > { %s10258_s0 = scalar_lea.vmem %s991_s13, 32  ;;  %p10266_p0 = scmp.lt.s32.totalorder %s991_s13, %s991_s13 }
 0x16b   : > { %p10259_p11 = scmp.ne.s32.totalorder %s991_s13, %s10258_s0  ;;  %p10267_p1 = scmp.lt.s32.totalorder %s10258_s0, %s10258_s0 }
 0x16d   : > { %p10261_p12 = pnand %p10259_p11, %p10796_p7  ;;  %p10268_p4 = por %p10267_p1, %p10266_p0 }
 0x16f   : > { %p10262_p13 = pneg %p10261_p12 }
 0x171   : > { %p10269_p6 = pnand %p10268_p4, %p10262_p13 }
 0x173   : > { %10272 = shalt.err (!%p10269_p6)
}
 0x174   : > { %9569 = dma.hbm_to_vmem [thread:$0]  (!%p10786_p5), %s10658_s12, 32, %s991_s13, [#allocation15], %s12601_s26, %s12601_s26, %s12600_s19  }
 0x175   : > { %s10273_s15 = scalar_lea.hbm %s10678_s21, 32 }
 0x176   : > { %p10274_p8 = scmp.ne.s32.totalorder %s10678_s21, %s10273_s15  ;;  %p10280_p9 = scmp.lt.u32.totalorder %s10273_s15, %s10678_s21 }
 0x178   : > { %p10276_p2 = pnand %p10274_p8, %p10796_p7 }
 0x17a   : > { %p10277_p3 = pneg %p10276_p2 }
 0x17c   : > { %p10282_p10 = pnand %p10280_p9, %p10277_p3 }
 0x17e   : > { %10285 = shalt.err (!%p10282_p10)
}
 0x17f   : > { %s10286_s23 = scalar_lea.vmem %s1023_s4, 32  ;;  %p10294_p0 = scmp.lt.s32.totalorder %s1023_s4, %s1023_s4 }
 0x180   : > { %p10287_p11 = scmp.ne.s32.totalorder %s1023_s4, %s10286_s23  ;;  %p10295_p1 = scmp.lt.s32.totalorder %s10286_s23, %s10286_s23 }
 0x182   : > { %p10289_p12 = pnand %p10287_p11, %p10796_p7  ;;  %p10296_p4 = por %p10295_p1, %p10294_p0 }
 0x184   : > { %p10290_p13 = pneg %p10289_p12 }
 0x186   : > { %p10297_p6 = pnand %p10296_p4, %p10290_p13 }
 0x188   : > { %10300 = shalt.err (!%p10297_p6)
}
 0x189   : > { %s12602_s13 = sld [smem:[#allocation57_spill]]  ;;  %s10559_s18 = smov [#allocation22]  }
 0x18a   : > { %9575 = dma.hbm_to_vmem [thread:$0]  (!%p10786_p5), %s10678_s21, 32, %s1023_s4, [#allocation18], %s12601_s26, %s12601_s26, %s12600_s19  }
 0x18b   : > { %s1048_s14 = sshll.u32 %s10559_s18, 4  ;;  %s10560_s0 = smov [#allocation25]   ;;  %s1049_s14 = int_to_ptr.vmem [resolvable:$true] %s1048_s14 }
 0x18c   : > { %s1074_s15 = sshll.u32 %s10560_s0, 4  ;;  %s1075_s15 = int_to_ptr.vmem [resolvable:$true] %s1074_s15 }
 0x18f   : > { %s10301_s23 = scalar_lea.hbm %s12602_s13, 32 }
 0x190   : > { %p10302_p8 = scmp.ne.s32.totalorder %s12602_s13, %s10301_s23  ;;  %p10308_p9 = scmp.lt.u32.totalorder %s10301_s23, %s12602_s13 }
 0x192   : > { %p10304_p2 = pnand %p10302_p8, %p10796_p7 }
 0x194   : > { %p10305_p3 = pneg %p10304_p2 }
 0x196   : > { %p10310_p10 = pnand %p10308_p9, %p10305_p3 }
 0x198   : > { %10313 = shalt.err (!%p10310_p10)
}
 0x199   : > { %s10314_s5 = scalar_lea.vmem %s1049_s14, 32  ;;  %p10322_p0 = scmp.lt.s32.totalorder %s1049_s14, %s1049_s14 }
 0x19a   : > { %p10315_p11 = scmp.ne.s32.totalorder %s1049_s14, %s10314_s5  ;;  %p10323_p1 = scmp.lt.s32.totalorder %s10314_s5, %s10314_s5 }
 0x19c   : > { %p10317_p12 = pnand %p10315_p11, %p10796_p7  ;;  %p10324_p4 = por %p10323_p1, %p10322_p0 }
 0x19e   : > { %p10318_p13 = pneg %p10317_p12 }
 0x1a0   : > { %p10325_p6 = pnand %p10324_p4, %p10318_p13 }
 0x1a2   : > { %10328 = shalt.err (!%p10325_p6)
}
 0x1a3   : > { %s12603_s4 = sld [smem:[#allocation58_spill]] }
 0x1a4   : > { %9581 = dma.hbm_to_vmem [thread:$0]  (!%p10786_p5), %s12602_s13, 32, %s1049_s14, [#allocation21], %s12601_s26, %s12601_s26, %s12600_s19  }
 0x1a9   : > { %s10329_s18 = scalar_lea.hbm %s12603_s4, 32 }
 0x1aa   : > { %p10330_p8 = scmp.ne.s32.totalorder %s12603_s4, %s10329_s18  ;;  %p10336_p9 = scmp.lt.u32.totalorder %s10329_s18, %s12603_s4 }
 0x1ac   : > { %p10332_p2 = pnand %p10330_p8, %p10796_p7 }
 0x1ae   : > { %p10333_p3 = pneg %p10332_p2 }
 0x1b0   : > { %p10338_p10 = pnand %p10336_p9, %p10333_p3 }
 0x1b2   : > { %10341 = shalt.err (!%p10338_p10)
}
 0x1b3   : > { %s10342_s5 = scalar_lea.vmem %s1075_s15, 32  ;;  %p10350_p0 = scmp.lt.s32.totalorder %s1075_s15, %s1075_s15 }
 0x1b4   : > { %p10343_p11 = scmp.ne.s32.totalorder %s1075_s15, %s10342_s5  ;;  %p10351_p1 = scmp.lt.s32.totalorder %s10342_s5, %s10342_s5 }
 0x1b6   : > { %p10345_p12 = pnand %p10343_p11, %p10796_p7  ;;  %p10352_p4 = por %p10351_p1, %p10350_p0 }
 0x1b8   : > { %p10346_p13 = pneg %p10345_p12 }
 0x1ba   : > { %p10353_p6 = pnand %p10352_p4, %p10346_p13 }
 0x1bc   : > { %10356 = shalt.err (!%p10353_p6)
}
 0x1bd   : > { %s12604_s14 = sld [smem:[#allocation63_spill]]  ;;  %s10561_s0 = smov [#allocation28]  }
 0x1be   : > { %9587 = dma.hbm_to_vmem [thread:$0]  (!%p10786_p5), %s12603_s4, 32, %s1075_s15, [#allocation24], %s12601_s26, %s12601_s26, %s12600_s19  }
 0x1bf   : > { %s1112_s23 = sshll.u32 %s10561_s0, 4  ;;  %s10562_s18 = smov [#allocation29]   ;;  %s1113_s23 = int_to_ptr.vmem [resolvable:$true] %s1112_s23 }
 0x1c0   : > { %s1128_s6 = sshll.u32 %s10562_s18, 4  ;;  %s1129_s6 = int_to_ptr.vmem [resolvable:$true] %s1128_s6 }
 0x1c3   : > { %s10357_s5 = scalar_lea.hbm %s12604_s14, 512 }
 0x1c4   : > { %p10358_p8 = scmp.ne.s32.totalorder %s12604_s14, %s10357_s5  ;;  %p10364_p9 = scmp.lt.u32.totalorder %s10357_s5, %s12604_s14 }
 0x1c6   : > { %p10360_p2 = pnand %p10358_p8, %p10796_p7 }
 0x1c8   : > { %p10361_p3 = pneg %p10360_p2 }
 0x1ca   : > { %p10366_p10 = pnand %p10364_p9, %p10361_p3 }
 0x1cc   : > { %10369 = shalt.err (!%p10366_p10)
}
 0x1cd   : > { %s10370_s8 = scalar_lea.vmem %s1113_s23, 512  ;;  %p10378_p0 = scmp.lt.s32.totalorder %s1113_s23, %s1113_s23 }
 0x1ce   : > { %p10371_p11 = scmp.ne.s32.totalorder %s1113_s23, %s10370_s8  ;;  %p10379_p1 = scmp.lt.s32.totalorder %s10370_s8, %s10370_s8 }
 0x1d0   : > { %p10373_p12 = pnand %p10371_p11, %p10796_p7  ;;  %p10380_p4 = por %p10379_p1, %p10378_p0 }
 0x1d2   : > { %p10374_p13 = pneg %p10373_p12 }
 0x1d4   : > { %p10381_p6 = pnand %p10380_p4, %p10374_p13 }
 0x1d6   : > { %10384 = shalt.err (!%p10381_p6)
}
 0x1d7   : > { %s12605_s19 = smov 4   ;;  %s12606_s26 = smov 64  }
 0x1d8   : > { %9593 = dma.hbm_to_vmem [thread:$0]  (!%p10786_p5), %s12604_s14, 512, %s1113_s23, [#allocation27], %s12606_s26, %s12606_s26, %s12605_s19  }
 0x1d9   : > { %s10385_s15 = scalar_lea.hbm %s10738_s20, 512 }
 0x1da   : > { %p10386_p8 = scmp.ne.s32.totalorder %s10738_s20, %s10385_s15  ;;  %p10392_p9 = scmp.lt.u32.totalorder %s10385_s15, %s10738_s20 }
 0x1dc   : > { %p10388_p2 = pnand %p10386_p8, %p10796_p7 }
 0x1de   : > { %p10389_p3 = pneg %p10388_p2 }
 0x1e0   : > { %p10394_p10 = pnand %p10392_p9, %p10389_p3 }
 0x1e2   : > { %10397 = shalt.err (!%p10394_p10)
}
 0x1e3   : > { %s10398_s8 = scalar_lea.vmem %s1129_s6, 512  ;;  %p10406_p0 = scmp.lt.s32.totalorder %s1129_s6, %s1129_s6 }
 0x1e4   : > { %p10399_p11 = scmp.ne.s32.totalorder %s1129_s6, %s10398_s8  ;;  %p10407_p1 = scmp.lt.s32.totalorder %s10398_s8, %s10398_s8 }
 0x1e6   : > { %p10401_p12 = pnand %p10399_p11, %p10796_p7  ;;  %p10408_p4 = por %p10407_p1, %p10406_p0 }
 0x1e8   : > { %p10402_p13 = pneg %p10401_p12 }
 0x1ea   : > { %p10409_p6 = pnand %p10408_p4, %p10402_p13 }
 0x1ec   : > { %10412 = shalt.err (!%p10409_p6)
}
 0x1ed   : > { %9596 = dma.hbm_to_vmem [thread:$0]  (!%p10786_p5), %s10738_s20, 512, %s1129_s6, [#allocation30], %s12606_s26, %s12606_s26, %s12605_s19  }
 0x1ee   : > { %p12607_p8 = scmp.ne.s32.totalorder %s12595_s10, 0 }
 0x1ef   : > { %p12608_p2 = scmp.ne.s32.totalorder (!%p12607_p8), %s12594_s7, 0 }
 0x1f0   : > { %1147 = sbr.rel (%p12607_p8) target bundleno = 6022 (0x1786), region = 148 }
 0x1f7   : > { %10452 = dma.done.wait (%p12608_p2), [#allocation3], 256  }
 0x1f8   : > { %10454 = vsyncadd (%p12608_p2), [#allocation3], 4294967040 }
 0x1f9   : > { %10456 = dma.done.wait (%p12608_p2), [#allocation6], 288  }
 0x1fa   : > { %10458 = vsyncadd (%p12608_p2), [#allocation6], 4294967008 }
 0x1fb   : > { %10460 = dma.done.wait (%p12608_p2), [#allocation9], 160  }
 0x1fc   : > { %10462 = vsyncadd (%p12608_p2), [#allocation9], 4294967136 }
 0x1fd   : > { %10464 = dma.done.wait (%p12608_p2), [#allocation12], 64  }
 0x1fe   : > { %10466 = vsyncadd (%p12608_p2), [#allocation12], 4294967232 }
 0x1ff   : > { %10468 = dma.done.wait (%p12608_p2), [#allocation15], 64  }
 0x200   : > { %10470 = vsyncadd (%p12608_p2), [#allocation15], 4294967232 }
 0x201   : > { %10472 = dma.done.wait (%p12608_p2), [#allocation18], 544  }
 0x202   : > { %10474 = vsyncadd (%p12608_p2), [#allocation18], 4294966752 }
 0x203   : > { %10476 = dma.done.wait (%p12608_p2), [#allocation21], 544  }
 0x204   : > { %10478 = vsyncadd (%p12608_p2), [#allocation21], 4294966752 }
 0x205   : > { %10480 = dma.done.wait (%p12608_p2), [#allocation24], 544  }
 0x206   : > { %10482 = vsyncadd (%p12608_p2), [#allocation24], 4294966752 }
 0x207   : > { %10484 = dma.done.wait (%p12608_p2), [#allocation27], 1024  }
 0x208   : > { %10486 = vsyncadd (%p12608_p2), [#allocation27], 4294966272 }
 0x209   : > { %10488 = dma.done.wait (%p12608_p2), [#allocation30], 512  }
 0x20a   : > { %10490 = vsyncadd (%p12608_p2), [#allocation30], 4294966784  ;;  %p8795_p5 = scmp.ne.s32.totalorder %s10497_s28, 0 }
 0x20b   : > { %v1329_v0 = vld [vmem:[#allocation2] sm:$0xff] (!%p8795_p5)  ;;  %vm1331_vm0 = vcmask (!%p8795_p5), 261120   ;;  %v1330_v1 = vld [vmem:[#allocation2 + $0x8] sm:$0xff] (!%p8795_p5) }
 0x20c   : > { %1328 = sbr.rel (%p8795_p5) target bundleno = 531 (0x213), region = 224  ;;  %1332 = vst.msk [vmem:[#allocation31] sm:$0xff] (!%p8795_p5), %vm1331_vm0, %v1329_v0  ;;  %1333 = vst.msk [vmem:[#allocation31 + $0x8] sm:$0xff] (!%p8795_p5), %vm1331_vm0, %v1330_v1 }
 0x213 PF: > { %s12609_s6 = sld [smem:[#allocation48_spill]]  ;;  %s11094_s10 = sshll.u32 %s10497_s28, 4  ;;  %v1334_v2 = vld [vmem:[#allocation31] sm:$0xff]  ;;  %v1335_v3 = vld [vmem:[#allocation31 + $0x8] sm:$0xff]  ;;  %v10563_v5 = vmov 0.0   ;;  %vm10564_vm1 = vmmov 0   ;;  %v1447_v26 = vlaneseq }
 0x214   : > { %v1346_v4 = vld [vmem:[#allocation8] sm:$0xff]  ;;  %9090 = vmatprep.subr.bf16.mxu0 %v10563_v5  ;;  %9094 = vmatprep.mubr.msk.bf16.mxu0 %vm10564_vm1, %v10563_v5  ;;  %vm1377_vm2 = vcmask 261120   ;;  %s1357_s22 = scalar_lea.vmem [#allocation10], %s10497_s28  ;;  %s10565_s11 = smov 104   ;;  %v10570_v24 = vmov 1983009808  }
 0x215   : > { %9098 = vmatprep.subr.bf16.mxu1 %v10563_v5  ;;  %9100 = vmatprep.mubr.msk.bf16.mxu1 %vm10564_vm1, %v10563_v5  ;;  %v11104_v7 = vadd.f32 %v1346_v4, %v1334_v2  ;;  %v11106_v8 = vadd.f32 %v1346_v4, %v1335_v3  ;;  %v8798_v11 = vld [vmem:[%s1357_s22] ss:$0 sm:$0xff]  ;;  %s10566_s0 = smov 120   ;;  %s10567_s23 = smov 112   ;;  %v1445_v25 = vunpack.c.l.s4 %v10570_v24  ;;  %v11155_v28 = vshrl.u32 %v1447_v26, 7 }
 0x216   : > { %s10568_s18 = smov 96   ;;  %s10569_s5 = smov 64   ;;  %v10571_v29 = vmov 1934713408   ;;  %vm2322_vm3 = vcmask 64512   ;;  %vm2806_vm4 = vcmask 1043456  }
 0x217   : > { %v1356_v10 = vpack.c.bf16 %v11106_v8, %v11104_v7  ;;  %v1446_v27 = vunpack.c.0.s8 %v1445_v25  ;;  %v1477_v30 = vunpack.c.l.s4 %v10571_v29  ;;  %s12610_s19 = sld [smem:[#allocation50_spill]]  ;;  %s12611_s15 = sld [smem:[#allocation44_spill]]  ;;  %vm3470_vm5 = vcmask 130048  }
 0x218   : > { %s10573_s8 = smov 16   ;;  %vm3473_vm6 = vcmask 195584   ;;  %s3483_s22 = scalar_lea.vmem [#allocation11], %s10497_s28  ;;  %vm5403_vm7 = vcmask 1042432   ;;  %vm5295_vm8 = vcmask 48128   ;;  %vm7333_vm9 = vcmask 1041408  }
 0x219   : > { %s1351_s7 = scalar_lea.vmem %s12609_s6, %s11094_s10  ;;  %v11159_v32 = vsub.s32 %v1446_v27, %v11155_v28  ;;  %v1478_v36 = vunpack.c.0.s8 %v1477_v30  ;;  %s10574_s6 = smov 8   ;;  %vm7225_vm10 = vcmask 39936  }
 0x21a   : > { %v9779_v6 = vld [vmem:[%s1351_s7] sm:$0xff]   ;;  %v9780_v9 = vld [vmem:[%s1351_s7 + $0x8] sm:$0xff]   ;;  %s12564_s7 = smov 24  }
 0x21b   : > { %9091 = vmatpush3.bf16.msra.mxu0 %v9779_v6  ;;  %v11171_v41 = vsub.s32 %v1478_v36, %v11155_v28 }
 0x21c   : > { %9092 = vmatprep.subr.bf16.mxu0 %v10563_v5 }
 0x21d   : > { %s3477_s26 = scalar_lea.vmem %s12610_s19, %s11094_s10  ;;  %s12613_s19 = sld [smem:[#allocation46_spill]] }
 0x21f   : > { %9093 = vmatpush3.bf16.msra.mxu0 %v9780_v9 }
 0x220   : > { %9104 = vmatprep.subr.bf16.mxu0 %v10563_v5 }
 0x222   : > { %9095 = vmatmul.mubr.msk.bf16.vlgmr.msra.gmra.mrb[0].mxu0 %vm1377_vm2, %v1356_v10 }
 0x223   : > { %9106 = vmatprep.mubr.msk.bf16.mxu0 %vm10564_vm1, %v10563_v5 }
 0x2f5   : > { %v1415_v12 = vpop.f32.mrb[0].mxu0 }
 0x2f6   : > { %v1416_v13 = vadd.f32 %v8798_v11, %v1415_v12  ;;  %v9096_v14 = vpop.f32.mrb[1].mxu0 }
 0x2f7   : > { %v1418_v15 = vpop.f32.mrb[2].mxu0 }
 0x2f8   : > { %1436 = vrot.lane.b32.xlu1 %v1416_v13, %s10565_s11  ;;  %1424 = vrot.lane.b32.xlu0 %v1416_v13, %s10566_s0  ;;  %v9097_v16 = vpop.f32.mrb[3].mxu0  ;;  %v11118_v17 = vadd.f32 %v8798_v11, %v1418_v15 }
 0x2fc   : > { %1430 = vrot.lane.b32.xlu0 %v1416_v13, %s10567_s23  ;;  %1426 = vrot.lane.b32.xlu1 %v11118_v17, %s10566_s0 }
 0x300   : > { %1432 = vrot.lane.b32.xlu0 %v11118_v17, %s10567_s23  ;;  %1438 = vrot.lane.b32.xlu1 %v11118_v17, %s10565_s11 }
 0x304   : > { %1714 = vrot.lane.b32.xlu0 %v1416_v13, %s10568_s18 }
 0x36a   : > { %v11128_v18 = vpop.permute.xlu0 %1424  ;;  %v11130_v19 = vpop.permute.xlu1 %1436 }
 0x36b   : > { %1718 = vrot.lane.b32.xlu1 %v11128_v18, %s10568_s18  ;;  %v1458_v33 = vcombine.low %v11128_v18, %v11130_v19  ;;  %v1459_v35 = vcombine.high %v11128_v18, %v11130_v19 }
 0x36d   : > { %v1466_v38 = vrot.slane %v1458_v33, %v11159_v32  ;;  %v1473_v40 = vrot.slane %v1459_v35, %v11159_v32 }
 0x36e   : > { %v11134_v20 = vpop.permute.xlu0 %1430  ;;  %v11140_v21 = vpop.permute.xlu1 %1426 }
 0x36f   : > { %1722 = vrot.lane.b32.xlu0 %v11134_v20, %s10568_s18  ;;  %1726 = vrot.lane.b32.xlu1 %v11130_v19, %s10568_s18  ;;  %v1442_v31 = vcombine.low %v1416_v13, %v11134_v20  ;;  %v1443_v34 = vcombine.high %v1416_v13, %v11134_v20 }
 0x371   : > { %v1450_v37 = vrot.slane %v1442_v31, %v11159_v32  ;;  %v1457_v39 = vrot.slane %v1443_v34, %v11159_v32 }
 0x372   : > { %v11146_v22 = vpop.permute.xlu0 %1432  ;;  %v11148_v23 = vpop.permute.xlu1 %1438 }
 0x373   : > { %1716 = vrot.lane.b32.xlu0 %v11118_v17, %s10568_s18  ;;  %1720 = vrot.lane.b32.xlu1 %v11140_v21, %s10568_s18  ;;  %v1474_v42 = vcombine.low %v1450_v37, %v1466_v38  ;;  %v1475_v43 = vcombine.high %v1450_v37, %v1466_v38  ;;  %v1490_v44 = vcombine.low %v1457_v39, %v1473_v40 }
 0x374   : > { %v1491_v45 = vcombine.high %v1457_v39, %v1473_v40  ;;  %v1510_v46 = vcombine.low %v11118_v17, %v11146_v22  ;;  %v1526_v47 = vcombine.low %v11140_v21, %v11148_v23  ;;  %v1511_v52 = vcombine.high %v11118_v17, %v11146_v22 }
 0x375   : > { %v1482_v50 = vrot.slane %v1474_v42, %v11171_v41  ;;  %v1489_v51 = vrot.slane %v1475_v43, %v11171_v41  ;;  %v1527_v53 = vcombine.high %v11140_v21, %v11148_v23  ;;  %v1498_v54 = vrot.slane %v1490_v44, %v11171_v41 }
 0x376   : > { %v1715_v48 = vpop.permute.xlu0 %1714  ;;  %v1505_v55 = vrot.slane %v1491_v45, %v11171_v41  ;;  %v1518_v56 = vrot.slane %v1510_v46, %v11159_v32  ;;  %v1534_v57 = vrot.slane %v1526_v47, %v11159_v32  ;;  %v11188_v0 = vrot.slane %v1511_v52, %v11159_v32 }
 0x377   : > { %1724 = vrot.lane.b32.xlu0 %v11146_v22, %s10568_s18  ;;  %1728 = vrot.lane.b32.xlu1 %v11148_v23, %s10568_s18  ;;  %v11191_v1 = vrot.slane %v1527_v53, %v11159_v32  ;;  %v1578_v2 = vcombine.low %v1482_v50, %v1489_v51  ;;  %v8802_v12 = vcombine.high %v1482_v50, %v1489_v51 }
 0x378   : > { %v1542_v10 = vcombine.low %v1518_v56, %v1534_v57  ;;  %v1543_v26 = vcombine.high %v1518_v56, %v1534_v57  ;;  %v8803_v40 = vcombine.high %v1498_v54, %v1505_v55 }
 0x379   : > { %v1558_v27 = vcombine.low %v11188_v0, %v11191_v1  ;;  %v1559_v29 = vcombine.high %v11188_v0, %v11191_v1  ;;  %v11202_v30 = vrot.slane %v1578_v2, %v11159_v32  ;;  %v11212_v38 = vrot.slane %v8802_v12, %v11159_v32 }
 0x37a   : > { %v11209_v36 = vrot.slane %v1542_v10, %v11171_v41 }
 0x37b   : > { %2010 = vrot.lane.b32.xlu1 %v1416_v13, %s10569_s5  ;;  %v1594_v13 = vcombine.low %v1498_v54, %v1505_v55 }
 0x37d   : > { %v11215_v39 = vrot.slane %v1594_v13, %v11159_v32 }
 0x3dd   : > { %v1719_v49 = vpop.permute.xlu1 %1718 }
 0x3e1   : > { %v1723_v58 = vpop.permute.xlu0 %1722  ;;  %v1727_v59 = vpop.permute.xlu1 %1726 }
 0x3e2   : > { %v1738_v60 = vcombine.low %v1715_v48, %v1723_v58  ;;  %v1739_v61 = vcombine.high %v1715_v48, %v1723_v58  ;;  %v1754_v62 = vcombine.low %v1719_v49, %v1727_v59  ;;  %v1755_v63 = vcombine.high %v1719_v49, %v1727_v59 }
 0x3e3   : > { %v1557_v59 = vrot.slane %v1543_v26, %v11171_v41 }
 0x3e4   : > { %v1746_v3 = vrot.slane %v1738_v60, %v11159_v32  ;;  %v1753_v4 = vrot.slane %v1739_v61, %v11159_v32  ;;  %v1762_v6 = vrot.slane %v1754_v62, %v11159_v32  ;;  %v1769_v9 = vrot.slane %v1755_v63, %v11159_v32 }
 0x3e5   : > { %v1717_v11 = vpop.permute.xlu0 %1716  ;;  %v1721_v25 = vpop.permute.xlu1 %1720  ;;  %v11227_v61 = vrot.slane %v8803_v40, %v11159_v32 }
 0x3e6   : > { %v1770_v14 = vcombine.low %v1746_v3, %v1762_v6  ;;  %v1771_v15 = vcombine.high %v1746_v3, %v1762_v6  ;;  %v1786_v16 = vcombine.low %v1753_v4, %v1769_v9  ;;  %v1787_v24 = vcombine.high %v1753_v4, %v1769_v9 }
 0x3e7   : > { %v1610_v6 = vcombine.low %v11202_v30, %v11212_v38 }
 0x3e8   : > { %v1778_v31 = vrot.slane %v1770_v14, %v11171_v41  ;;  %v1785_v33 = vrot.slane %v1771_v15, %v11171_v41  ;;  %v1794_v34 = vrot.slane %v1786_v16, %v11171_v41  ;;  %v1801_v35 = vrot.slane %v1787_v24, %v11171_v41 }
 0x3e9   : > { %v1725_v37 = vpop.permute.xlu0 %1724  ;;  %v1729_v44 = vpop.permute.xlu1 %1728  ;;  %v1626_v15 = vcombine.low %v11215_v39, %v11227_v61 }
 0x3ea   : > { %v1806_v42 = vcombine.low %v1717_v11, %v1725_v37  ;;  %v1807_v43 = vcombine.high %v1717_v11, %v1725_v37  ;;  %v1874_v45 = vcombine.low %v1778_v31, %v1785_v33  ;;  %v8806_v46 = vcombine.high %v1778_v31, %v1785_v33 }
 0x3eb   : > { %v1822_v47 = vcombine.low %v1721_v25, %v1729_v44  ;;  %v1823_v48 = vcombine.high %v1721_v25, %v1729_v44  ;;  %v1890_v49 = vcombine.low %v1794_v34, %v1801_v35  ;;  %v8807_v50 = vcombine.high %v1794_v34, %v1801_v35 }
 0x3ec   : > { %v1814_v51 = vrot.slane %v1806_v42, %v11159_v32  ;;  %v1821_v52 = vrot.slane %v1807_v43, %v11159_v32  ;;  %v1881_v53 = vrot.slane %v1874_v45, %v11159_v32  ;;  %v1889_v56 = vrot.slane %v8806_v46, %v11159_v32 }
 0x3ed   : > { %v1830_v57 = vrot.slane %v1822_v47, %v11159_v32  ;;  %v1837_v54 = vrot.slane %v1823_v48, %v11159_v32  ;;  %v1897_v55 = vrot.slane %v1890_v49, %v11159_v32  ;;  %v1905_v58 = vrot.slane %v8807_v50, %v11159_v32 }
 0x3ee   : > { %v1906_v60 = vcombine.low %v1881_v53, %v1889_v56  ;;  %v1907_v62 = vcombine.high %v1881_v53, %v1889_v56  ;;  %v1566_v34 = vrot.slane %v1558_v27, %v11171_v41  ;;  %v1573_v35 = vrot.slane %v1559_v29, %v11171_v41 }
 0x3ef   : > { %v1838_v63 = vcombine.low %v1814_v51, %v1830_v57  ;;  %v1839_v0 = vcombine.high %v1814_v51, %v1830_v57  ;;  %v1854_v1 = vcombine.low %v1821_v52, %v1837_v54  ;;  %v1855_v2 = vcombine.high %v1821_v52, %v1837_v54 }
 0x3f0   : > { %v1914_v3 = vrot.slane %v1906_v60, %v11171_v41  ;;  %v1922_v4 = vcombine.low %v1897_v55, %v1905_v58  ;;  %v1923_v9 = vcombine.high %v1897_v55, %v1905_v58  ;;  %v1921_v16 = vrot.slane %v1907_v62, %v11171_v41 }
 0x3f1   : > { %v1846_v10 = vrot.slane %v1838_v63, %v11171_v41  ;;  %v1853_v11 = vrot.slane %v1839_v0, %v11171_v41  ;;  %v1862_v12 = vrot.slane %v1854_v1, %v11171_v41  ;;  %v1869_v13 = vrot.slane %v1855_v2, %v11171_v41 }
 0x3f2   : > { %v1930_v14 = vrot.slane %v1922_v4, %v11171_v41  ;;  %v1937_v24 = vrot.slane %v1923_v9, %v11171_v41  ;;  %v1618_v48 = vrot.slane %v1610_v6, %v11171_v41  ;;  %v1634_v49 = vrot.slane %v1626_v15, %v11171_v41 }
 0x3f3   : > { %v1942_v25 = vcombine.low %v1846_v10, %v1853_v11  ;;  %v8808_v26 = vcombine.high %v1846_v10, %v1853_v11  ;;  %v1958_v31 = vcombine.low %v1862_v12, %v1869_v13  ;;  %v8809_v33 = vcombine.high %v1862_v12, %v1869_v13 }
 0x3f4   : > { %v1938_v37 = vcombine.low %v1914_v3, %v1930_v14  ;;  %v1939_v40 = vcombine.high %v1914_v3, %v1930_v14  ;;  %v1646_v27 = vcombine.low %v11209_v36, %v1557_v59  ;;  %v1611_v29 = vcombine.high %v11202_v30, %v11212_v38 }
 0x3f5   : > { %v1949_v42 = vrot.slane %v1942_v25, %v11159_v32  ;;  %v1957_v43 = vrot.slane %v8808_v26, %v11159_v32  ;;  %v1965_v44 = vrot.slane %v1958_v31, %v11159_v32  ;;  %v1973_v45 = vrot.slane %v8809_v33, %v11159_v32 }
 0x3f6   : > { %v2314_v46 = vpack.c.bf16 %v1938_v37, %v1938_v37  ;;  %v2315_v47 = vpack.c.bf16 %v1939_v40, %v1939_v40  ;;  %v1940_v50 = vcombine.low %v1921_v16, %v1937_v24  ;;  %v1941_v51 = vcombine.high %v1921_v16, %v1937_v24 }
 0x3f7   : > { %v1974_v56 = vcombine.low %v1949_v42, %v1957_v43  ;;  %v1990_v57 = vcombine.low %v1965_v44, %v1973_v45  ;;  %v8804_v54 = vcombine.high %v11209_v36, %v1557_v59  ;;  %v1662_v55 = vcombine.low %v1566_v34, %v1573_v35 }
 0x3f8   : > { %v2327_v52 = vsel %vm2322_vm3, %v2314_v46, 0  ;;  %v2373_v53 = vsel %vm2322_vm3, %v2315_v47, 0  ;;  %v8805_v58 = vcombine.high %v1566_v34, %v1573_v35  ;;  %v1627_v60 = vcombine.high %v11215_v39, %v11227_v61 }
 0x3f9   : > { %9099 = vmatpush3.bf16.xpose.msra.mxu1 %v2327_v52  ;;  %9105 = vmatpush3.bf16.xpose.msra.mxu0 %v2373_v53  ;;  %v1642_v62 = vcombine.low %v1618_v48, %v1634_v49  ;;  %v1643_v63 = vcombine.high %v1618_v48, %v1634_v49  ;;  %v2316_v30 = vpack.c.bf16 %v1940_v50, %v1940_v50 }
 0x3fa   : > { %9110 = vmatprep.subr.bf16.mxu1 %v10563_v5  ;;  %9116 = vmatprep.subr.bf16.mxu0 %v10563_v5  ;;  %v2317_v38 = vpack.c.bf16 %v1941_v51, %v1941_v51  ;;  %v1982_v0 = vrot.slane %v1974_v56, %v11171_v41  ;;  %v1998_v1 = vrot.slane %v1990_v57, %v11171_v41 }
 0x3fb   : > { %v1625_v36 = vrot.slane %v1611_v29, %v11171_v41  ;;  %v1653_v59 = vrot.slane %v1646_v27, %v11159_v32  ;;  %v1661_v2 = vrot.slane %v8804_v54, %v11159_v32  ;;  %v1669_v39 = vrot.slane %v1662_v55, %v11159_v32 }
 0x3fc   : > { %v2306_v61 = vpack.c.bf16 %v1642_v62, %v1642_v62  ;;  %v2307_v3 = vpack.c.bf16 %v1643_v63, %v1643_v63  ;;  %v1641_v4 = vrot.slane %v1627_v60, %v11171_v41  ;;  %v1677_v6 = vrot.slane %v8805_v58, %v11159_v32  ;;  %v1338_v63 = vld [vmem:[#allocation5] sm:$0xff] }
 0x3fd   : > { %v1975_v9 = vcombine.high %v1949_v42, %v1957_v43  ;;  %v1991_v10 = vcombine.high %v1965_v44, %v1973_v45  ;;  %v2419_v11 = vsel %vm2322_vm3, %v2316_v30, 0  ;;  %v2465_v12 = vsel %vm2322_vm3, %v2317_v38, 0 }
 0x3fe   : > { %v2006_v13 = vcombine.low %v1982_v0, %v1998_v1  ;;  %v2007_v14 = vcombine.high %v1982_v0, %v1998_v1  ;;  %v1678_v15 = vcombine.low %v1653_v59, %v1661_v2  ;;  %v1644_v16 = vcombine.low %v1625_v36, %v1641_v4 }
 0x3ff   : > { %v1645_v24 = vcombine.high %v1625_v36, %v1641_v4  ;;  %v1694_v25 = vcombine.low %v1669_v39, %v1677_v6  ;;  %v1989_v33 = vrot.slane %v1975_v9, %v11171_v41  ;;  %v2005_v34 = vrot.slane %v1991_v10, %v11171_v41 }
 0x400   : > { %9101 = vmatmul.mubr.msk.bf16.vlgmr.msra.gmra.mrb[0].mxu1 %vm2322_vm3, %v2306_v61  ;;  %9107 = vmatmul.mubr.msk.bf16.vlgmr.msra.gmra.mrb[4].mxu0 %vm2322_vm3, %v2307_v3  ;;  %v2318_v26 = vpack.c.bf16 %v2006_v13, %v2006_v13  ;;  %v2319_v31 = vpack.c.bf16 %v2007_v14, %v2007_v14  ;;  %v2308_v35 = vpack.c.bf16 %v1644_v16, %v1644_v16 }
 0x401   : > { %9111 = vmatpush3.bf16.xpose.msra.mxu1 %v2419_v11  ;;  %9117 = vmatpush3.bf16.xpose.msra.mxu0 %v2465_v12  ;;  %v2309_v37 = vpack.c.bf16 %v1645_v24, %v1645_v24  ;;  %v1686_v40 = vrot.slane %v1678_v15, %v11171_v41  ;;  %v1702_v42 = vrot.slane %v1694_v25, %v11171_v41 }
 0x402   : > { %9112 = vmatprep.mubr.msk.bf16.mxu1 %vm10564_vm1, %v10563_v5  ;;  %9118 = vmatprep.mubr.msk.bf16.mxu0 %vm10564_vm1, %v10563_v5  ;;  %v2511_v43 = vsel %vm2322_vm3, %v2318_v26, 0  ;;  %v2557_v44 = vsel %vm2322_vm3, %v2319_v31, 0  ;;  %v2008_v45 = vcombine.low %v1989_v33, %v2005_v34  ;;  %v2009_v46 = vcombine.high %v1989_v33, %v2005_v34  ;;  %v1339_v31 = vld [vmem:[#allocation5 + $0x8] sm:$0xff] }
 0x403   : > { %9122 = vmatprep.subr.bf16.mxu1 %v10563_v5  ;;  %9128 = vmatprep.subr.bf16.mxu0 %v10563_v5  ;;  %v1679_v47 = vcombine.high %v1653_v59, %v1661_v2  ;;  %v1710_v48 = vcombine.low %v1686_v40, %v1702_v42  ;;  %v1711_v49 = vcombine.high %v1686_v40, %v1702_v42 }
 0x404   : > { %v1695_v27 = vcombine.high %v1669_v39, %v1677_v6  ;;  %v2320_v29 = vpack.c.bf16 %v2008_v45, %v2008_v45  ;;  %v2321_v50 = vpack.c.bf16 %v2009_v46, %v2009_v46 }
 0x405   : > { %v2310_v51 = vpack.c.bf16 %v1710_v48, %v1710_v48  ;;  %v2311_v52 = vpack.c.bf16 %v1711_v49, %v1711_v49  ;;  %v1693_v53 = vrot.slane %v1679_v47, %v11171_v41 }
 0x406   : > { %v1709_v56 = vrot.slane %v1695_v27, %v11171_v41  ;;  %v2603_v57 = vsel %vm2322_vm3, %v2320_v29, 0  ;;  %v2649_v54 = vsel %vm2322_vm3, %v2321_v50, 0 }
 0x408   : > { %9113 = vmatmul.mubr.msk.bf16.vlgmr.msra.gmra.mrb[4].mxu1 %vm2322_vm3, %v2308_v35  ;;  %9119 = vmatmul.mubr.msk.bf16.vlgmr.msra.gmra.mrb[8].mxu0 %vm2322_vm3, %v2309_v37  ;;  %v1712_v55 = vcombine.low %v1693_v53, %v1709_v56  ;;  %v1713_v58 = vcombine.high %v1693_v53, %v1709_v56 }
 0x409   : > { %9123 = vmatpush3.bf16.xpose.msra.mxu1 %v2511_v43  ;;  %9129 = vmatpush3.bf16.xpose.msra.mxu0 %v2557_v44 }
 0x40a   : > { %9124 = vmatprep.mubr.msk.bf16.mxu1 %vm10564_vm1, %v10563_v5  ;;  %9130 = vmatprep.mubr.msk.bf16.mxu0 %vm10564_vm1, %v10563_v5  ;;  %v2312_v60 = vpack.c.bf16 %v1712_v55, %v1712_v55  ;;  %v2313_v62 = vpack.c.bf16 %v1713_v58, %v1713_v58 }
 0x40b   : > { %9134 = vmatprep.subr.bf16.mxu1 %v10563_v5  ;;  %9140 = vmatprep.subr.bf16.mxu0 %v10563_v5 }
 0x410   : > { %9125 = vmatmul.mubr.msk.bf16.vlgmr.msra.gmra.mrb[8].mxu1 %vm2322_vm3, %v2310_v51  ;;  %9131 = vmatmul.mubr.msk.bf16.vlgmr.msra.gmra.mrb[12].mxu0 %vm2322_vm3, %v2311_v52 }
 0x411   : > { %9135 = vmatpush3.bf16.xpose.msra.mxu1 %v2603_v57  ;;  %9141 = vmatpush3.bf16.xpose.msra.mxu0 %v2649_v54 }
 0x412   : > { %9136 = vmatprep.mubr.msk.bf16.mxu1 %vm10564_vm1, %v10563_v5  ;;  %9142 = vmatprep.mubr.msk.bf16.mxu0 %vm10564_vm1, %v10563_v5 }
 0x413   : > { %9146 = vmatprep.subr.bf16.mxu1 %v10563_v5  ;;  %9152 = vmatprep.subr.bf16.mxu0 %v10563_v5 }
 0x418   : > { %9137 = vmatmul.mubr.msk.bf16.vlgmr.msra.gmra.mrb[12].mxu1 %vm2322_vm3, %v2312_v60  ;;  %9143 = vmatmul.mubr.msk.bf16.vlgmr.msra.gmra.mrb[16].mxu0 %vm2322_vm3, %v2313_v62  ;;  %v2011_v62 = vpop.permute.xlu1 %2010 }
 0x419   : > { %9148 = vmatprep.mubr.msk.bf16.mxu1 %vm10564_vm1, %v10563_v5  ;;  %9154 = vmatprep.mubr.msk.bf16.mxu0 %vm10564_vm1, %v10563_v5 }
 0x4d3   : > { %v2363_v30 = vpop.f32.mrb[0].mxu1  ;;  %v2409_v38 = vpop.f32.mrb[4].mxu0 }
 0x4d4   : > { %v11309_v0 = vadd.f32 %v2363_v30, %v1338_v63  ;;  %v11311_v1 = vadd.f32 %v2409_v38, %v1338_v63  ;;  %v9102_v36 = vpop.f32.mrb[1].mxu1  ;;  %v9108_v59 = vpop.f32.mrb[5].mxu0 }
 0x4d5   : > { %v2366_v2 = vpop.f32.mrb[2].mxu1  ;;  %v2412_v39 = vpop.f32.mrb[6].mxu0 }
 0x4d6   : > { %v9103_v61 = vpop.f32.mrb[3].mxu1  ;;  %v9109_v3 = vpop.f32.mrb[7].mxu0  ;;  %v2699_v4 = vsel %vm2322_vm3, %v11309_v0, -inf  ;;  %v2702_v6 = vsel %vm2322_vm3, %v11311_v1, -inf }
 0x4d7   : > { %2700 = vmax.xlane.f32.xlu0 %v2699_v4  ;;  %2703 = vmax.xlane.f32.xlu1 %v2702_v6 }
 0x4db   : > { %v2455_v9 = vpop.f32.mrb[4].mxu1  ;;  %v2501_v10 = vpop.f32.mrb[8].mxu0 }
 0x4dc   : > { %v2693_v11 = vadd.f32 %v2455_v9, %v1338_v63  ;;  %v9114_v12 = vpop.f32.mrb[5].mxu1  ;;  %v9120_v13 = vpop.f32.mrb[9].mxu0  ;;  %v2694_v16 = vadd.f32 %v2501_v10, %v1338_v63 }
 0x4dd   : > { %v2458_v14 = vpop.f32.mrb[6].mxu1  ;;  %v2504_v15 = vpop.f32.mrb[10].mxu0 }
 0x4de   : > { %v9115_v24 = vpop.f32.mrb[7].mxu1  ;;  %v9121_v25 = vpop.f32.mrb[11].mxu0  ;;  %v2705_v26 = vsel %vm2322_vm3, %v2693_v11, -inf  ;;  %v2708_v33 = vsel %vm2322_vm3, %v2694_v16, -inf }
 0x4df   : > { %2706 = vmax.xlane.f32.xlu0 %v2705_v26 }
 0x4e3   : > { %v2547_v34 = vpop.f32.mrb[8].mxu1  ;;  %2709 = vmax.xlane.f32.xlu0 %v2708_v33  ;;  %v2593_v35 = vpop.f32.mrb[12].mxu0 }
 0x4e4   : > { %v2695_v37 = vadd.f32 %v2547_v34, %v1339_v31  ;;  %v2696_v40 = vadd.f32 %v2593_v35, %v1339_v31  ;;  %v9126_v42 = vpop.f32.mrb[9].mxu1  ;;  %v9132_v43 = vpop.f32.mrb[13].mxu0 }
 0x4e5   : > { %v2550_v44 = vpop.f32.mrb[10].mxu1  ;;  %v2596_v45 = vpop.f32.mrb[14].mxu0 }
 0x4e6   : > { %v9127_v46 = vpop.f32.mrb[11].mxu1  ;;  %v9133_v47 = vpop.f32.mrb[15].mxu0  ;;  %v2711_v48 = vsel %vm2322_vm3, %v2695_v37, -inf  ;;  %v2714_v49 = vsel %vm2322_vm3, %v2696_v40, -inf }
 0x4e7   : > { %2712 = vmax.xlane.f32.xlu1 %v2711_v48  ;;  %2715 = vmax.xlane.f32.xlu0 %v2714_v49 }
 0x4eb   : > { %v2639_v27 = vpop.f32.mrb[12].mxu1  ;;  %v2685_v29 = vpop.f32.mrb[16].mxu0 }
 0x4ec   : > { %v11321_v50 = vadd.f32 %v2639_v27, %v1339_v31  ;;  %v11323_v51 = vadd.f32 %v2685_v29, %v1339_v31  ;;  %v9138_v52 = vpop.f32.mrb[13].mxu1  ;;  %v9144_v53 = vpop.f32.mrb[17].mxu0 }
 0x4ed   : > { %v2642_v56 = vpop.f32.mrb[14].mxu1  ;;  %v2688_v57 = vpop.f32.mrb[18].mxu0 }
 0x4ee   : > { %v9139_v54 = vpop.f32.mrb[15].mxu1  ;;  %v9145_v55 = vpop.f32.mrb[19].mxu0  ;;  %v2717_v58 = vsel %vm2322_vm3, %v11321_v50, -inf  ;;  %v2720_v60 = vsel %vm2322_vm3, %v11323_v51, -inf }
 0x4ef   : > { %2718 = vmax.xlane.f32.xlu1 %v2717_v58  ;;  %2721 = vmax.xlane.f32.xlu0 %v2720_v60 }
 0x500   : > { %2018 = vrot.lane.b32.xlu1 %v11134_v20, %s10569_s5 }
 0x504   : > { %2022 = vrot.lane.b32.xlu1 %v11130_v19, %s10569_s5 }
 0x505   : > { %2014 = vrot.lane.b32.xlu0 %v11128_v18, %s10569_s5 }
 0x508   : > { %2012 = vrot.lane.b32.xlu1 %v11118_v17, %s10569_s5 }
 0x564   : > { %v2701_v63 = vpop.xlane.xlu0 %2700  ;;  %v2704_v30 = vpop.xlane.xlu1 %2703 }
 0x565   : > { %v2723_v38 = vsub.f32 %v11309_v0, %v2701_v63  ;;  %v2724_v36 = vsub.f32 %v11311_v1, %v2704_v30 }
 0x567   : > { %v2731_v59 = vmul.f32 1.442695, %v2723_v38  ;;  %v2733_v2 = vmul.f32 1.442695, %v2724_v36 }
 0x569   : > { %9805 = vpow2.f32 %v2731_v59 }
 0x56a   : > { %9807 = vpow2.f32 %v2733_v2 }
 0x56c   : > { %v2707_v20 = vpop.xlane.xlu0 %2706 }
 0x56d   : > { %v2725_v39 = vsub.f32 %v2693_v11, %v2707_v20 }
 0x56f   : > { %v2735_v19 = vmul.f32 1.442695, %v2725_v39 }
 0x570   : > { %v2710_v61 = vpop.xlane.xlu0 %2709 }
 0x571   : > { %9809 = vpow2.f32 %v2735_v19  ;;  %v2726_v18 = vsub.f32 %v2694_v16, %v2710_v61 }
 0x573   : > { %v11339_v3 = vpop.eup %9805  ;;  %v2737_v17 = vmul.f32 1.442695, %v2726_v18 }
 0x574   : > { %v11341_v4 = vpop.eup %9807  ;;  %v2713_v6 = vpop.xlane.xlu1 %2712  ;;  %v2747_v0 = vsel %vm2322_vm3, %v11339_v3, 0.0 }
 0x575   : > { %v2716_v9 = vpop.xlane.xlu0 %2715  ;;  %9811 = vpow2.f32 %v2737_v17  ;;  %v2727_v1 = vsub.f32 %v2695_v37, %v2713_v6  ;;  %2748 = vadd.xlane.f32.xlu1 %v2747_v0  ;;  %v2750_v11 = vsel %vm2322_vm3, %v11341_v4, 0.0 }
 0x576   : > { %v2728_v10 = vsub.f32 %v2696_v40, %v2716_v9  ;;  %2751 = vadd.xlane.f32.xlu0 %v2750_v11 }
 0x577   : > { %v2739_v12 = vmul.f32 1.442695, %v2727_v1 }
 0x578   : > { %v2741_v13 = vmul.f32 1.442695, %v2728_v10 }
 0x579   : > { %9813 = vpow2.f32 %v2739_v12 }
 0x57a   : > { %9815 = vpow2.f32 %v2741_v13 }
 0x57b   : > { %v11347_v14 = vpop.eup %9809 }
 0x57c   : > { %v11349_v15 = vpop.xlane.xlu1 %2718  ;;  %v2753_v16 = vsel %vm2322_vm3, %v11347_v14, 0.0  ;;  %v11353_v24 = vpop.xlane.xlu0 %2721 }
 0x57d   : > { %2754 = vadd.xlane.f32.xlu0 %v2753_v16 }
 0x57f   : > { %v11355_v25 = vpop.eup %9811 }
 0x580   : > { %v2019_v26 = vpop.permute.xlu1 %2018  ;;  %v2756_v31 = vsel %vm2322_vm3, %v11355_v25, 0.0  ;;  %v2015_v37 = vpop.permute.xlu0 %2014 }
 0x581   : > { %2757 = vadd.xlane.f32.xlu1 %v2756_v31  ;;  %v2034_v34 = vcombine.low %v2011_v62, %v2019_v26  ;;  %v2035_v35 = vcombine.high %v2011_v62, %v2019_v26  ;;  %v2730_v26 = vsub.f32 %v11323_v51, %v11353_v24 }
 0x583   : > { %v11359_v33 = vpop.eup %9813  ;;  %v2042_v46 = vrot.slane %v2034_v34, %v11159_v32  ;;  %v2049_v47 = vrot.slane %v2035_v35, %v11159_v32  ;;  %v2745_v31 = vmul.f32 1.442695, %v2730_v26 }
 0x584   : > { %v2023_v40 = vpop.permute.xlu1 %2022  ;;  %v2759_v42 = vsel %vm2322_vm3, %v11359_v33, 0.0  ;;  %v11363_v43 = vpop.eup %9815 }
 0x585   : > { %v2050_v44 = vcombine.low %v2015_v37, %v2023_v40  ;;  %v2051_v45 = vcombine.high %v2015_v37, %v2023_v40  ;;  %2760 = vadd.xlane.f32.xlu0 %v2759_v42  ;;  %v2762_v27 = vsel %vm2322_vm3, %v11363_v43, 0.0  ;;  %9817 = vpow2.f32 %v2745_v31 }
 0x587   : > { %v2058_v48 = vrot.slane %v2050_v44, %v11159_v32  ;;  %v2065_v49 = vrot.slane %v2051_v45, %v11159_v32 }
 0x588   : > { %v2013_v51 = vpop.permute.xlu1 %2012 }
 0x589   : > { %v2066_v29 = vcombine.low %v2042_v46, %v2058_v48  ;;  %v2067_v52 = vcombine.high %v2042_v46, %v2058_v48  ;;  %v2082_v53 = vcombine.low %v2049_v47, %v2065_v49  ;;  %v2083_v56 = vcombine.high %v2049_v47, %v2065_v49  ;;  %2763 = vadd.xlane.f32.xlu0 %v2762_v27 }
 0x58b   : > { %v2074_v57 = vrot.slane %v2066_v29, %v11171_v41  ;;  %v2081_v54 = vrot.slane %v2067_v52, %v11171_v41  ;;  %v2090_v55 = vrot.slane %v2082_v53, %v11171_v41  ;;  %v2097_v58 = vrot.slane %v2083_v56, %v11171_v41 }
 0x58d   : > { %v2170_v60 = vcombine.low %v2074_v57, %v2081_v54  ;;  %v8810_v62 = vcombine.high %v2074_v57, %v2081_v54  ;;  %v2186_v63 = vcombine.low %v2090_v55, %v2097_v58  ;;  %v8811_v30 = vcombine.high %v2090_v55, %v2097_v58 }
 0x58f   : > { %v2177_v38 = vrot.slane %v2170_v60, %v11159_v32  ;;  %v2185_v36 = vrot.slane %v8810_v62, %v11159_v32  ;;  %v2193_v59 = vrot.slane %v2186_v63, %v11159_v32  ;;  %v2201_v2 = vrot.slane %v8811_v30, %v11159_v32  ;;  %v11397_v35 = vpop.eup %9817 }
 0x590   : > { %v2768_v37 = vsel %vm2322_vm3, %v11397_v35, 0.0 }
 0x591   : > { %v2202_v20 = vcombine.low %v2177_v38, %v2185_v36  ;;  %v2218_v39 = vcombine.low %v2193_v59, %v2201_v2  ;;  %v2203_v19 = vcombine.high %v2177_v38, %v2185_v36  ;;  %v2219_v61 = vcombine.high %v2193_v59, %v2201_v2 }
 0x592   : > { %2020 = vrot.lane.b32.xlu1 %v11146_v22, %s10569_s5 }
 0x593   : > { %v2210_v18 = vrot.slane %v2202_v20, %v11171_v41  ;;  %v2226_v17 = vrot.slane %v2218_v39, %v11171_v41  ;;  %v2217_v6 = vrot.slane %v2203_v19, %v11171_v41  ;;  %v2233_v9 = vrot.slane %v2219_v61, %v11171_v41 }
 0x595   : > { %v2234_v0 = vcombine.low %v2210_v18, %v2226_v17  ;;  %v2235_v1 = vcombine.high %v2210_v18, %v2226_v17  ;;  %v2236_v10 = vcombine.low %v2217_v6, %v2233_v9  ;;  %v2237_v11 = vcombine.high %v2217_v6, %v2233_v9 }
 0x596   : > { %2024 = vrot.lane.b32.xlu1 %v11148_v23, %s10569_s5  ;;  %v2729_v23 = vsub.f32 %v11321_v50, %v11349_v15 }
 0x597   : > { %v2795_v12 = vpack.c.bf16 %v2234_v0, %v2234_v0  ;;  %v2796_v13 = vpack.c.bf16 %v2235_v1, %v2235_v1  ;;  %v2797_v47 = vpack.c.bf16 %v2236_v10, %v2236_v10  ;;  %v2798_v49 = vpack.c.bf16 %v2237_v11, %v2237_v11 }
 0x598   : > { %v2743_v34 = vmul.f32 1.442695, %v2729_v23 }
 0x599   : > { %v2808_v22 = vsel %vm2806_vm4, %v2795_v12, 0  ;;  %v2854_v16 = vsel %vm2806_vm4, %v2796_v13, 0  ;;  %v2900_v52 = vsel %vm2806_vm4, %v2797_v47, 0  ;;  %v2946_v56 = vsel %vm2806_vm4, %v2798_v49, 0 }
 0x59a   : > { %9147 = vmatpush3.bf16.msra.mxu1 %v2808_v22  ;;  %9153 = vmatpush3.bf16.msra.mxu0 %v2854_v16  ;;  %9819 = vpow2.f32 %v2743_v34 }
 0x59b   : > { %9158 = vmatprep.subr.bf16.mxu1 %v10563_v5  ;;  %9164 = vmatprep.subr.bf16.mxu0 %v10563_v5 }
 0x59f   : > { %2016 = vrot.lane.b32.xlu0 %v11140_v21, %s10569_s5  ;;  %s12612_s5 = sld [smem:[#allocation53_spill]] }
 0x5a4   : > { %v11401_v40 = vpop.eup %9819 }
 0x5a5   : > { %v2765_v21 = vsel %vm2322_vm3, %v11401_v40, 0.0 }
 0x5ba   : > { %2769 = vadd.xlane.f32.xlu1 %v2768_v37 }
 0x5be   : > { %2766 = vadd.xlane.f32.xlu0 %v2765_v21 }
 0x602   : > { %v2749_v24 = vpop.xlane.xlu1 %2748 }
 0x603   : > { %9821 = vrcp.f32 %v2749_v24  ;;  %v2752_v50 = vpop.xlane.xlu0 %2751 }
 0x604   : > { %9823 = vrcp.f32 %v2752_v50 }
 0x60a   : > { %v2755_v15 = vpop.xlane.xlu0 %2754 }
 0x60b   : > { %9825 = vrcp.f32 %v2755_v15 }
 0x60d   : > { %v9822_v42 = vpop.eup %9821 }
 0x60e   : > { %v9824_v44 = vpop.eup %9823  ;;  %v2758_v45 = vpop.xlane.xlu1 %2757  ;;  %v2772_v46 = vmul.f32 %v9822_v42, %v11339_v3 }
 0x60f   : > { %9827 = vrcp.f32 %v2758_v45  ;;  %v2774_v48 = vmul.f32 %v9824_v44, %v11341_v4 }
 0x610   : > { %v2787_v27 = vpack.c.bf16 %v2772_v46, %v2772_v46 }
 0x611   : > { %v2788_v29 = vpack.c.bf16 %v2774_v48, %v2774_v48 }
 0x612   : > { %9149 = vmatmul.mubr.msk.bf16.vlgmr.msra.gmra.mrb[16].mxu1 %vm2322_vm3, %v2787_v27  ;;  %v2761_v53 = vpop.xlane.xlu0 %2760  ;;  %v2021_v57 = vpop.permute.xlu1 %2020 }
 0x613   : > { %9155 = vmatmul.mubr.msk.bf16.vlgmr.msra.gmra.mrb[20].mxu0 %vm2322_vm3, %v2788_v29  ;;  %9159 = vmatpush3.bf16.msra.mxu1 %v2900_v52  ;;  %v2102_v60 = vcombine.low %v2013_v51, %v2021_v57  ;;  %v2103_v62 = vcombine.high %v2013_v51, %v2021_v57  ;;  %9829 = vrcp.f32 %v2761_v53 }
 0x614   : > { %9165 = vmatpush3.bf16.msra.mxu0 %v2946_v56  ;;  %9160 = vmatprep.mubr.msk.bf16.mxu1 %vm10564_vm1, %v10563_v5 }
 0x615   : > { %v9826_v3 = vpop.eup %9825  ;;  %9166 = vmatprep.mubr.msk.bf16.mxu0 %vm10564_vm1, %v10563_v5  ;;  %9170 = vmatprep.subr.bf16.mxu1 %v10563_v5  ;;  %v2117_v20 = vrot.slane %v2103_v62, %v11159_v32 }
 0x616   : > { %v2764_v4 = vpop.xlane.xlu0 %2763  ;;  %v2776_v54 = vmul.f32 %v9826_v3, %v11347_v14  ;;  %9176 = vmatprep.subr.bf16.mxu0 %v10563_v5  ;;  %v2025_v63 = vpop.permute.xlu1 %2024  ;;  %v2110_v14 = vrot.slane %v2102_v60, %v11159_v32 }
 0x617   : > { %9831 = vrcp.f32 %v2764_v4 }
 0x618   : > { %v2789_v55 = vpack.c.bf16 %v2776_v54, %v2776_v54 }
 0x619   : > { %v9828_v58 = vpop.eup %9827 }
 0x61a   : > { %9161 = vmatmul.mubr.msk.bf16.vlgmr.msra.gmra.mrb[20].mxu1 %vm2322_vm3, %v2789_v55  ;;  %v2017_v30 = vpop.permute.xlu0 %2016  ;;  %v2778_v38 = vmul.f32 %v9828_v58, %v11355_v25 }
 0x61b   : > { %v2118_v36 = vcombine.low %v2017_v30, %v2025_v63  ;;  %v2119_v59 = vcombine.high %v2017_v30, %v2025_v63  ;;  %9172 = vmatprep.mubr.msk.bf16.mxu1 %vm10564_vm1, %v10563_v5 }
 0x61c   : > { %v2790_v2 = vpack.c.bf16 %v2778_v38, %v2778_v38 }
 0x61d   : > { %v2126_v39 = vrot.slane %v2118_v36, %v11159_v32  ;;  %v2133_v19 = vrot.slane %v2119_v59, %v11159_v32  ;;  %v9830_v51 = vpop.eup %9829 }
 0x61e   : > { %9167 = vmatmul.mubr.msk.bf16.vlgmr.msra.gmra.mrb[24].mxu0 %vm2322_vm3, %v2790_v2  ;;  %v2780_v29 = vmul.f32 %v9830_v51, %v11359_v33 }
 0x61f   : > { %v2134_v61 = vcombine.low %v2110_v14, %v2126_v39  ;;  %v2135_v18 = vcombine.high %v2110_v14, %v2126_v39  ;;  %v2150_v25 = vcombine.low %v2117_v20, %v2133_v19  ;;  %v2151_v17 = vcombine.high %v2117_v20, %v2133_v19  ;;  %9178 = vmatprep.mubr.msk.bf16.mxu0 %vm10564_vm1, %v10563_v5 }
 0x620   : > { %v2791_v4 = vpack.c.bf16 %v2780_v29, %v2780_v29 }
 0x621   : > { %v2142_v6 = vrot.slane %v2134_v61, %v11171_v41  ;;  %v2149_v9 = vrot.slane %v2135_v18, %v11171_v41  ;;  %v2158_v0 = vrot.slane %v2150_v25, %v11171_v41  ;;  %v2165_v1 = vrot.slane %v2151_v17, %v11171_v41  ;;  %v9832_v44 = vpop.eup %9831 }
 0x622   : > { %v2782_v52 = vmul.f32 %v9832_v44, %v11363_v43 }
 0x623   : > { %v2238_v10 = vcombine.low %v2142_v6, %v2149_v9  ;;  %v8812_v11 = vcombine.high %v2142_v6, %v2149_v9  ;;  %v2254_v12 = vcombine.low %v2158_v0, %v2165_v1  ;;  %v8813_v13 = vcombine.high %v2158_v0, %v2165_v1 }
 0x624   : > { %v2792_v54 = vpack.c.bf16 %v2782_v52, %v2782_v52 }
 0x625   : > { %v2245_v22 = vrot.slane %v2238_v10, %v11159_v32  ;;  %v2253_v16 = vrot.slane %v8812_v11, %v11159_v32  ;;  %v2261_v26 = vrot.slane %v2254_v12, %v11159_v32  ;;  %v2269_v23 = vrot.slane %v8813_v13, %v11159_v32 }
 0x627   : > { %v2270_v31 = vcombine.low %v2245_v22, %v2253_v16  ;;  %v2286_v34 = vcombine.low %v2261_v26, %v2269_v23  ;;  %v2271_v37 = vcombine.high %v2245_v22, %v2253_v16  ;;  %v2287_v21 = vcombine.high %v2261_v26, %v2269_v23 }
 0x629   : > { %v2278_v24 = vrot.slane %v2270_v31, %v11171_v41  ;;  %v2294_v50 = vrot.slane %v2286_v34, %v11171_v41  ;;  %v2285_v15 = vrot.slane %v2271_v37, %v11171_v41  ;;  %v2301_v42 = vrot.slane %v2287_v21, %v11171_v41 }
 0x62b   : > { %v2302_v45 = vcombine.low %v2278_v24, %v2294_v50  ;;  %v2303_v46 = vcombine.high %v2278_v24, %v2294_v50  ;;  %v2304_v47 = vcombine.low %v2285_v15, %v2301_v42  ;;  %v2305_v48 = vcombine.high %v2285_v15, %v2301_v42 }
 0x62d   : > { %v2799_v49 = vpack.c.bf16 %v2302_v45, %v2302_v45  ;;  %v2800_v27 = vpack.c.bf16 %v2303_v46, %v2303_v46  ;;  %v2801_v57 = vpack.c.bf16 %v2304_v47, %v2304_v47  ;;  %v2802_v3 = vpack.c.bf16 %v2305_v48, %v2305_v48 }
 0x62f   : > { %v2992_v53 = vsel %vm2806_vm4, %v2799_v49, 0  ;;  %v3038_v56 = vsel %vm2806_vm4, %v2800_v27, 0  ;;  %v3084_v33 = vsel %vm2806_vm4, %v2801_v57, 0  ;;  %v3130_v43 = vsel %vm2806_vm4, %v2802_v3, 0 }
 0x630   : > { %9171 = vmatpush3.bf16.msra.mxu1 %v2992_v53  ;;  %9177 = vmatpush3.bf16.msra.mxu0 %v3038_v56 }
 0x631   : > { %9182 = vmatprep.subr.bf16.mxu1 %v10563_v5  ;;  %9188 = vmatprep.subr.bf16.mxu0 %v10563_v5 }
 0x633   : > { %9173 = vmatmul.mubr.msk.bf16.vlgmr.msra.gmra.mrb[24].mxu1 %vm2322_vm3, %v2791_v4  ;;  %9179 = vmatmul.mubr.msk.bf16.vlgmr.msra.gmra.mrb[28].mxu0 %vm2322_vm3, %v2792_v54 }
 0x634   : > { %9183 = vmatpush3.bf16.msra.mxu1 %v3084_v33  ;;  %9189 = vmatpush3.bf16.msra.mxu0 %v3130_v43 }
 0x635   : > { %9190 = vmatprep.mubr.msk.bf16.mxu0 %vm10564_vm1, %v10563_v5  ;;  %9184 = vmatprep.mubr.msk.bf16.mxu1 %vm10564_vm1, %v10563_v5 }
 0x636   : > { %9194 = vmatprep.subr.bf16.mxu1 %v10563_v5  ;;  %9202 = vmatprep.subr.bf16.mxu0 %v10563_v5 }
 0x647   : > { %v2770_v55 = vpop.xlane.xlu1 %2769 }
 0x648   : > { %9833 = vrcp.f32 %v2770_v55 }
 0x64b   : > { %v2767_v58 = vpop.xlane.xlu0 %2766 }
 0x64c   : > { %9835 = vrcp.f32 %v2767_v58 }
 0x652   : > { %v9834_v60 = vpop.eup %9833 }
 0x653   : > { %v2786_v62 = vmul.f32 %v9834_v60, %v11397_v35 }
 0x655   : > { %v2794_v63 = vpack.c.bf16 %v2786_v62, %v2786_v62 }
 0x656   : > { %v9836_v30 = vpop.eup %9835 }
 0x657   : > { %v2784_v38 = vmul.f32 %v9836_v30, %v11401_v40  ;;  %9191 = vmatmul.mubr.msk.bf16.vlgmr.msra.gmra.mrb[32].mxu0 %vm2322_vm3, %v2794_v63 }
 0x658   : > { %9206 = vmatprep.mubr.msk.bf16.mxu0 %vm10564_vm1, %v10563_v5 }
 0x659   : > { %v2793_v36 = vpack.c.bf16 %v2784_v38, %v2784_v38 }
 0x65b   : > { %9185 = vmatmul.mubr.msk.bf16.vlgmr.msra.gmra.mrb[28].mxu1 %vm2322_vm3, %v2793_v36 }
 0x65c   : > { %9198 = vmatprep.mubr.msk.bf16.mxu1 %vm10564_vm1, %v10563_v5 }
 0x6e5   : > { %v2844_v59 = vpop.f32.mrb[16].mxu1 }
 0x6e6   : > { %v2890_v2 = vpop.f32.mrb[20].mxu0  ;;  %v9150_v14 = vpop.f32.mrb[17].mxu1 }
 0x6e7   : > { %v9156_v20 = vpop.f32.mrb[21].mxu0  ;;  %v2847_v35 = vpop.f32.mrb[18].mxu1 }
 0x6e8   : > { %v2893_v39 = vpop.f32.mrb[22].mxu0  ;;  %v9151_v19 = vpop.f32.mrb[19].mxu1 }
 0x6e9   : > { %v9157_v61 = vpop.f32.mrb[23].mxu0 }
 0x6ed   : > { %v2936_v40 = vpop.f32.mrb[20].mxu1 }
 0x6ee   : > { %v3172_v18 = vcombine.low %v2844_v59, %v2936_v40  ;;  %v3173_v25 = vcombine.high %v2844_v59, %v2936_v40  ;;  %v9162_v17 = vpop.f32.mrb[21].mxu1 }
 0x6ef   : > { %v2939_v6 = vpop.f32.mrb[22].mxu1 }
 0x6f0   : > { %v9163_v9 = vpop.f32.mrb[23].mxu1  ;;  %v3180_v13 = vrot.slane %v3172_v18, %v11159_v32  ;;  %v3187_v22 = vrot.slane %v3173_v25, %v11159_v32 }
 0x6f1   : > { %v2982_v0 = vpop.f32.mrb[24].mxu0 }
 0x6f2   : > { %v3188_v1 = vcombine.low %v2890_v2, %v2982_v0  ;;  %v3189_v10 = vcombine.high %v2890_v2, %v2982_v0  ;;  %v9168_v11 = vpop.f32.mrb[25].mxu0 }
 0x6f3   : > { %v2985_v12 = vpop.f32.mrb[26].mxu0 }
 0x6f4   : > { %v3196_v16 = vrot.slane %v3188_v1, %v11159_v32  ;;  %v3203_v26 = vrot.slane %v3189_v10, %v11159_v32  ;;  %v9169_v23 = vpop.f32.mrb[27].mxu0 }
 0x6f6   : > { %v3204_v31 = vcombine.low %v3180_v13, %v3196_v16  ;;  %v3205_v34 = vcombine.high %v3180_v13, %v3196_v16  ;;  %v3220_v37 = vcombine.low %v3187_v22, %v3203_v26  ;;  %v3221_v21 = vcombine.high %v3187_v22, %v3203_v26 }
 0x6f8   : > { %v3212_v51 = vrot.slane %v3204_v31, %v11171_v41  ;;  %v3219_v24 = vrot.slane %v3205_v34, %v11171_v41  ;;  %v3228_v50 = vrot.slane %v3220_v37, %v11171_v41  ;;  %v3235_v15 = vrot.slane %v3221_v21, %v11171_v41 }
 0x6fa   : > { %v3308_v42 = vcombine.low %v3212_v51, %v3219_v24  ;;  %v8830_v44 = vcombine.high %v3212_v51, %v3219_v24  ;;  %v3324_v45 = vcombine.low %v3228_v50, %v3235_v15  ;;  %v8831_v46 = vcombine.high %v3228_v50, %v3235_v15  ;;  %v9781_v50 = vld [vmem:[%s3477_s26] sm:$0xff]  }
 0x6fb   : > { %9195 = vmatpush3.bf16.msra.mxu1 %v9781_v50 }
 0x6fc   : > { %v3315_v47 = vrot.slane %v3308_v42, %v11159_v32  ;;  %v3323_v48 = vrot.slane %v8830_v44, %v11159_v32  ;;  %v3331_v49 = vrot.slane %v3324_v45, %v11159_v32  ;;  %v3339_v27 = vrot.slane %v8831_v46, %v11159_v32  ;;  %9196 = vmatprep.subr.bf16.mxu1 %v10563_v5 }
 0x6fe   : > { %v3341_v29 = vcombine.high %v3315_v47, %v3323_v48  ;;  %v3357_v52 = vcombine.high %v3331_v49, %v3339_v27  ;;  %v3340_v53 = vcombine.low %v3315_v47, %v3323_v48  ;;  %v3356_v56 = vcombine.low %v3331_v49, %v3339_v27  ;;  %v9782_v27 = vld [vmem:[%s3477_s26 + $0x8] sm:$0xff]   ;;  %s4302_s26 = scalar_lea.vmem %s12612_s5, %s11094_s10  ;;  %s12615_s5 = sld [smem:[#allocation54_spill]] }
 0x6ff   : > { %9197 = vmatpush3.bf16.msra.mxu1 %v9782_v27 }
 0x700   : > { %v11478_v57 = vrot.slane %v3341_v29, %v11171_v41  ;;  %v11481_v3 = vrot.slane %v3357_v52, %v11171_v41  ;;  %v11484_v4 = vrot.slane %v3340_v53, %v11171_v41  ;;  %v11487_v54 = vrot.slane %v3356_v56, %v11171_v41  ;;  %9210 = vmatprep.subr.bf16.mxu1 %v10563_v5 }
 0x702   : > { %v3374_v33 = vcombine.low %v11478_v57, %v11481_v3  ;;  %v3372_v43 = vcombine.low %v11484_v4, %v11487_v54  ;;  %v3373_v55 = vcombine.high %v11484_v4, %v11487_v54  ;;  %v3375_v58 = vcombine.high %v11478_v57, %v11481_v3  ;;  %v8835_v4 = vld [vmem:[%s3483_s22] ss:$0 sm:$0xff]  ;;  %s12614_s22 = sld [smem:[#allocation52_spill]] }
 0x706   : > { %v3028_v60 = vpop.f32.mrb[24].mxu1  ;;  %v3074_v62 = vpop.f32.mrb[28].mxu0 }
 0x707   : > { %v9174_v63 = vpop.f32.mrb[25].mxu1  ;;  %v9180_v30 = vpop.f32.mrb[29].mxu0 }
 0x708   : > { %v3031_v38 = vpop.f32.mrb[26].mxu1  ;;  %v3077_v36 = vpop.f32.mrb[30].mxu0 }
 0x709   : > { %v9175_v59 = vpop.f32.mrb[27].mxu1  ;;  %v9181_v2 = vpop.f32.mrb[31].mxu0 }
 0x70a   : > { %v10572_v2 = vmov 0  }
 0x70b   : > { %9747 = vset.pattern.permute.xlu1 %v10572_v2  ;;  %9748 = vset.pattern.permute.xlu0 %v10572_v2 }
 0x72a   : > { %v3166_v14 = vpop.f32.mrb[32].mxu0 }
 0x72b   : > { %v3256_v20 = vcombine.low %v3074_v62, %v3166_v14  ;;  %v3257_v35 = vcombine.high %v3074_v62, %v3166_v14  ;;  %v9192_v39 = vpop.f32.mrb[33].mxu0  ;;  %v1336_v14 = vld [vmem:[%s12611_s15] sm:$0xff] }
 0x72c   : > { %v3169_v19 = vpop.f32.mrb[34].mxu0 }
 0x72d   : > { %v9193_v61 = vpop.f32.mrb[35].mxu0  ;;  %v3264_v9 = vrot.slane %v3256_v20, %v11159_v32  ;;  %v3271_v0 = vrot.slane %v3257_v35, %v11159_v32  ;;  %v1337_v20 = vld [vmem:[%s12611_s15 + $0x8] sm:$0xff] }
 0x72e   : > { %v3120_v40 = vpop.f32.mrb[28].mxu1 }
 0x72f   : > { %v3240_v18 = vcombine.low %v3028_v60, %v3120_v40  ;;  %v3241_v25 = vcombine.high %v3028_v60, %v3120_v40  ;;  %v9186_v17 = vpop.f32.mrb[29].mxu1 }
 0x730   : > { %v3123_v6 = vpop.f32.mrb[30].mxu1 }
 0x731   : > { %v3248_v1 = vrot.slane %v3240_v18, %v11159_v32  ;;  %v3255_v10 = vrot.slane %v3241_v25, %v11159_v32  ;;  %v9187_v11 = vpop.f32.mrb[31].mxu1 }
 0x733   : > { %v3272_v12 = vcombine.low %v3248_v1, %v3264_v9  ;;  %v3273_v13 = vcombine.high %v3248_v1, %v3264_v9  ;;  %v3288_v22 = vcombine.low %v3255_v10, %v3271_v0  ;;  %v3289_v16 = vcombine.high %v3255_v10, %v3271_v0 }
 0x735   : > { %v3280_v26 = vrot.slane %v3272_v12, %v11171_v41  ;;  %v3287_v23 = vrot.slane %v3273_v13, %v11171_v41  ;;  %v3296_v31 = vrot.slane %v3288_v22, %v11171_v41  ;;  %v3303_v34 = vrot.slane %v3289_v16, %v11171_v41 }
 0x737   : > { %v3376_v37 = vcombine.low %v3280_v26, %v3287_v23  ;;  %v8832_v21 = vcombine.high %v3280_v26, %v3287_v23  ;;  %v3392_v51 = vcombine.low %v3296_v31, %v3303_v34  ;;  %v8833_v24 = vcombine.high %v3296_v31, %v3303_v34 }
 0x739   : > { %v3383_v15 = vrot.slane %v3376_v37, %v11159_v32  ;;  %v3391_v42 = vrot.slane %v8832_v21, %v11159_v32  ;;  %v3399_v44 = vrot.slane %v3392_v51, %v11159_v32  ;;  %v3407_v45 = vrot.slane %v8833_v24, %v11159_v32  ;;  %v1340_v21 = vld [vmem:[%s12613_s19] sm:$0x3f]  ;;  %v1341_v51 = vld [vmem:[%s12613_s19 + $0x8] sm:$0x3f] }
 0x73a   : > { %v9783_v24 = vld [vmem:[%s4302_s26] sm:$0xff]   ;;  %v4269_v50 = vcombine.high %v1340_v21, %v1340_v21 }
 0x73b   : > { %v3409_v46 = vcombine.high %v3383_v15, %v3391_v42  ;;  %v3425_v47 = vcombine.high %v3399_v44, %v3407_v45  ;;  %v3408_v48 = vcombine.low %v3383_v15, %v3391_v42  ;;  %v3424_v49 = vcombine.low %v3399_v44, %v3407_v45 }
 0x73c   : > { %v4285_v15 = vcombine.high %v1341_v51, %v1341_v51  ;;  %v4292_v42 = vrot.slane %v1341_v51, %v11159_v32  ;;  %v4283_v44 = vrot.slane %v4269_v50, %v11159_v32 }
 0x73d   : > { %v3423_v29 = vrot.slane %v3409_v46, %v11171_v41  ;;  %v3439_v52 = vrot.slane %v3425_v47, %v11171_v41  ;;  %v3416_v53 = vrot.slane %v3408_v48, %v11171_v41  ;;  %v3432_v56 = vrot.slane %v3424_v49, %v11171_v41 }
 0x73e   : > { %v4299_v46 = vrot.slane %v4285_v15, %v11159_v32  ;;  %v4300_v47 = vcombine.high %v4292_v42, %v4292_v42  ;;  %v4308_v49 = vcombine.low %v4283_v44, %v4292_v42 }
 0x73f   : > { %v3442_v60 = vcombine.low %v3423_v29, %v3439_v52  ;;  %v3441_v62 = vcombine.high %v3416_v53, %v3432_v56  ;;  %v3440_v63 = vcombine.low %v3416_v53, %v3432_v56  ;;  %v3443_v30 = vcombine.high %v3423_v29, %v3439_v52 }
 0x740   : > { %v4324_v27 = vcombine.low %v4300_v47, %v4299_v46  ;;  %v4322_v52 = vrot.slane %v4308_v49, %v11159_v32 }
 0x741   : > { %v9737_v38 = vpack.i.bf16 %v3442_v60, %v3374_v33  ;;  %v9732_v36 = vpack.i.bf16 %v3441_v62, %v3373_v55  ;;  %v9742_v59 = vpack.i.bf16 %v3443_v30, %v3375_v58 }
 0x742   : > { %v4331_v53 = vrot.slane %v4324_v27, %v11159_v32 }
 0x743   : > { %9738 = vrot.lane.b32.xlu1 %v9737_v38, %s10573_s8  ;;  %9733 = vrot.lane.b32.xlu0 %v9732_v36, %s10574_s6 }
 0x747   : > { %9743 = vrot.lane.b32.xlu0 %v9742_v59, %s12564_s7  ;;  %3549 = vperm.xlu1 %9747, %v1336_v14   ;;  %s4335_s7 = scalar_lea.vmem %s12615_s5, %s10497_s28  ;;  %s3615_s5 = scalar_lea.vmem [#allocation16], %s10497_s28 }
 0x74b   : > { %3554 = vperm.xlu0 %9748, %v1337_v20  }
 0x7b5   : > { %v9739_v57 = vpop.permute.xlu1 %9738  ;;  %v9734_v3 = vpop.permute.xlu0 %9733 }
 0x7b6   : > { %v9736_v33 = vunpack.i.h.bf16 %v9734_v3  ;;  %v9735_v55 = vunpack.i.l.bf16 %v9734_v3  ;;  %v9741_v58 = vunpack.i.h.bf16 %v9739_v57  ;;  %v9740_v35 = vunpack.i.l.bf16 %v9739_v57 }
 0x7b8   : > { %v3468_v39 = vsel %vm2322_vm3, %v3372_v43, %v9735_v55  ;;  %v3469_v19 = vsel %vm2322_vm3, %v3440_v63, %v9736_v33  ;;  %v8855_v55 = vld [vmem:[%s4335_s7] ss:$0 sm:$0xff]  ;;  %s3561_s7 = scalar_lea.vmem [#allocation13], %s10497_s28 }
 0x7b9   : > { %v9744_v61 = vpop.permute.xlu0 %9743  ;;  %v3471_v25 = vsel %vm3470_vm5, %v3468_v39, %v9740_v35  ;;  %v3472_v17 = vsel %vm3470_vm5, %v3469_v19, %v9741_v58 }
 0x7ba   : > { %v9746_v40 = vunpack.i.h.bf16 %v9744_v61  ;;  %v9745_v18 = vunpack.i.l.bf16 %v9744_v61 }
 0x7bc   : > { %v3474_v6 = vsel %vm3473_vm6, %v3471_v25, %v9745_v18  ;;  %v3475_v9 = vsel %vm3473_vm6, %v3472_v17, %v9746_v40 }
 0x7bd   : > { %v3482_v0 = vpack.c.bf16 %v3475_v9, %v3474_v6 }
 0x7bf   : > { %9199 = vmatmul.mubr.msk.bf16.vlgmr.msra.gmra.mrb[32].mxu1 %vm1377_vm2, %v3482_v0 }
 0x7c0   : > { %9214 = vmatprep.mubr.msk.bf16.mxu1 %vm10564_vm1, %v10563_v5  ;;  %9211 = vmatpush3.bf16.msra.mxu1 %v9783_v24 }
 0x7c1   : > { %9212 = vmatprep.subr.bf16.mxu1 %v10563_v5 }
 0x7c6   : > { %v11538_v43 = vpop.permute.xlu1 %3549 }
 0x7ca   : > { %v11540_v12 = vpop.permute.xlu0 %3554 }
 0x892   : > { %v3540_v54 = vpop.f32.mrb[32].mxu1 }
 0x893   : > { %v3541_v1 = vadd.f32 %v8835_v4, %v3540_v54  ;;  %v9200_v10 = vpop.f32.mrb[33].mxu1  ;;  %v8839_v54 = vld [vmem:[%s3561_s7] ss:$0 sm:$0xff]  ;;  %s12616_s7 = sld [smem:[#allocation47_spill]] }
 0x894   : > { %v3543_v11 = vpop.f32.mrb[34].mxu1 }
 0x895   : > { %v3557_v13 = vmul.f32 %v11538_v43, %v3541_v1  ;;  %v3544_v22 = vadd.f32 %v8835_v4, %v3543_v11  ;;  %v9201_v16 = vpop.f32.mrb[35].mxu1 }
 0x897   : > { %v11544_v26 = vadd.f32 %v3557_v13, %v11104_v7  ;;  %v3558_v23 = vmul.f32 %v11540_v12, %v3544_v22  ;;  %v4276_v7 = vrot.slane %v1340_v21, %v11159_v32 }
 0x899   : > { %v11548_v31 = vadd.f32 %v3558_v23, %v11106_v8  ;;  %v3565_v34 = vsel %vm1377_vm2, %v11544_v26, 0.0  ;;  %v9784_v8 = vld [vmem:[%s4302_s26 + $0x8] sm:$0xff]   ;;  %v4284_v45 = vcombine.high %v4276_v7, %v4276_v7  ;;  %s3609_s26 = scalar_lea.vmem %s12614_s22, %s11094_s10  ;;  %s3563_s22 = scalar_lea.vmem [#allocation14], %s10497_s28 }
 0x89a   : > { %3566 = vadd.xlane.f32.xlu1 %v3565_v34  ;;  %9213 = vmatpush3.bf16.msra.mxu1 %v9784_v8  ;;  %v9787_v3 = vld [vmem:[%s3609_s26] sm:$0xff]   ;;  %v9788_v33 = vld [vmem:[%s3609_s26 + $0x8] sm:$0xff]   ;;  %s6223_s26 = scalar_lea.vmem [#allocation20], %s11094_s10 }
 0x89b   : > { %v3568_v37 = vsel %vm1377_vm2, %v11548_v31, 0.0  ;;  %v4307_v48 = vcombine.low %v4276_v7, %v4284_v45  ;;  %9224 = vmatprep.subr.bf16.mxu1 %v10563_v5  ;;  %9203 = vmatpush3.bf16.msra.mxu0 %v9787_v3  ;;  %v8840_v22 = vld [vmem:[%s3563_s22] ss:$0 sm:$0xff]  ;;  %s6295_s22 = scalar_lea.vmem [#allocation22], %s10497_s28 }
 0x89c   : > { %3569 = vadd.xlane.f32.xlu0 %v3568_v37  ;;  %9204 = vmatprep.subr.bf16.mxu0 %v10563_v5 }
 0x89d   : > { %v4315_v29 = vrot.slane %v4307_v48, %v11159_v32 }
 0x89f   : > { %v4323_v56 = vcombine.low %v4315_v29, %v4322_v52  ;;  %9205 = vmatpush3.bf16.msra.mxu0 %v9788_v33 }
 0x8a0   : > { %9218 = vmatprep.subr.bf16.mxu0 %v10563_v5 }
 0x8a1   : > { %v4334_v60 = vpack.c.bf16 %v4331_v53, %v4323_v56 }
 0x8a3   : > { %9215 = vmatmul.mubr.msk.bf16.vlgmr.msra.gmra.mrb[36].mxu1 %vm1377_vm2, %v4334_v60 }
 0x8a4   : > { %9226 = vmatprep.mubr.msk.bf16.mxu1 %vm10564_vm1, %v10563_v5 }
 0x927   : > { %v3567_v62 = vpop.xlane.xlu1 %3566 }
 0x928   : > { %v3572_v63 = vmul.f32 0.03125, %v3567_v62 }
 0x929   : > { %v3570_v30 = vpop.xlane.xlu0 %3569 }
 0x92a   : > { %v3574_v38 = vsub.f32 %v11544_v26, %v3572_v63  ;;  %v3573_v36 = vmul.f32 0.03125, %v3570_v30 }
 0x92c   : > { %v3575_v59 = vsub.f32 %v11548_v31, %v3573_v36  ;;  %v3576_v2 = vmul.f32 %v3574_v38, %v3574_v38 }
 0x92e   : > { %v3578_v14 = vsel %vm1377_vm2, %v3576_v2, 0.0  ;;  %v3577_v20 = vmul.f32 %v3575_v59, %v3575_v59 }
 0x92f   : > { %3579 = vadd.xlane.f32.xlu1 %v3578_v14 }
 0x930   : > { %v3581_v57 = vsel %vm1377_vm2, %v3577_v20, 0.0 }
 0x931   : > { %3582 = vadd.xlane.f32.xlu0 %v3581_v57 }
 0x976   : > { %v4392_v58 = vpop.f32.mrb[36].mxu1 }
 0x977   : > { %v11580_v35 = vadd.f32 %v8855_v55, %v4392_v58  ;;  %v9216_v39 = vpop.f32.mrb[37].mxu1 }
 0x978   : > { %v4395_v19 = vpop.f32.mrb[38].mxu1 }
 0x979   : > { %4401 = vrot.lane.b32.xlu1 %v11580_v35, %s10566_s0  ;;  %4407 = vrot.lane.b32.xlu0 %v11580_v35, %s10567_s23  ;;  %v11586_v61 = vadd.f32 %v8855_v55, %v4395_v19  ;;  %v9217_v40 = vpop.f32.mrb[39].mxu1 }
 0x97d   : > { %4413 = vrot.lane.b32.xlu1 %v11580_v35, %s10565_s11 }
 0x9bc   : > { %v3580_v18 = vpop.xlane.xlu1 %3579 }
 0x9bd   : > { %v3584_v25 = vmul.f32 0.03125, %v3580_v18 }
 0x9be   : > { %v3583_v17 = vpop.xlane.xlu0 %3582 }
 0x9bf   : > { %v3586_v6 = vadd.f32 1e-05, %v3584_v25  ;;  %v3585_v9 = vmul.f32 0.03125, %v3583_v17 }
 0x9c1   : > { %9837 = vrsqrt.f32 %v3586_v6  ;;  %v3587_v0 = vadd.f32 1e-05, %v3585_v9  ;;  %v8842_v9 = vld [vmem:[%s3615_s5] ss:$0 sm:$0xff]  ;;  %s6072_s5 = scalar_lea.vmem [#allocation17], %s11094_s10 }
 0x9c3   : > { %9839 = vrsqrt.f32 %v3587_v0 }
 0x9cb   : > { %v9838_v4 = vpop.eup %9837 }
 0x9cc   : > { %v3590_v1 = vmul.f32 %v9838_v4, %v3574_v38 }
 0x9cd   : > { %v9840_v10 = vpop.eup %9839 }
 0x9ce   : > { %v3598_v11 = vmul.f32 %v8839_v54, %v3590_v1  ;;  %v3591_v13 = vmul.f32 %v9840_v10, %v3575_v59 }
 0x9d0   : > { %v3599_v16 = vmul.f32 %v8839_v54, %v3591_v13  ;;  %v3606_v23 = vadd.f32 %v8840_v22, %v3598_v11 }
 0x9d2   : > { %v3607_v34 = vadd.f32 %v8840_v22, %v3599_v16 }
 0x9d4   : > { %v3614_v37 = vpack.c.bf16 %v3607_v34, %v3606_v23 }
 0x9d6   : > { %9207 = vmatmul.mubr.msk.bf16.vlgmr.msra.gmra.mrb[36].mxu0 %vm1377_vm2, %v3614_v37 }
 0x9d7   : > { %9220 = vmatprep.mubr.msk.bf16.mxu0 %vm10564_vm1, %v10563_v5 }
 0x9eb   : > { %v4402_v21 = vpop.permute.xlu1 %4401  ;;  %v11595_v51 = vpop.permute.xlu0 %4407 }
 0x9ec   : > { %v4420_v24 = vcombine.high %v11580_v35, %v11595_v51  ;;  %v4419_v44 = vcombine.low %v11580_v35, %v11595_v51 }
 0x9ee   : > { %v11600_v15 = vrot.slane %v4420_v24, %v11159_v32  ;;  %v4427_v46 = vrot.slane %v4419_v44, %v11159_v32 }
 0x9ef   : > { %v4414_v50 = vpop.permute.xlu1 %4413 }
 0x9f0   : > { %v4436_v7 = vcombine.high %v4402_v21, %v4414_v50  ;;  %v4435_v45 = vcombine.low %v4402_v21, %v4414_v50 }
 0x9f2   : > { %v11603_v42 = vrot.slane %v4436_v7, %v11159_v32  ;;  %v4443_v47 = vrot.slane %v4435_v45, %v11159_v32 }
 0x9f4   : > { %v4468_v8 = vcombine.high %v11600_v15, %v11603_v42  ;;  %v4451_v48 = vcombine.low %v4427_v46, %v4443_v47  ;;  %v4452_v49 = vcombine.high %v4427_v46, %v4443_v47  ;;  %v4467_v27 = vcombine.low %v11600_v15, %v11603_v42 }
 0x9f6   : > { %v4459_v29 = vrot.slane %v4451_v48, %v11171_v41  ;;  %v4466_v52 = vrot.slane %v4452_v49, %v11171_v41  ;;  %v4475_v53 = vrot.slane %v4467_v27, %v11171_v41 }
 0x9f8   : > { %v4519_v56 = vcombine.low %v4459_v29, %v4466_v52  ;;  %v8859_v60 = vcombine.high %v4459_v29, %v4466_v52  ;;  %v4542_v62 = vcombine.high %v4475_v53, %v10563_v5  ;;  %v4541_v63 = vrot.slane %v4475_v53, %v11159_v32 }
 0x9fa   : > { %v4526_v30 = vrot.slane %v4519_v56, %v11159_v32  ;;  %v4534_v38 = vrot.slane %v8859_v60, %v11159_v32  ;;  %v4549_v36 = vrot.slane %v4542_v62, %v11159_v32 }
 0x9fc   : > { %v4550_v59 = vcombine.low %v4526_v30, %v4534_v38  ;;  %v4566_v2 = vcombine.low %v4541_v63, %v4549_v36  ;;  %v4551_v14 = vcombine.high %v4526_v30, %v4534_v38  ;;  %v4567_v20 = vcombine.high %v4541_v63, %v4549_v36 }
 0x9fe   : > { %v4558_v57 = vrot.slane %v4550_v59, %v11171_v41  ;;  %v4574_v3 = vrot.slane %v4566_v2, %v11171_v41  ;;  %v4565_v33 = vrot.slane %v4551_v14, %v11171_v41  ;;  %v4581_v55 = vrot.slane %v4567_v20, %v11171_v41 }
 0xa00   : > { %v4582_v58 = vcombine.low %v4558_v57, %v4574_v3  ;;  %v4583_v39 = vcombine.high %v4558_v57, %v4574_v3  ;;  %v11625_v19 = vcombine.low %v4565_v33, %v4581_v55  ;;  %v11627_v40 = vcombine.high %v4565_v33, %v4581_v55 }
 0xa02   : > { %v4919_v18 = vpack.c.bf16 %v4582_v58, %v4582_v58  ;;  %v4920_v25 = vpack.c.bf16 %v4583_v39, %v4583_v39  ;;  %v4921_v36 = vpack.c.bf16 %v11625_v19, %v11625_v19  ;;  %v4482_v19 = vrot.slane %v4468_v8, %v11171_v41 }
 0xa04   : > { %v4931_v17 = vsel %vm2322_vm3, %v4919_v18, 0  ;;  %v4977_v6 = vsel %vm2322_vm3, %v4920_v25, 0 }
 0xa05   : > { %9219 = vmatpush3.bf16.xpose.msra.mxu0 %v4931_v17  ;;  %9225 = vmatpush3.bf16.xpose.msra.mxu1 %v4977_v6 }
 0xa06   : > { %9230 = vmatprep.subr.bf16.mxu0 %v10563_v5  ;;  %9236 = vmatprep.subr.bf16.mxu1 %v10563_v5 }
 0xaa9   : > { %v3672_v0 = vpop.f32.mrb[36].mxu0 }
 0xaaa   : > { %v11634_v4 = vadd.f32 %v8842_v9, %v3672_v0  ;;  %v9208_v54 = vpop.f32.mrb[37].mxu0 }
 0xaab   : > { %v3675_v1 = vpop.f32.mrb[38].mxu0 }
 0xaac   : > { %3687 = vrot.lane.b32.xlu0 %v11634_v4, %s10567_s23  ;;  %3681 = vrot.lane.b32.xlu1 %v11634_v4, %s10566_s0  ;;  %v9209_v10 = vpop.f32.mrb[39].mxu0  ;;  %v11648_v11 = vadd.f32 %v8842_v9, %v3675_v1 }
 0xaad   : > { %v5023_v10 = vsel %vm2322_vm3, %v4921_v36, 0 }
 0xab0   : > { %4403 = vrot.lane.b32.xlu0 %v11586_v61, %s10566_s0  ;;  %3693 = vrot.lane.b32.xlu1 %v11634_v4, %s10565_s11 }
 0xab4   : > { %4415 = vrot.lane.b32.xlu0 %v11586_v61, %s10565_s11  ;;  %4409 = vrot.lane.b32.xlu1 %v11586_v61, %s10567_s23 }
 0xab8   : > { %3689 = vrot.lane.b32.xlu0 %v11648_v11, %s10567_s23  ;;  %3683 = vrot.lane.b32.xlu1 %v11648_v11, %s10566_s0 }
 0xabc   : > { %4653 = vrot.lane.b32.xlu0 %v11580_v35, %s10568_s18  ;;  %3695 = vrot.lane.b32.xlu1 %v11648_v11, %s10565_s11 }
 0xac0   : > { %4657 = vrot.lane.b32.xlu1 %v4402_v21, %s10568_s18  ;;  %4665 = vrot.lane.b32.xlu0 %v4414_v50, %s10568_s18 }
 0xac4   : > { %4661 = vrot.lane.b32.xlu1 %v11595_v51, %s10568_s18 }
 0xb1e   : > { %v11662_v13 = vpop.permute.xlu0 %3687  ;;  %v11664_v22 = vpop.permute.xlu1 %3681 }
 0xb1f   : > { %v3699_v16 = vcombine.low %v11634_v4, %v11662_v13  ;;  %v3700_v35 = vcombine.high %v11634_v4, %v11662_v13 }
 0xb21   : > { %v3707_v51 = vrot.slane %v3699_v16, %v11159_v32  ;;  %v3714_v24 = vrot.slane %v3700_v35, %v11159_v32  ;;  %v4922_v16 = vpack.c.bf16 %v11627_v40, %v11627_v40 }
 0xb22   : > { %v11670_v23 = vpop.permute.xlu0 %4403  ;;  %v11672_v34 = vpop.permute.xlu1 %3693 }
 0xb23   : > { %v3715_v37 = vcombine.low %v11664_v22, %v11672_v34  ;;  %v3716_v21 = vcombine.high %v11664_v22, %v11672_v34 }
 0xb25   : > { %v3723_v50 = vrot.slane %v3715_v37, %v11159_v32  ;;  %v3730_v7 = vrot.slane %v3716_v21, %v11159_v32 }
 0xb26   : > { %v11682_v44 = vpop.permute.xlu0 %4415  ;;  %v11684_v45 = vpop.permute.xlu1 %4409 }
 0xb27   : > { %v3731_v46 = vcombine.low %v3707_v51, %v3723_v50  ;;  %v3732_v47 = vcombine.high %v3707_v51, %v3723_v50  ;;  %v3747_v48 = vcombine.low %v3714_v24, %v3730_v7  ;;  %v3748_v49 = vcombine.high %v3714_v24, %v3730_v7 }
 0xb28   : > { %v4494_v27 = vcombine.low %v11670_v23, %v11682_v44  ;;  %v4486_v29 = vcombine.low %v11586_v61, %v11684_v45 }
 0xb29   : > { %v3739_v52 = vrot.slane %v3731_v46, %v11171_v41  ;;  %v3746_v53 = vrot.slane %v3732_v47, %v11171_v41  ;;  %v3755_v56 = vrot.slane %v3747_v48, %v11171_v41  ;;  %v3762_v60 = vrot.slane %v3748_v49, %v11171_v41 }
 0xb2a   : > { %v4501_v62 = vrot.slane %v4494_v27, %v11159_v32  ;;  %v4493_v63 = vrot.slane %v4486_v29, %v11159_v32  ;;  %v11696_v30 = vpop.permute.xlu0 %3689  ;;  %v11698_v38 = vpop.permute.xlu1 %3683 }
 0xb2b   : > { %v3835_v59 = vcombine.low %v3739_v52, %v3746_v53  ;;  %v8846_v2 = vcombine.high %v3739_v52, %v3746_v53  ;;  %v3851_v14 = vcombine.low %v3755_v56, %v3762_v60  ;;  %v8847_v20 = vcombine.high %v3755_v56, %v3762_v60 }
 0xb2c   : > { %v4502_v57 = vcombine.low %v4493_v63, %v4501_v62  ;;  %v4503_v3 = vcombine.high %v4493_v63, %v4501_v62  ;;  %v3767_v33 = vcombine.low %v11648_v11, %v11696_v30  ;;  %v3768_v6 = vcombine.high %v11648_v11, %v11696_v30 }
 0xb2d   : > { %v3842_v55 = vrot.slane %v3835_v59, %v11159_v32  ;;  %v3850_v58 = vrot.slane %v8846_v2, %v11159_v32  ;;  %v3858_v39 = vrot.slane %v3851_v14, %v11159_v32  ;;  %v3866_v18 = vrot.slane %v8847_v20, %v11159_v32 }
 0xb2e   : > { %v4510_v25 = vrot.slane %v4502_v57, %v11171_v41  ;;  %v11714_v17 = vrot.slane %v4503_v3, %v11171_v41  ;;  %v4654_v9 = vpop.permute.xlu0 %4653  ;;  %v11718_v0 = vpop.permute.xlu1 %3695  ;;  %v3775_v35 = vrot.slane %v3767_v33, %v11159_v32  ;;  %v3782_v46 = vrot.slane %v3768_v6, %v11159_v32 }
 0xb2f   : > { %v3867_v54 = vcombine.low %v3842_v55, %v3850_v58  ;;  %v3883_v1 = vcombine.low %v3858_v39, %v3866_v18  ;;  %v3868_v15 = vcombine.high %v3842_v55, %v3850_v58  ;;  %v3783_v37 = vcombine.low %v11698_v38, %v11718_v0 }
 0xb30   : > { %v4586_v42 = vcombine.low %v4482_v19, %v4510_v25  ;;  %v8860_v8 = vcombine.high %v4482_v19, %v4510_v25  ;;  %v3784_v21 = vcombine.high %v11698_v38, %v11718_v0  ;;  %v3884_v50 = vcombine.high %v3858_v39, %v3866_v18 }
 0xb31   : > { %v3875_v51 = vrot.slane %v3867_v54, %v11171_v41  ;;  %v3891_v24 = vrot.slane %v3883_v1, %v11171_v41  ;;  %v4609_v40 = vcombine.high %v11714_v17, %v10563_v5  ;;  %v3791_v27 = vrot.slane %v3783_v37, %v11159_v32 }
 0xb32   : > { %v11731_v7 = vrot.slane %v4586_v42, %v11159_v32  ;;  %v4658_v47 = vpop.permute.xlu1 %4657  ;;  %v4666_v48 = vpop.permute.xlu0 %4665  ;;  %v11737_v49 = vrot.slane %v8860_v8, %v11159_v32  ;;  %v3798_v29 = vrot.slane %v3784_v21, %v11159_v32  ;;  %v3882_v62 = vrot.slane %v3868_v15, %v11171_v41 }
 0xb33   : > { %v4693_v52 = vcombine.low %v4658_v47, %v4666_v48  ;;  %v4694_v53 = vcombine.high %v4658_v47, %v4666_v48  ;;  %v3899_v56 = vcombine.low %v3875_v51, %v3891_v24  ;;  %v3900_v60 = vcombine.high %v3875_v51, %v3891_v24 }
 0xb34   : > { %v3799_v63 = vcombine.low %v3775_v35, %v3791_v27  ;;  %v3800_v36 = vcombine.high %v3775_v35, %v3791_v27  ;;  %v3815_v59 = vcombine.low %v3782_v46, %v3798_v29  ;;  %v3816_v2 = vcombine.high %v3782_v46, %v3798_v29 }
 0xb35   : > { %v4701_v14 = vrot.slane %v4693_v52, %v11159_v32  ;;  %v4911_v57 = vpack.c.bf16 %v3899_v56, %v3899_v56  ;;  %v4912_v3 = vpack.c.bf16 %v3900_v60, %v3900_v60  ;;  %v3898_v33 = vrot.slane %v3884_v50, %v11171_v41 }
 0xb36   : > { %v4662_v20 = vpop.permute.xlu1 %4661  ;;  %v3807_v55 = vrot.slane %v3799_v63, %v11171_v41  ;;  %v3814_v58 = vrot.slane %v3800_v36, %v11171_v41  ;;  %v3823_v39 = vrot.slane %v3815_v59, %v11171_v41  ;;  %v3830_v18 = vrot.slane %v3816_v2, %v11171_v41 }
 0xb37   : > { %v11749_v19 = vrot.slane %v4694_v53, %v11159_v32  ;;  %v4677_v25 = vcombine.low %v4654_v9, %v4662_v20  ;;  %v4678_v6 = vcombine.high %v4654_v9, %v4662_v20  ;;  %9221 = vmatmul.mubr.msk.bf16.vlgmr.msra.gmra.mrb[40].mxu0 %vm2322_vm3, %v4911_v57  ;;  %9227 = vmatmul.mubr.msk.bf16.vlgmr.msra.gmra.mrb[40].mxu1 %vm2322_vm3, %v4912_v3  ;;  %v5069_v54 = vsel %vm2322_vm3, %v4922_v16, 0 }
 0xb38   : > { %v3903_v1 = vcombine.low %v3807_v55, %v3814_v58  ;;  %v8848_v15 = vcombine.high %v3807_v55, %v3814_v58  ;;  %v3919_v42 = vcombine.low %v3823_v39, %v3830_v18  ;;  %v8849_v8 = vcombine.high %v3823_v39, %v3830_v18  ;;  %9231 = vmatpush3.bf16.xpose.msra.mxu0 %v5023_v10 }
 0xb39   : > { %v4685_v35 = vrot.slane %v4677_v25, %v11159_v32  ;;  %v11756_v37 = vrot.slane %v4678_v6, %v11159_v32  ;;  %9237 = vmatpush3.bf16.xpose.msra.mxu1 %v5069_v54  ;;  %9232 = vmatprep.mubr.msk.bf16.mxu0 %vm10564_vm1, %v10563_v5  ;;  %v3901_v9 = vcombine.low %v3882_v62, %v3898_v33 }
 0xb3a   : > { %v4616_v21 = vrot.slane %v4609_v40, %v11159_v32  ;;  %v11762_v51 = vrot.slane %v3903_v1, %v11159_v32  ;;  %v11765_v16 = vrot.slane %v8848_v15, %v11159_v32  ;;  %9238 = vmatprep.mubr.msk.bf16.mxu1 %vm10564_vm1, %v10563_v5  ;;  %v4617_v10 = vcombine.low %v11731_v7, %v11737_v49 }
 0xb3b   : > { %v4709_v24 = vcombine.low %v4685_v35, %v4701_v14  ;;  %v4710_v50 = vcombine.high %v4685_v35, %v4701_v14  ;;  %v4725_v46 = vcombine.low %v11756_v37, %v11749_v19  ;;  %v4726_v40 = vcombine.high %v11756_v37, %v11749_v19  ;;  %9242 = vmatprep.subr.bf16.mxu0 %v10563_v5 }
 0xb3c   : > { %v4608_v47 = vrot.slane %v11714_v17, %v11159_v32  ;;  %v3926_v48 = vrot.slane %v3919_v42, %v11159_v32  ;;  %v3934_v27 = vrot.slane %v8849_v8, %v11159_v32  ;;  %9248 = vmatprep.subr.bf16.mxu1 %v10563_v5  ;;  %v4913_v56 = vpack.c.bf16 %v3901_v9, %v3901_v9 }
 0xb3d   : > { %v4717_v29 = vrot.slane %v4709_v24, %v11171_v41  ;;  %v4724_v52 = vrot.slane %v4710_v50, %v11171_v41  ;;  %v4733_v53 = vrot.slane %v4725_v46, %v11171_v41  ;;  %v3902_v60 = vcombine.high %v3882_v62, %v3898_v33 }
 0xb3e   : > { %v4625_v63 = vrot.slane %v4617_v10, %v11171_v41  ;;  %v4633_v36 = vcombine.low %v4608_v47, %v4616_v21  ;;  %v3935_v17 = vcombine.low %v11762_v51, %v11765_v16  ;;  %v3951_v20 = vcombine.low %v3926_v48, %v3934_v27 }
 0xb3f   : > { %v4777_v59 = vcombine.low %v4717_v29, %v4724_v52  ;;  %v8861_v2 = vcombine.high %v4717_v29, %v4724_v52  ;;  %v4800_v14 = vcombine.high %v4733_v53, %v10563_v5  ;;  %9233 = vmatmul.mubr.msk.bf16.vlgmr.msra.gmra.mrb[44].mxu0 %vm2322_vm3, %v4913_v56  ;;  %v4914_v57 = vpack.c.bf16 %v3902_v60, %v3902_v60 }
 0xb40   : > { %v4641_v3 = vrot.slane %v4633_v36, %v11171_v41  ;;  %9244 = vmatprep.mubr.msk.bf16.mxu0 %vm10564_vm1, %v10563_v5  ;;  %v4618_v62 = vcombine.high %v11731_v7, %v11737_v49  ;;  %v4634_v55 = vcombine.high %v4608_v47, %v4616_v21  ;;  %v3943_v6 = vrot.slane %v3935_v17, %v11171_v41 }
 0xb41   : > { %v4784_v33 = vrot.slane %v4777_v59, %v11159_v32  ;;  %v4792_v58 = vrot.slane %v8861_v2, %v11159_v32  ;;  %v4807_v39 = vrot.slane %v4800_v14, %v11159_v32  ;;  %9239 = vmatmul.mubr.msk.bf16.vlgmr.msra.gmra.mrb[44].mxu1 %vm2322_vm3, %v4914_v57  ;;  %v4799_v49 = vrot.slane %v4733_v53, %v11159_v32 }
 0xb42   : > { %v4649_v18 = vcombine.low %v4625_v63, %v4641_v3  ;;  %v4650_v25 = vcombine.high %v4625_v63, %v4641_v3  ;;  %9250 = vmatprep.mubr.msk.bf16.mxu1 %vm10564_vm1, %v10563_v5  ;;  %v4632_v54 = vrot.slane %v4618_v62, %v11171_v41  ;;  %v4648_v7 = vrot.slane %v4634_v55, %v11171_v41 }
 0xb43   : > { %v3959_v42 = vrot.slane %v3951_v20, %v11171_v41  ;;  %v4808_v10 = vcombine.low %v4784_v33, %v4792_v58  ;;  %v4824_v24 = vcombine.low %v4799_v49, %v4807_v39  ;;  %v3936_v50 = vcombine.high %v11762_v51, %v11765_v16 }
 0xb44   : > { %v4923_v1 = vpack.c.bf16 %v4649_v18, %v4649_v18  ;;  %v4924_v15 = vpack.c.bf16 %v4650_v25, %v4650_v25  ;;  %v4651_v8 = vcombine.low %v4632_v54, %v4648_v7  ;;  %v4652_v35 = vcombine.high %v4632_v54, %v4648_v7 }
 0xb45   : > { %v3952_v46 = vcombine.high %v3926_v48, %v3934_v27  ;;  %v3967_v47 = vcombine.low %v3943_v6, %v3959_v42  ;;  %v3968_v29 = vcombine.high %v3943_v6, %v3959_v42  ;;  %v4809_v52 = vcombine.high %v4784_v33, %v4792_v58 }
 0xb46   : > { %v5115_v9 = vsel %vm2322_vm3, %v4923_v1, 0  ;;  %v5161_v21 = vsel %vm2322_vm3, %v4924_v15, 0  ;;  %v4825_v53 = vcombine.high %v4799_v49, %v4807_v39  ;;  %v4925_v56 = vpack.c.bf16 %v4651_v8, %v4651_v8 }
 0xb47   : > { %9243 = vmatpush3.bf16.xpose.msra.mxu0 %v5115_v9  ;;  %9249 = vmatpush3.bf16.xpose.msra.mxu1 %v5161_v21  ;;  %v4926_v60 = vpack.c.bf16 %v4652_v35, %v4652_v35  ;;  %v4816_v63 = vrot.slane %v4808_v10, %v11171_v41  ;;  %v4832_v36 = vrot.slane %v4824_v24, %v11171_v41 }
 0xb48   : > { %9254 = vmatprep.subr.bf16.mxu0 %v10563_v5  ;;  %9260 = vmatprep.subr.bf16.mxu1 %v10563_v5  ;;  %v4823_v17 = vrot.slane %v4809_v52, %v11171_v41  ;;  %v4839_v51 = vrot.slane %v4825_v53, %v11171_v41  ;;  %v4915_v16 = vpack.c.bf16 %v3967_v47, %v3967_v47  ;;  %v5207_v20 = vsel %vm2322_vm3, %v4925_v56, 0 }
 0xb49   : > { %v4916_v48 = vpack.c.bf16 %v3968_v29, %v3968_v29  ;;  %v3950_v27 = vrot.slane %v3936_v50, %v11171_v41  ;;  %v3966_v59 = vrot.slane %v3952_v46, %v11171_v41  ;;  %v5253_v57 = vsel %vm2322_vm3, %v4926_v60, 0 }
 0xb4a   : > { %v11817_v2 = vcombine.high %v4823_v17, %v4839_v51  ;;  %v11819_v14 = vcombine.low %v4823_v17, %v4839_v51  ;;  %v4840_v3 = vcombine.low %v4816_v63, %v4832_v36  ;;  %v4841_v62 = vcombine.high %v4816_v63, %v4832_v36 }
 0xb4b   : > { %v3969_v33 = vcombine.low %v3950_v27, %v3966_v59  ;;  %v3970_v55 = vcombine.high %v3950_v27, %v3966_v59 }
 0xb4c   : > { %v5392_v58 = vpack.c.bf16 %v4840_v3, %v4840_v3  ;;  %v5393_v39 = vpack.c.bf16 %v4841_v62, %v4841_v62 }
 0xb4d   : > { %v4917_v18 = vpack.c.bf16 %v3969_v33, %v3969_v33  ;;  %v4918_v25 = vpack.c.bf16 %v3970_v55, %v3970_v55 }
 0xb4e   : > { %9245 = vmatmul.mubr.msk.bf16.vlgmr.msra.gmra.mrb[48].mxu0 %vm2322_vm3, %v4915_v16  ;;  %9251 = vmatmul.mubr.msk.bf16.vlgmr.msra.gmra.mrb[48].mxu1 %vm2322_vm3, %v4916_v48  ;;  %v5405_v6 = vsel %vm5403_vm7, %v5392_v58, 0  ;;  %v5451_v54 = vsel %vm5403_vm7, %v5393_v39, 0 }
 0xb4f   : > { %9255 = vmatpush3.bf16.xpose.msra.mxu0 %v5207_v20  ;;  %9261 = vmatpush3.bf16.xpose.msra.mxu1 %v5253_v57 }
 0xb50   : > { %9256 = vmatprep.mubr.msk.bf16.mxu0 %vm10564_vm1, %v10563_v5  ;;  %9262 = vmatprep.mubr.msk.bf16.mxu1 %vm10564_vm1, %v10563_v5 }
 0xb51   : > { %9266 = vmatprep.subr.bf16.mxu0 %v10563_v5  ;;  %9272 = vmatprep.subr.bf16.mxu1 %v10563_v5 }
 0xb56   : > { %9257 = vmatmul.mubr.msk.bf16.vlgmr.msra.gmra.mrb[52].mxu0 %vm2322_vm3, %v4917_v18  ;;  %9263 = vmatmul.mubr.msk.bf16.vlgmr.msra.gmra.mrb[52].mxu1 %vm2322_vm3, %v4918_v25 }
 0xb57   : > { %9267 = vmatpush3.bf16.msra.mxu0 %v5405_v6  ;;  %9273 = vmatpush3.bf16.msra.mxu1 %v5451_v54 }
 0xb58   : > { %9274 = vmatprep.mubr.msk.bf16.mxu1 %vm10564_vm1, %v10563_v5  ;;  %9284 = vmatprep.subr.bf16.mxu1 %v10563_v5 }
 0xb59   : > { %9268 = vmatprep.mubr.msk.bf16.mxu0 %vm10564_vm1, %v10563_v5  ;;  %9278 = vmatprep.subr.bf16.mxu0 %v10563_v5 }
 0xc0a   : > { %v4967_v7 = vpop.f32.mrb[40].mxu0  ;;  %v5013_v49 = vpop.f32.mrb[40].mxu1 }
 0xc0b   : > { %v9222_v1 = vpop.f32.mrb[41].mxu0  ;;  %v9228_v15 = vpop.f32.mrb[41].mxu1  ;;  %v5299_v42 = vsel %vm5295_vm8, %v5013_v49, -inf  ;;  %v5296_v8 = vsel %vm5295_vm8, %v4967_v7, -inf }
 0xc0c   : > { %v5016_v35 = vpop.f32.mrb[42].mxu1  ;;  %5300 = vmax.xlane.f32.xlu0 %v5299_v42  ;;  %5297 = vmax.xlane.f32.xlu1 %v5296_v8  ;;  %v4970_v9 = vpop.f32.mrb[42].mxu0 }
 0xc0d   : > { %v9223_v21 = vpop.f32.mrb[43].mxu0  ;;  %v9229_v10 = vpop.f32.mrb[43].mxu1 }
 0xc12   : > { %v5059_v24 = vpop.f32.mrb[44].mxu0 }
 0xc13   : > { %v9234_v50 = vpop.f32.mrb[45].mxu0  ;;  %v5302_v63 = vsel %vm5295_vm8, %v5059_v24, -inf }
 0xc14   : > { %v5062_v46 = vpop.f32.mrb[46].mxu0  ;;  %v5105_v47 = vpop.f32.mrb[44].mxu1 }
 0xc15   : > { %v9235_v29 = vpop.f32.mrb[47].mxu0  ;;  %v9240_v52 = vpop.f32.mrb[45].mxu1  ;;  %v5305_v53 = vsel %vm5295_vm8, %v5105_v47, -inf }
 0xc16   : > { %v5108_v56 = vpop.f32.mrb[46].mxu1  ;;  %5306 = vmax.xlane.f32.xlu0 %v5305_v53 }
 0xc17   : > { %v9241_v60 = vpop.f32.mrb[47].mxu1 }
 0xc1a   : > { %5303 = vmax.xlane.f32.xlu0 %v5302_v63 }
 0xc21   : > { %v11845_v36 = vpop.f32.mrb[48].mxu0  ;;  %v5197_v17 = vpop.f32.mrb[48].mxu1 }
 0xc22   : > { %v9246_v51 = vpop.f32.mrb[49].mxu0  ;;  %v9252_v16 = vpop.f32.mrb[49].mxu1  ;;  %v5311_v48 = vsel %vm5295_vm8, %v5197_v17, -inf  ;;  %v5308_v27 = vsel %vm5295_vm8, %v11845_v36, -inf }
 0xc23   : > { %v5200_v59 = vpop.f32.mrb[50].mxu1  ;;  %5312 = vmax.xlane.f32.xlu1 %v5311_v48  ;;  %5309 = vmax.xlane.f32.xlu0 %v5308_v27  ;;  %v5154_v20 = vpop.f32.mrb[50].mxu0 }
 0xc24   : > { %v9247_v57 = vpop.f32.mrb[51].mxu0  ;;  %v9253_v3 = vpop.f32.mrb[51].mxu1 }
 0xc29   : > { %v5243_v62 = vpop.f32.mrb[52].mxu0  ;;  %v5289_v33 = vpop.f32.mrb[52].mxu1 }
 0xc2a   : > { %v9258_v55 = vpop.f32.mrb[53].mxu0  ;;  %v9264_v58 = vpop.f32.mrb[53].mxu1  ;;  %v5317_v39 = vsel %vm5295_vm8, %v5289_v33, -inf  ;;  %v5314_v18 = vsel %vm5295_vm8, %v5243_v62, -inf }
 0xc2b   : > { %v5292_v25 = vpop.f32.mrb[54].mxu1  ;;  %5318 = vmax.xlane.f32.xlu1 %v5317_v39  ;;  %5315 = vmax.xlane.f32.xlu0 %v5314_v18  ;;  %v5246_v6 = vpop.f32.mrb[54].mxu0 }
 0xc2c   : > { %v9259_v54 = vpop.f32.mrb[55].mxu0  ;;  %v9265_v1 = vpop.f32.mrb[55].mxu1 }
 0xc3c   : > { %4659 = vrot.lane.b32.xlu1 %v11670_v23, %s10568_s18 }
 0xc41   : > { %4655 = vrot.lane.b32.xlu0 %v11586_v61, %s10568_s18 }
 0xc99   : > { %v5301_v15 = vpop.xlane.xlu0 %5300  ;;  %v5298_v42 = vpop.xlane.xlu1 %5297 }
 0xc9a   : > { %v5321_v8 = vsub.f32 %v5013_v49, %v5301_v15  ;;  %v5320_v35 = vsub.f32 %v4967_v7, %v5298_v42 }
 0xc9c   : > { %v5330_v9 = vmul.f32 1.442695, %v5321_v8  ;;  %v5328_v21 = vmul.f32 1.442695, %v5320_v35 }
 0xc9e   : > { %9841 = vpow2.f32 %v5330_v9  ;;  %v5395_v9 = vpack.c.bf16 %v11817_v2, %v11817_v2 }
 0xc9f   : > { %9843 = vpow2.f32 %v5328_v21 }
 0xca3   : > { %v5307_v10 = vpop.xlane.xlu0 %5306 }
 0xca4   : > { %v5323_v50 = vsub.f32 %v5105_v47, %v5307_v10 }
 0xca6   : > { %v5334_v46 = vmul.f32 1.442695, %v5323_v50 }
 0xca7   : > { %v5304_v52 = vpop.xlane.xlu0 %5303 }
 0xca8   : > { %v9842_v29 = vpop.eup %9841  ;;  %9845 = vpow2.f32 %v5334_v46  ;;  %v5322_v53 = vsub.f32 %v5059_v24, %v5304_v52  ;;  %v5394_v46 = vpack.c.bf16 %v11819_v14, %v11819_v14 }
 0xca9   : > { %v5347_v23 = vsel %vm5295_vm8, %v9842_v29, 0.0  ;;  %v9844_v56 = vpop.eup %9843 }
 0xcaa   : > { %5348 = vadd.xlane.f32.xlu1 %v5347_v23  ;;  %v5332_v61 = vmul.f32 1.442695, %v5322_v53  ;;  %v5344_v49 = vsel %vm5295_vm8, %v9844_v56, 0.0  ;;  %v5497_v2 = vsel %vm5403_vm7, %v5394_v46, 0 }
 0xcac   : > { %9847 = vpow2.f32 %v5332_v61 }
 0xcae   : > { %5345 = vadd.xlane.f32.xlu1 %v5344_v49 }
 0xcb0   : > { %v5313_v7 = vpop.xlane.xlu1 %5312 }
 0xcb1   : > { %v5325_v60 = vsub.f32 %v5197_v17, %v5313_v7  ;;  %v5310_v17 = vpop.xlane.xlu0 %5309 }
 0xcb2   : > { %v11858_v63 = vpop.eup %9845  ;;  %v5324_v58 = vsub.f32 %v11845_v36, %v5310_v17 }
 0xcb3   : > { %v5338_v51 = vmul.f32 1.442695, %v5325_v60  ;;  %v5353_v47 = vsel %vm5295_vm8, %v11858_v63, 0.0 }
 0xcb4   : > { %5354 = vadd.xlane.f32.xlu0 %v5353_v47  ;;  %v5336_v18 = vmul.f32 1.442695, %v5324_v58 }
 0xcb5   : > { %9849 = vpow2.f32 %v5338_v51 }
 0xcb6   : > { %v11862_v24 = vpop.eup %9847 }
 0xcb7   : > { %v5350_v16 = vsel %vm5295_vm8, %v11862_v24, 0.0 }
 0xcb8   : > { %5351 = vadd.xlane.f32.xlu0 %v5350_v16  ;;  %v5319_v59 = vpop.xlane.xlu1 %5318  ;;  %v5316_v57 = vpop.xlane.xlu0 %5315 }
 0xcb9   : > { %v5327_v20 = vsub.f32 %v5289_v33, %v5319_v59  ;;  %v5326_v55 = vsub.f32 %v5243_v62, %v5316_v57 }
 0xcbb   : > { %v5342_v3 = vmul.f32 1.442695, %v5327_v20  ;;  %v5340_v39 = vmul.f32 1.442695, %v5326_v55 }
 0xcbc   : > { %v4660_v6 = vpop.permute.xlu1 %4659  ;;  %v4656_v15 = vpop.permute.xlu0 %4655 }
 0xcbd   : > { %9851 = vpow2.f32 %v5342_v3 }
 0xcbe   : > { %9853 = vpow2.f32 %v5340_v39 }
 0xcbf   : > { %v11866_v48 = vpop.eup %9849  ;;  %9855 = vpow2.f32 %v5336_v18 }
 0xcc0   : > { %v5359_v27 = vsel %vm5295_vm8, %v11866_v48, 0.0 }
 0xcc1   : > { %5360 = vadd.xlane.f32.xlu1 %v5359_v27 }
 0xcc7   : > { %v11875_v25 = vpop.eup %9851 }
 0xcce   : > { %4667 = vrot.lane.b32.xlu0 %v11682_v44, %s10568_s18  ;;  %v5365_v44 = vsel %vm5295_vm8, %v11875_v25, 0.0 }
 0xcd2   : > { %4663 = vrot.lane.b32.xlu1 %v11684_v45, %s10568_s18  ;;  %v11879_v45 = vpop.eup %9853 }
 0xcd3   : > { %v5362_v33 = vsel %vm5295_vm8, %v11879_v45, 0.0  ;;  %v11883_v62 = vpop.eup %9855 }
 0xcd4   : > { %v5356_v36 = vsel %vm5295_vm8, %v11883_v62, 0.0 }
 0xced   : > { %5366 = vadd.xlane.f32.xlu0 %v5365_v44 }
 0xcf1   : > { %5363 = vadd.xlane.f32.xlu0 %v5362_v33 }
 0xcf6   : > { %5357 = vadd.xlane.f32.xlu1 %v5356_v36 }
 0xd07   : > { %3971 = vrot.lane.b32.xlu1 %v11634_v4, %s10568_s18  ;;  %3975 = vrot.lane.b32.xlu0 %v11664_v22, %s10568_s18  ;;  %v5543_v22 = vsel %vm5403_vm7, %v5395_v9, 0  ;;  %v10576_v9 = vmov 1966171168  }
 0xd37   : > { %v5349_v54 = vpop.xlane.xlu1 %5348 }
 0xd38   : > { %9857 = vrcp.f32 %v5349_v54 }
 0xd3b   : > { %v5346_v1 = vpop.xlane.xlu1 %5345 }
 0xd3c   : > { %9859 = vrcp.f32 %v5346_v1 }
 0xd41   : > { %v5355_v8 = vpop.xlane.xlu0 %5354 }
 0xd42   : > { %v9858_v42 = vpop.eup %9857  ;;  %9861 = vrcp.f32 %v5355_v8 }
 0xd43   : > { %v5371_v35 = vmul.f32 %v9858_v42, %v9842_v29 }
 0xd45   : > { %v5385_v21 = vpack.c.bf16 %v5371_v35, %v5371_v35  ;;  %v5352_v4 = vpop.xlane.xlu0 %5351 }
 0xd46   : > { %v9860_v10 = vpop.eup %9859  ;;  %9863 = vrcp.f32 %v5352_v4 }
 0xd47   : > { %v5369_v50 = vmul.f32 %v9860_v10, %v9844_v56  ;;  %9275 = vmatmul.mubr.msk.bf16.vlgmr.msra.gmra.mrb[56].mxu1 %vm5295_vm8, %v5385_v21  ;;  %v6146_v21 = vunpack.c.l.s4 %v10576_v9 }
 0xd48   : > { %9285 = vmatpush3.bf16.msra.mxu1 %v5543_v22  ;;  %9286 = vmatprep.mubr.msk.bf16.mxu1 %vm10564_vm1, %v10563_v5 }
 0xd49   : > { %v5384_v29 = vpack.c.bf16 %v5369_v50, %v5369_v50  ;;  %9296 = vmatprep.subr.bf16.mxu1 %v10563_v5  ;;  %v4668_v23 = vpop.permute.xlu0 %4667 }
 0xd4a   : > { %v4752_v49 = vcombine.low %v4660_v6, %v4668_v23  ;;  %v1343_v23 = vld [vmem:[%s12616_s7 + $0x8] sm:$0x1f] }
 0xd4b   : > { %9269 = vmatmul.mubr.msk.bf16.vlgmr.msra.gmra.mrb[56].mxu0 %vm5295_vm8, %v5384_v29 }
 0xd4c   : > { %9279 = vmatpush3.bf16.msra.mxu0 %v5497_v2  ;;  %9280 = vmatprep.mubr.msk.bf16.mxu0 %vm10564_vm1, %v10563_v5  ;;  %v9862_v52 = vpop.eup %9861  ;;  %v4759_v16 = vrot.slane %v4752_v49, %v11159_v32  ;;  %v6147_v2 = vunpack.c.0.s8 %v6146_v21 }
 0xd4d   : > { %9290 = vmatprep.subr.bf16.mxu0 %v10563_v5  ;;  %v5375_v14 = vmul.f32 %v9862_v52, %v11858_v63 }
 0xd4e   : > { %v5361_v53 = vpop.xlane.xlu1 %5360 }
 0xd4f   : > { %v5387_v56 = vpack.c.bf16 %v5375_v14, %v5375_v14  ;;  %9865 = vrcp.f32 %v5361_v53  ;;  %v6150_v14 = vsub.s32 %v6147_v2, %v11155_v28  ;;  %v1342_v53 = vld [vmem:[%s12616_s7] sm:$0x1f]  ;;  %v9790_v2 = vld [vmem:[%s6223_s26 + $0x8] sm:$0xff]  }
 0xd50   : > { %v9864_v61 = vpop.eup %9863 }
 0xd51   : > { %v5373_v7 = vmul.f32 %v9864_v61, %v11862_v24  ;;  %9287 = vmatmul.mubr.msk.bf16.vlgmr.msra.gmra.mrb[60].mxu1 %vm5295_vm8, %v5387_v56  ;;  %v4740_v24 = vrot.slane %v4726_v40, %v11171_v41  ;;  %v6144_v56 = vcombine.high %v1342_v53, %v1342_v53  ;;  %v6151_v61 = vrot.slane %v1342_v53, %v6150_v14 }
 0xd52   : > { %v4664_v60 = vpop.permute.xlu1 %4663  ;;  %9298 = vmatprep.mubr.msk.bf16.mxu1 %vm10564_vm1, %v10563_v5  ;;  %v6190_v49 = vrot.slane %v1343_v23, %v6150_v14 }
 0xd53   : > { %v4744_v51 = vcombine.low %v4656_v15, %v4664_v60  ;;  %v5386_v47 = vpack.c.bf16 %v5373_v7, %v5373_v7  ;;  %v6158_v7 = vrot.slane %v6144_v56, %v6150_v14  ;;  %v6159_v60 = vcombine.high %v6151_v61, %v6151_v61 }
 0xd55   : > { %v4751_v27 = vrot.slane %v4744_v51, %v11159_v32  ;;  %9281 = vmatmul.mubr.msk.bf16.vlgmr.msra.gmra.mrb[60].mxu0 %vm5295_vm8, %v5386_v47  ;;  %v6198_v51 = vcombine.high %v6190_v49, %v6190_v49  ;;  %v6205_v47 = vrot.slane %v6190_v49, %v6150_v14 }
 0xd56   : > { %9292 = vmatprep.mubr.msk.bf16.mxu0 %vm10564_vm1, %v10563_v5 }
 0xd57   : > { %v4760_v63 = vcombine.low %v4751_v27, %v4759_v16  ;;  %v4761_v17 = vcombine.high %v4751_v27, %v4759_v16  ;;  %v6166_v16 = vrot.slane %v6151_v61, %v6150_v14  ;;  %v6183_v27 = vcombine.high %v1343_v23, %v1343_v23 }
 0xd58   : > { %v6219_v28 = vrot.slane %v6198_v51, %v6150_v14 }
 0xd59   : > { %v4768_v59 = vrot.slane %v4760_v63, %v11171_v41  ;;  %v4775_v20 = vrot.slane %v4761_v17, %v11171_v41  ;;  %v9866_v15 = vpop.eup %9865  ;;  %v6173_v63 = vrot.slane %v6158_v7, %v6150_v14  ;;  %v6180_v17 = vrot.slane %v6159_v60, %v6150_v14 }
 0xd5a   : > { %v5379_v10 = vmul.f32 %v9866_v15, %v11866_v48 }
 0xd5b   : > { %v4844_v57 = vcombine.low %v4740_v24, %v4768_v59  ;;  %v8862_v3 = vcombine.high %v4740_v24, %v4768_v59  ;;  %v4867_v55 = vcombine.high %v4775_v20, %v10563_v5  ;;  %v4866_v18 = vrot.slane %v4775_v20, %v11159_v32 }
 0xd5c   : > { %v5389_v52 = vpack.c.bf16 %v5379_v10, %v5379_v10  ;;  %v6220_v24 = vcombine.high %v6205_v47, %v6205_v47  ;;  %v6197_v59 = vrot.slane %v6183_v27, %v6150_v14 }
 0xd5d   : > { %v4851_v58 = vrot.slane %v4844_v57, %v11159_v32  ;;  %v4859_v39 = vrot.slane %v8862_v3, %v11159_v32  ;;  %v4874_v44 = vrot.slane %v4867_v55, %v11159_v32  ;;  %v6228_v57 = vcombine.low %v6166_v16, %v6180_v17 }
 0xd5e   : > { %v8889_v3 = vcombine.high %v6166_v16, %v6180_v17  ;;  %v6230_v55 = vcombine.low %v6173_v63, %v6205_v47 }
 0xd5f   : > { %v4875_v33 = vcombine.low %v4851_v58, %v4859_v39  ;;  %v4891_v36 = vcombine.low %v4866_v18, %v4874_v44  ;;  %v4876_v19 = vcombine.high %v4851_v58, %v4859_v39  ;;  %v4892_v37 = vcombine.high %v4866_v18, %v4874_v44 }
 0xd60   : > { %v6231_v58 = vcombine.low %v6219_v28, %v6220_v24  ;;  %v6212_v39 = vrot.slane %v6197_v59, %v6150_v14  ;;  %v6221_v18 = vcombine.high %v6219_v28, %v6219_v28  ;;  %v6238_v44 = vrot.slane %v6228_v57, %v6150_v14 }
 0xd61   : > { %v4883_v40 = vrot.slane %v4875_v33, %v11171_v41  ;;  %v4899_v6 = vrot.slane %v4891_v36, %v11171_v41  ;;  %v11930_v54 = vrot.slane %v4876_v19, %v11171_v41  ;;  %v11933_v1 = vrot.slane %v4892_v37, %v11171_v41 }
 0xd62   : > { %v6245_v33 = vrot.slane %v8889_v3, %v6150_v14  ;;  %v6252_v36 = vrot.slane %v6230_v55, %v6150_v14  ;;  %v6259_v19 = vrot.slane %v6231_v58, %v6150_v14  ;;  %v6277_v15 = vcombine.low %v6221_v18, %v6212_v39 }
 0xd63   : > { %v4907_v42 = vcombine.low %v4883_v40, %v4899_v6  ;;  %v4908_v8 = vcombine.high %v4883_v40, %v4899_v6  ;;  %v4910_v35 = vcombine.high %v11930_v54, %v11933_v1 }
 0xd64   : > { %v6260_v40 = vcombine.low %v6238_v44, %v6245_v33  ;;  %v6261_v6 = vcombine.low %v6252_v36, %v6259_v19  ;;  %v6284_v10 = vrot.slane %v6277_v15, %v6150_v14 }
 0xd65   : > { %v5396_v4 = vpack.c.bf16 %v4907_v42, %v4907_v42  ;;  %v5397_v50 = vpack.c.bf16 %v4908_v8, %v4908_v8  ;;  %v5399_v29 = vpack.c.bf16 %v4910_v35, %v4910_v35 }
 0xd66   : > { %v6268_v9 = vrot.slane %v6260_v40, %v6150_v14  ;;  %v6275_v21 = vrot.slane %v6261_v6, %v6150_v14 }
 0xd67   : > { %v5589_v22 = vsel %vm5403_vm7, %v5396_v4, 0  ;;  %v5635_v46 = vsel %vm5403_vm7, %v5397_v50, 0  ;;  %v5727_v48 = vsel %vm5403_vm7, %v5399_v29, 0  ;;  %v9789_v4 = vld [vmem:[%s6223_s26] sm:$0xff]   ;;  %v6291_v29 = vrot.slane %v6284_v10, %v6150_v14  ;;  %s8004_s26 = scalar_lea.vmem [#allocation23], %s11094_s10 }
 0xd68   : > { %9291 = vmatpush3.bf16.msra.mxu0 %v5589_v22  ;;  %9297 = vmatpush3.bf16.msra.mxu1 %v5635_v46  ;;  %v4909_v22 = vcombine.low %v11930_v54, %v11933_v1  ;;  %v6276_v46 = vcombine.low %v6268_v9, %v6275_v21 }
 0xd69   : > { %9308 = vmatprep.subr.bf16.mxu1 %v10563_v5  ;;  %9302 = vmatprep.subr.bf16.mxu0 %v10563_v5 }
 0xd6a   : > { %v6294_v53 = vpack.c.bf16 %v6291_v29, %v6276_v46 }
 0xd6b   : > { %9299 = vmatmul.mubr.msk.bf16.vlgmr.msra.gmra.mrb[64].mxu1 %vm5295_vm8, %v5389_v52 }
 0xd6c   : > { %9309 = vmatpush3.bf16.msra.mxu1 %v5727_v48  ;;  %9310 = vmatprep.mubr.msk.bf16.mxu1 %vm10564_vm1, %v10563_v5  ;;  %v5398_v48 = vpack.c.bf16 %v4909_v22, %v4909_v22 }
 0xd6d   : > { %9322 = vmatprep.subr.bf16.mxu1 %v10563_v5 }
 0xd6e   : > { %v5681_v1 = vsel %vm5403_vm7, %v5398_v48, 0 }
 0xd7a   : > { %v5367_v20 = vpop.xlane.xlu0 %5366 }
 0xd7b   : > { %9867 = vrcp.f32 %v5367_v20 }
 0xd7e   : > { %v5364_v42 = vpop.xlane.xlu0 %5363 }
 0xd83   : > { %v5358_v37 = vpop.xlane.xlu1 %5357 }
 0xd84   : > { %9869 = vrcp.f32 %v5358_v37 }
 0xd85   : > { %v9868_v8 = vpop.eup %9867  ;;  %9871 = vrcp.f32 %v5364_v42 }
 0xd86   : > { %v5383_v35 = vmul.f32 %v9868_v8, %v11875_v25 }
 0xd88   : > { %v5391_v50 = vpack.c.bf16 %v5383_v35, %v5383_v35 }
 0xd8a   : > { %9311 = vmatmul.mubr.msk.bf16.vlgmr.msra.gmra.mrb[68].mxu1 %vm5295_vm8, %v5391_v50 }
 0xd8b   : > { %9323 = vmatpush3.bf16.msra.mxu1 %v9789_v4  ;;  %9326 = vmatprep.mubr.msk.bf16.mxu1 %vm10564_vm1, %v10563_v5 }
 0xd8c   : > { %9324 = vmatprep.subr.bf16.mxu1 %v10563_v5 }
 0xd8e   : > { %v9870_v25 = vpop.eup %9869 }
 0xd8f   : > { %v5377_v52 = vmul.f32 %v9870_v25, %v11883_v62  ;;  %9325 = vmatpush3.bf16.msra.mxu1 %v9790_v2  ;;  %v9872_v54 = vpop.eup %9871 }
 0xd90   : > { %9336 = vmatprep.subr.bf16.mxu1 %v10563_v5  ;;  %v5381_v14 = vmul.f32 %v9872_v54, %v11879_v45 }
 0xd91   : > { %v5388_v23 = vpack.c.bf16 %v5377_v52, %v5377_v52 }
 0xd92   : > { %9327 = vmatmul.mubr.msk.bf16.vlgmr.msra.gmra.mrb[72].mxu1 %vm1377_vm2, %v6294_v53  ;;  %v5390_v62 = vpack.c.bf16 %v5381_v14, %v5381_v14 }
 0xd93   : > { %9293 = vmatmul.mubr.msk.bf16.vlgmr.msra.gmra.mrb[64].mxu0 %vm5295_vm8, %v5388_v23  ;;  %9338 = vmatprep.mubr.msk.bf16.mxu1 %vm10564_vm1, %v10563_v5 }
 0xd94   : > { %9303 = vmatpush3.bf16.msra.mxu0 %v5681_v1  ;;  %9304 = vmatprep.mubr.msk.bf16.mxu0 %vm10564_vm1, %v10563_v5 }
 0xd95   : > { %9314 = vmatprep.subr.bf16.mxu0 %v10563_v5 }
 0xd9b   : > { %9305 = vmatmul.mubr.msk.bf16.vlgmr.msra.gmra.mrb[68].mxu0 %vm5295_vm8, %v5390_v62 }
 0xd9c   : > { %9318 = vmatprep.mubr.msk.bf16.mxu0 %vm10564_vm1, %v10563_v5 }
 0xe1a   : > { %v5487_v56 = vpop.f32.mrb[56].mxu1 }
 0xe1b   : > { %v9276_v61 = vpop.f32.mrb[57].mxu1 }
 0xe1c   : > { %v5490_v49 = vpop.f32.mrb[58].mxu1 }
 0xe1d   : > { %v9277_v7 = vpop.f32.mrb[59].mxu1 }
 0xe1e   : > { %v5441_v60 = vpop.f32.mrb[56].mxu0 }
 0xe1f   : > { %v9270_v51 = vpop.f32.mrb[57].mxu0 }
 0xe20   : > { %v5444_v47 = vpop.f32.mrb[58].mxu0 }
 0xe21   : > { %v9271_v16 = vpop.f32.mrb[59].mxu0 }
 0xe24   : > { %v5579_v45 = vpop.f32.mrb[60].mxu1 }
 0xe25   : > { %v5785_v27 = vcombine.low %v5487_v56, %v5579_v45  ;;  %v5786_v63 = vcombine.high %v5487_v56, %v5579_v45  ;;  %v9288_v17 = vpop.f32.mrb[61].mxu1 }
 0xe26   : > { %v5582_v28 = vpop.f32.mrb[62].mxu1  ;;  %v8890_v17 = vld [vmem:[%s6295_s22] ss:$0 sm:$0xff]  ;;  %s12619_s22 = sld [smem:[#allocation60_spill]] }
 0xe27   : > { %v9289_v24 = vpop.f32.mrb[63].mxu1  ;;  %v5793_v58 = vrot.slane %v5785_v27, %v11159_v32  ;;  %v5800_v39 = vrot.slane %v5786_v63, %v11159_v32 }
 0xe28   : > { %v5533_v59 = vpop.f32.mrb[60].mxu0 }
 0xe29   : > { %v5769_v20 = vcombine.low %v5441_v60, %v5533_v59  ;;  %v5770_v57 = vcombine.high %v5441_v60, %v5533_v59  ;;  %v9282_v3 = vpop.f32.mrb[61].mxu0 }
 0xe2a   : > { %v5536_v55 = vpop.f32.mrb[62].mxu0 }
 0xe2b   : > { %v5777_v18 = vrot.slane %v5769_v20, %v11159_v32  ;;  %v5784_v44 = vrot.slane %v5770_v57, %v11159_v32  ;;  %v9283_v33 = vpop.f32.mrb[63].mxu0 }
 0xe2d   : > { %v5801_v36 = vcombine.low %v5777_v18, %v5793_v58  ;;  %v5802_v19 = vcombine.high %v5777_v18, %v5793_v58  ;;  %v5817_v37 = vcombine.low %v5784_v44, %v5800_v39  ;;  %v5818_v40 = vcombine.high %v5784_v44, %v5800_v39 }
 0xe2f   : > { %v5809_v6 = vrot.slane %v5801_v36, %v11171_v41  ;;  %v5816_v15 = vrot.slane %v5802_v19, %v11171_v41  ;;  %v5825_v42 = vrot.slane %v5817_v37, %v11171_v41  ;;  %v5832_v8 = vrot.slane %v5818_v40, %v11171_v41 }
 0xe31   : > { %v5905_v35 = vcombine.low %v5809_v6, %v5816_v15  ;;  %v8879_v9 = vcombine.high %v5809_v6, %v5816_v15  ;;  %v5921_v21 = vcombine.low %v5825_v42, %v5832_v8  ;;  %v8880_v10 = vcombine.high %v5825_v42, %v5832_v8 }
 0xe33   : > { %v5912_v4 = vrot.slane %v5905_v35, %v11159_v32  ;;  %v5920_v50 = vrot.slane %v8879_v9, %v11159_v32  ;;  %v5928_v22 = vrot.slane %v5921_v21, %v11159_v32  ;;  %v5936_v46 = vrot.slane %v8880_v10, %v11159_v32 }
 0xe35   : > { %v5938_v29 = vcombine.high %v5912_v4, %v5920_v50  ;;  %v5954_v2 = vcombine.high %v5928_v22, %v5936_v46  ;;  %v5937_v25 = vcombine.low %v5912_v4, %v5920_v50  ;;  %v5953_v52 = vcombine.low %v5928_v22, %v5936_v46 }
 0xe37   : > { %v11988_v48 = vrot.slane %v5938_v29, %v11171_v41  ;;  %v11991_v53 = vrot.slane %v5954_v2, %v11171_v41  ;;  %v11994_v23 = vrot.slane %v5937_v25, %v11171_v41  ;;  %v11997_v54 = vrot.slane %v5953_v52, %v11171_v41  ;;  %v9794_v52 = vld [vmem:[%s6072_s5 + $0x8] sm:$0xff]  }
 0xe39   : > { %v5971_v1 = vcombine.low %v11988_v48, %v11991_v53  ;;  %v5969_v14 = vcombine.low %v11994_v23, %v11997_v54  ;;  %v5970_v62 = vcombine.high %v11994_v23, %v11997_v54  ;;  %v5972_v56 = vcombine.high %v11988_v48, %v11991_v53  ;;  %v3972_v48 = vpop.permute.xlu1 %3971  ;;  %v3976_v53 = vpop.permute.xlu0 %3975 }
 0xe3e   : > { %v5671_v61 = vpop.f32.mrb[64].mxu1 }
 0xe3f   : > { %v9300_v49 = vpop.f32.mrb[65].mxu1 }
 0xe40   : > { %v5674_v7 = vpop.f32.mrb[66].mxu1 }
 0xe41   : > { %v9301_v60 = vpop.f32.mrb[67].mxu1 }
 0xe5d   : > { %v5763_v51 = vpop.f32.mrb[68].mxu1 }
 0xe5e   : > { %v5853_v47 = vcombine.low %v5671_v61, %v5763_v51  ;;  %v5854_v16 = vcombine.high %v5671_v61, %v5763_v51  ;;  %v9312_v45 = vpop.f32.mrb[69].mxu1 }
 0xe5f   : > { %v5766_v27 = vpop.f32.mrb[70].mxu1 }
 0xe60   : > { %v9313_v63 = vpop.f32.mrb[71].mxu1  ;;  %v5861_v37 = vrot.slane %v5853_v47, %v11159_v32  ;;  %v5868_v6 = vrot.slane %v5854_v16, %v11159_v32 }
 0xe65   : > { %v6352_v24 = vpop.f32.mrb[72].mxu1 }
 0xe66   : > { %v5625_v28 = vpop.f32.mrb[64].mxu0  ;;  %v12008_v20 = vadd.f32 %v8890_v17, %v6352_v24  ;;  %v9328_v57 = vpop.f32.mrb[73].mxu1 }
 0xe67   : > { %v9294_v59 = vpop.f32.mrb[65].mxu0  ;;  %v6355_v55 = vpop.f32.mrb[74].mxu1 }
 0xe68   : > { %v5628_v3 = vpop.f32.mrb[66].mxu0  ;;  %6367 = vrot.lane.b32.xlu0 %v12008_v20, %s10567_s23  ;;  %6361 = vrot.lane.b32.xlu1 %v12008_v20, %s10566_s0  ;;  %v9329_v39 = vpop.f32.mrb[75].mxu1  ;;  %v12014_v18 = vadd.f32 %v8890_v17, %v6355_v55 }
 0xe69   : > { %v9295_v58 = vpop.f32.mrb[67].mxu0 }
 0xe6c   : > { %3983 = vrot.lane.b32.xlu0 %v11672_v34, %s10568_s18  ;;  %6373 = vrot.lane.b32.xlu1 %v12008_v20, %s10565_s11  ;;  %v9793_v34 = vld [vmem:[%s6072_s5] sm:$0xff]   ;;  %s8010_s5 = scalar_lea.vmem [#allocation25], %s10497_s28 }
 0xe6d   : > { %9315 = vmatpush3.bf16.msra.mxu0 %v9793_v34 }
 0xe6e   : > { %v5717_v44 = vpop.f32.mrb[68].mxu0  ;;  %9316 = vmatprep.subr.bf16.mxu0 %v10563_v5 }
 0xe6f   : > { %v5837_v33 = vcombine.low %v5625_v28, %v5717_v44  ;;  %v5838_v36 = vcombine.high %v5625_v28, %v5717_v44  ;;  %v9306_v19 = vpop.f32.mrb[69].mxu0 }
 0xe70   : > { %v5720_v40 = vpop.f32.mrb[70].mxu0  ;;  %3979 = vrot.lane.b32.xlu1 %v11662_v13, %s10568_s18  ;;  %6369 = vrot.lane.b32.xlu0 %v12014_v18, %s10567_s23  ;;  %s12618_s23 = sld [smem:[#allocation59_spill]] }
 0xe71   : > { %v5845_v15 = vrot.slane %v5837_v33, %v11159_v32  ;;  %v5852_v42 = vrot.slane %v5838_v36, %v11159_v32  ;;  %v9307_v8 = vpop.f32.mrb[71].mxu0  ;;  %9317 = vmatpush3.bf16.msra.mxu0 %v9794_v52 }
 0xe72   : > { %9330 = vmatprep.subr.bf16.mxu0 %v10563_v5 }
 0xe73   : > { %v5869_v35 = vcombine.low %v5845_v15, %v5861_v37  ;;  %v5870_v9 = vcombine.high %v5845_v15, %v5861_v37  ;;  %v5885_v21 = vcombine.low %v5852_v42, %v5868_v6  ;;  %v5886_v10 = vcombine.high %v5852_v42, %v5868_v6 }
 0xe74   : > { %6363 = vrot.lane.b32.xlu1 %v12014_v18, %s10566_s0  ;;  %s12617_s0 = smov 24  }
 0xe75   : > { %v5877_v4 = vrot.slane %v5869_v35, %v11171_v41  ;;  %v5884_v50 = vrot.slane %v5870_v9, %v11171_v41  ;;  %v5893_v22 = vrot.slane %v5885_v21, %v11171_v41  ;;  %v5900_v46 = vrot.slane %v5886_v10, %v11171_v41 }
 0xe77   : > { %v5973_v13 = vcombine.low %v5877_v4, %v5884_v50  ;;  %v8881_v29 = vcombine.high %v5877_v4, %v5884_v50  ;;  %v5989_v2 = vcombine.low %v5893_v22, %v5900_v46  ;;  %v8882_v25 = vcombine.high %v5893_v22, %v5900_v46 }
 0xe79   : > { %v5980_v61 = vrot.slane %v5973_v13, %v11159_v32  ;;  %v5988_v49 = vrot.slane %v8881_v29, %v11159_v32  ;;  %v5996_v7 = vrot.slane %v5989_v2, %v11159_v32  ;;  %v6004_v60 = vrot.slane %v8882_v25, %v11159_v32 }
 0xe7b   : > { %v6006_v51 = vcombine.high %v5980_v61, %v5988_v49  ;;  %v6022_v47 = vcombine.high %v5996_v7, %v6004_v60  ;;  %v6005_v16 = vcombine.low %v5980_v61, %v5988_v49  ;;  %v6021_v45 = vcombine.low %v5996_v7, %v6004_v60 }
 0xe7d   : > { %v6020_v27 = vrot.slane %v6006_v51, %v11171_v41  ;;  %v6036_v63 = vrot.slane %v6022_v47, %v11171_v41  ;;  %v12044_v17 = vrot.slane %v6005_v16, %v11171_v41  ;;  %v12047_v28 = vrot.slane %v6021_v45, %v11171_v41 }
 0xe7f   : > { %v6039_v24 = vcombine.low %v6020_v27, %v6036_v63  ;;  %v6038_v59 = vcombine.high %v12044_v17, %v12047_v28  ;;  %v6037_v57 = vcombine.low %v12044_v17, %v12047_v28  ;;  %v6040_v3 = vcombine.high %v6020_v27, %v6036_v63 }
 0xe81   : > { %v9754_v55 = vpack.i.bf16 %v6039_v24, %v5971_v1  ;;  %v9749_v58 = vpack.i.bf16 %v6038_v59, %v5970_v62  ;;  %v9759_v39 = vpack.i.bf16 %v6040_v3, %v5972_v56 }
 0xe83   : > { %9755 = vrot.lane.b32.xlu0 %v9754_v55, %s10573_s8  ;;  %9750 = vrot.lane.b32.xlu1 %v9749_v58, %s10574_s6 }
 0xe87   : > { %9760 = vrot.lane.b32.xlu0 %v9759_v39, %s12617_s0  ;;  %6375 = vrot.lane.b32.xlu1 %v12014_v18, %s10565_s11  ;;  %s6078_s11 = scalar_lea.vmem [#allocation19], %s10497_s28 }
 0xe8b   : > { %3977 = vrot.lane.b32.xlu0 %v11698_v38, %s10568_s18  ;;  %3973 = vrot.lane.b32.xlu1 %v11648_v11, %s10568_s18 }
 0xe8f   : > { %3985 = vrot.lane.b32.xlu0 %v11718_v0, %s10568_s18  ;;  %3981 = vrot.lane.b32.xlu1 %v11696_v30, %s10568_s18 }
 0xe93   : > { %6588 = vrot.lane.b32.xlu0 %v12008_v20, %s10568_s18 }
 0xeda   : > { %v6362_v1 = vpop.permute.xlu1 %6361  ;;  %v6368_v62 = vpop.permute.xlu0 %6367 }
 0xedb   : > { %6592 = vrot.lane.b32.xlu1 %v6362_v1, %s10568_s18  ;;  %v6379_v38 = vcombine.low %v12008_v20, %v6368_v62  ;;  %v6380_v56 = vcombine.high %v12008_v20, %v6368_v62 }
 0xedd   : > { %v6387_v30 = vrot.slane %v6379_v38, %v11159_v32  ;;  %v12084_v36 = vrot.slane %v6380_v56, %v11159_v32 }
 0xede   : > { %v6374_v11 = vpop.permute.xlu1 %6373  ;;  %v3984_v0 = vpop.permute.xlu0 %3983 }
 0xedf   : > { %v6395_v44 = vcombine.low %v6362_v1, %v6374_v11  ;;  %v6396_v33 = vcombine.high %v6362_v1, %v6374_v11  ;;  %6600 = vrot.lane.b32.xlu0 %v6374_v11, %s10568_s18  ;;  %6596 = vrot.lane.b32.xlu1 %v6368_v62, %s10568_s18  ;;  %v4011_v40 = vcombine.low %v3976_v53, %v3984_v0 }
 0xee0   : > { %v4012_v20 = vcombine.high %v3976_v53, %v3984_v0 }
 0xee1   : > { %v6403_v19 = vrot.slane %v6395_v44, %v11159_v32  ;;  %v12088_v37 = vrot.slane %v6396_v33, %v11159_v32  ;;  %v4019_v4 = vrot.slane %v4011_v40, %v11159_v32 }
 0xee2   : > { %v3980_v6 = vpop.permute.xlu1 %3979  ;;  %v4026_v50 = vrot.slane %v4012_v20, %v11159_v32  ;;  %v12117_v0 = vpop.permute.xlu0 %6369 }
 0xee3   : > { %v6411_v15 = vcombine.low %v6387_v30, %v6403_v19  ;;  %v6412_v42 = vcombine.high %v6387_v30, %v6403_v19  ;;  %v6427_v8 = vcombine.low %v12084_v36, %v12088_v37  ;;  %v3995_v34 = vcombine.low %v3972_v48, %v3980_v6 }
 0xee4   : > { %v3996_v35 = vcombine.high %v3972_v48, %v3980_v6 }
 0xee5   : > { %v6419_v9 = vrot.slane %v6411_v15, %v11171_v41  ;;  %v6426_v21 = vrot.slane %v6412_v42, %v11171_v41  ;;  %v12095_v10 = vrot.slane %v6427_v8, %v11171_v41  ;;  %v4003_v22 = vrot.slane %v3995_v34, %v11159_v32 }
 0xee6   : > { %v4010_v46 = vrot.slane %v3996_v35, %v11159_v32  ;;  %v12119_v30 = vpop.permute.xlu1 %6363  ;;  %v6428_v8 = vcombine.high %v12084_v36, %v12088_v37 }
 0xee7   : > { %v6471_v13 = vcombine.low %v6419_v9, %v6426_v21  ;;  %v8894_v29 = vcombine.high %v6419_v9, %v6426_v21  ;;  %v4027_v2 = vcombine.low %v4003_v22, %v4019_v4  ;;  %v4028_v25 = vcombine.high %v4003_v22, %v4019_v4 }
 0xee8   : > { %v4043_v52 = vcombine.low %v4010_v46, %v4026_v50  ;;  %v4044_v61 = vcombine.high %v4010_v46, %v4026_v50  ;;  %v6493_v60 = vrot.slane %v12095_v10, %v11159_v32  ;;  %v6447_v46 = vcombine.low %v12014_v18, %v12117_v0 }
 0xee9   : > { %v6478_v49 = vrot.slane %v6471_v13, %v11159_v32  ;;  %v6486_v7 = vrot.slane %v8894_v29, %v11159_v32  ;;  %v4035_v51 = vrot.slane %v4027_v2, %v11171_v41  ;;  %v4042_v47 = vrot.slane %v4028_v25, %v11171_v41 }
 0xeea   : > { %v4051_v16 = vrot.slane %v4043_v52, %v11171_v41  ;;  %v4058_v45 = vrot.slane %v4044_v61, %v11171_v41  ;;  %v6517_v39 = vrot.slane %v6493_v60, %v11171_v41  ;;  %v6510_v48 = vcombine.high %v6493_v60, %v10563_v5 }
 0xeeb   : > { %v6494_v27 = vcombine.low %v6478_v49, %v6486_v7  ;;  %v6495_v63 = vcombine.high %v6478_v49, %v6486_v7  ;;  %v4131_v24 = vcombine.low %v4035_v51, %v4042_v47  ;;  %v8850_v59 = vcombine.high %v4035_v51, %v4042_v47 }
 0xeec   : > { %v4147_v3 = vcombine.low %v4051_v16, %v4058_v45  ;;  %v8851_v55 = vcombine.high %v4051_v16, %v4058_v45  ;;  %v6524_v40 = vrot.slane %v6510_v48, %v11171_v41  ;;  %v6442_v52 = vrot.slane %v6428_v8, %v11171_v41 }
 0xeed   : > { %v6502_v58 = vrot.slane %v6494_v27, %v11171_v41  ;;  %v4138_v53 = vrot.slane %v4131_v24, %v11159_v32  ;;  %v4146_v1 = vrot.slane %v8850_v59, %v11159_v32  ;;  %v6509_v11 = vrot.slane %v6495_v63, %v11171_v41 }
 0xeee   : > { %v4154_v62 = vrot.slane %v4147_v3, %v11159_v32  ;;  %v4162_v38 = vrot.slane %v8851_v55, %v11159_v32  ;;  %v6454_v17 = vrot.slane %v6447_v46, %v11159_v32  ;;  %v8895_v48 = vcombine.high %v12095_v10, %v6442_v52 }
 0xeef   : > { %v6526_v56 = vcombine.high %v6502_v58, %v6517_v39  ;;  %v4163_v44 = vcombine.low %v4138_v53, %v4146_v1  ;;  %v6528_v42 = vcombine.high %v6509_v11, %v6524_v40  ;;  %v4164_v34 = vcombine.high %v4138_v53, %v4146_v1 }
 0xef0   : > { %v4179_v33 = vcombine.low %v4154_v62, %v4162_v38  ;;  %v4180_v35 = vcombine.high %v4154_v62, %v4162_v38  ;;  %v6525_v2 = vcombine.low %v6502_v58, %v6517_v39  ;;  %v6527_v55 = vcombine.low %v6509_v11, %v6524_v40 }
 0xef1   : > { %v6830_v19 = vpack.c.bf16 %v6526_v56, %v6526_v56  ;;  %v4171_v20 = vrot.slane %v4163_v44, %v11171_v41  ;;  %v6832_v25 = vpack.c.bf16 %v6528_v42, %v6528_v42  ;;  %v12142_v7 = vrot.slane %v4164_v34, %v11171_v41 }
 0xef2   : > { %v4187_v6 = vrot.slane %v4179_v33, %v11171_v41  ;;  %v4194_v60 = vrot.slane %v4180_v35, %v11171_v41  ;;  %v6829_v47 = vpack.c.bf16 %v6525_v2, %v6525_v2  ;;  %v6831_v11 = vpack.c.bf16 %v6527_v55, %v6527_v55 }
 0xef3   : > { %v6887_v15 = vsel %vm2322_vm3, %v6830_v19, 0  ;;  %v6979_v63 = vsel %vm2322_vm3, %v6832_v25, 0  ;;  %v6536_v8 = vrot.slane %v8895_v48, %v11159_v32 }
 0xef4   : > { %9337 = vmatpush3.bf16.xpose.msra.mxu1 %v6887_v15  ;;  %v4196_v22 = vcombine.high %v4171_v20, %v4187_v6  ;;  %v4198_v58 = vcombine.high %v12142_v7, %v4194_v60  ;;  %v6841_v53 = vsel %vm2322_vm3, %v6829_v47, 0  ;;  %v4195_v56 = vcombine.low %v4171_v20, %v4187_v6 }
 0xef5   : > { %v9756_v9 = vpop.permute.xlu0 %9755  ;;  %v9751_v21 = vpop.permute.xlu1 %9750  ;;  %9348 = vmatprep.subr.bf16.mxu1 %v10563_v5  ;;  %v4197_v25 = vcombine.low %v12142_v7, %v4194_v60 }
 0xef6   : > { %v9753_v4 = vunpack.i.h.bf16 %v9751_v21  ;;  %v9752_v50 = vunpack.i.l.bf16 %v9751_v21  ;;  %v9758_v13 = vunpack.i.h.bf16 %v9756_v9  ;;  %v9757_v29 = vunpack.i.l.bf16 %v9756_v9 }
 0xef7   : > { %v6824_v44 = vpack.c.bf16 %v4198_v58, %v4198_v58 }
 0xef8   : > { %v6065_v36 = vsel %vm2322_vm3, %v5969_v14, %v9752_v50  ;;  %v6066_v37 = vsel %vm2322_vm3, %v6037_v57, %v9753_v4  ;;  %v6822_v14 = vpack.c.bf16 %v4196_v22, %v4196_v22  ;;  %v6821_v4 = vpack.c.bf16 %v4195_v56, %v4195_v56 }
 0xef9   : > { %v9761_v61 = vpop.permute.xlu0 %9760  ;;  %v12139_v49 = vpop.permute.xlu1 %6375  ;;  %v6067_v28 = vsel %vm3470_vm5, %v6065_v36, %v9757_v29  ;;  %v6068_v57 = vsel %vm3470_vm5, %v6066_v37, %v9758_v13  ;;  %v6933_v50 = vsel %vm2322_vm3, %v6831_v11, 0 }
 0xefa   : > { %v9763_v51 = vunpack.i.h.bf16 %v9761_v61  ;;  %v9762_v23 = vunpack.i.l.bf16 %v9761_v61  ;;  %v6455_v54 = vcombine.low %v12119_v30, %v12139_v49 }
 0xefb   : > { %9339 = vmatmul.mubr.msk.bf16.vlgmr.msra.gmra.mrb[76].mxu1 %vm2322_vm3, %v6822_v14 }
 0xefc   : > { %v6069_v16 = vsel %vm3473_vm6, %v6067_v28, %v9762_v23  ;;  %v6070_v45 = vsel %vm3473_vm6, %v6068_v57, %v9763_v51  ;;  %v6462_v27 = vrot.slane %v6455_v54, %v11159_v32  ;;  %9349 = vmatpush3.bf16.xpose.msra.mxu1 %v6979_v63  ;;  %9350 = vmatprep.mubr.msk.bf16.mxu1 %vm10564_vm1, %v10563_v5 }
 0xefd   : > { %v6077_v24 = vpack.c.bf16 %v6070_v45, %v6069_v16  ;;  %v3978_v59 = vpop.permute.xlu0 %3977  ;;  %v3974_v3 = vpop.permute.xlu1 %3973  ;;  %9360 = vmatprep.subr.bf16.mxu1 %v10563_v5 }
 0xefe   : > { %v6463_v39 = vcombine.low %v6454_v17, %v6462_v27  ;;  %v6823_v27 = vpack.c.bf16 %v4197_v25, %v4197_v25 }
 0xeff   : > { %9319 = vmatmul.mubr.msk.bf16.vlgmr.msra.gmra.mrb[72].mxu0 %vm1377_vm2, %v6077_v24 }
 0xf00   : > { %v6470_v1 = vrot.slane %v6463_v39, %v11171_v41  ;;  %9331 = vmatpush3.bf16.xpose.msra.mxu0 %v6841_v53  ;;  %9332 = vmatprep.mubr.msk.bf16.mxu0 %vm10564_vm1, %v10563_v5 }
 0xf01   : > { %v3986_v62 = vpop.permute.xlu0 %3985  ;;  %v3982_v38 = vpop.permute.xlu1 %3981  ;;  %9342 = vmatprep.subr.bf16.mxu0 %v10563_v5 }
 0xf02   : > { %v6537_v33 = vcombine.low %v6442_v52, %v6470_v1  ;;  %v6545_v10 = vcombine.high %v6470_v1, %v10563_v5  ;;  %v4079_v19 = vcombine.low %v3978_v59, %v3986_v62  ;;  %v4080_v40 = vcombine.high %v3978_v59, %v3986_v62 }
 0xf03   : > { %v4063_v15 = vcombine.low %v3974_v3, %v3982_v38  ;;  %v4064_v42 = vcombine.high %v3974_v3, %v3982_v38  ;;  %9351 = vmatmul.mubr.msk.bf16.vlgmr.msra.gmra.mrb[80].mxu1 %vm2322_vm3, %v6824_v44 }
 0xf04   : > { %v6544_v34 = vrot.slane %v6537_v33, %v11159_v32  ;;  %v4087_v35 = vrot.slane %v4079_v19, %v11159_v32  ;;  %v4094_v9 = vrot.slane %v4080_v40, %v11159_v32  ;;  %v6552_v20 = vrot.slane %v6545_v10, %v11159_v32  ;;  %9362 = vmatprep.mubr.msk.bf16.mxu1 %vm10564_vm1, %v10563_v5 }
 0xf05   : > { %v4071_v6 = vrot.slane %v4063_v15, %v11159_v32  ;;  %v4078_v21 = vrot.slane %v4064_v42, %v11159_v32 }
 0xf06   : > { %v6553_v22 = vcombine.low %v6536_v8, %v6544_v34  ;;  %v6554_v46 = vcombine.high %v6536_v8, %v6544_v34  ;;  %v6569_v13 = vcombine.high %v6552_v20, %v10563_v5  ;;  %v6576_v61 = vrot.slane %v6552_v20, %v11171_v41 }
 0xf07   : > { %v4095_v29 = vcombine.low %v4071_v6, %v4087_v35  ;;  %v4096_v2 = vcombine.high %v4071_v6, %v4087_v35  ;;  %v4111_v36 = vcombine.low %v4078_v21, %v4094_v9  ;;  %v4112_v37 = vcombine.high %v4078_v21, %v4094_v9  ;;  %9333 = vmatmul.mubr.msk.bf16.vlgmr.msra.gmra.mrb[76].mxu0 %vm2322_vm3, %v6821_v4 }
 0xf08   : > { %9343 = vmatpush3.bf16.xpose.msra.mxu0 %v6933_v50  ;;  %9344 = vmatprep.mubr.msk.bf16.mxu0 %vm10564_vm1, %v10563_v5  ;;  %v6561_v52 = vrot.slane %v6553_v22, %v11171_v41  ;;  %v6568_v57 = vrot.slane %v6554_v46, %v11171_v41  ;;  %v6583_v7 = vrot.slane %v6569_v13, %v11171_v41  ;;  %v6589_v22 = vpop.permute.xlu0 %6588 }
 0xf09   : > { %v4103_v51 = vrot.slane %v4095_v29, %v11171_v41  ;;  %v4110_v23 = vrot.slane %v4096_v2, %v11171_v41  ;;  %v4119_v54 = vrot.slane %v4111_v36, %v11171_v41  ;;  %v4126_v14 = vrot.slane %v4112_v37, %v11171_v41  ;;  %9354 = vmatprep.subr.bf16.mxu0 %v10563_v5 }
 0xf0a   : > { %v6584_v17 = vcombine.low %v6561_v52, %v6576_v61  ;;  %v6585_v28 = vcombine.high %v6561_v52, %v6576_v61  ;;  %v6586_v62 = vcombine.low %v6568_v57, %v6583_v7  ;;  %v6587_v38 = vcombine.high %v6568_v57, %v6583_v7 }
 0xf0b   : > { %v4199_v60 = vcombine.low %v4103_v51, %v4110_v23  ;;  %v8852_v47 = vcombine.high %v4103_v51, %v4110_v23  ;;  %v4215_v16 = vcombine.low %v4119_v54, %v4126_v14  ;;  %v8853_v45 = vcombine.high %v4119_v54, %v4126_v14 }
 0xf0c   : > { %v6833_v63 = vpack.c.bf16 %v6584_v17, %v6584_v17  ;;  %v6834_v24 = vpack.c.bf16 %v6585_v28, %v6585_v28  ;;  %v6835_v40 = vpack.c.bf16 %v6586_v62, %v6586_v62  ;;  %v6836_v15 = vpack.c.bf16 %v6587_v38, %v6587_v38 }
 0xf0d   : > { %v4206_v59 = vrot.slane %v4199_v60, %v11159_v32  ;;  %v4214_v3 = vrot.slane %v8852_v47, %v11159_v32  ;;  %v4222_v55 = vrot.slane %v4215_v16, %v11159_v32  ;;  %v4230_v58 = vrot.slane %v8853_v45, %v11159_v32 }
 0xf0e   : > { %v7025_v39 = vsel %vm2322_vm3, %v6833_v63, 0  ;;  %v7071_v48 = vsel %vm2322_vm3, %v6834_v24, 0  ;;  %v7117_v9 = vsel %vm2322_vm3, %v6835_v40, 0  ;;  %v7163_v20 = vsel %vm2322_vm3, %v6836_v15, 0 }
 0xf0f   : > { %v4231_v53 = vcombine.low %v4206_v59, %v4214_v3  ;;  %v4247_v1 = vcombine.low %v4222_v55, %v4230_v58  ;;  %9345 = vmatmul.mubr.msk.bf16.vlgmr.msra.gmra.mrb[80].mxu0 %vm2322_vm3, %v6823_v27  ;;  %v4232_v56 = vcombine.high %v4206_v59, %v4214_v3  ;;  %9361 = vmatpush3.bf16.xpose.msra.mxu1 %v7071_v48 }
 0xf10   : > { %9355 = vmatpush3.bf16.xpose.msra.mxu0 %v7025_v39  ;;  %v4248_v11 = vcombine.high %v4222_v55, %v4230_v58  ;;  %9356 = vmatprep.mubr.msk.bf16.mxu0 %vm10564_vm1, %v10563_v5  ;;  %v10577_v39 = vmov 65535  }
 0xf11   : > { %v4239_v44 = vrot.slane %v4231_v53, %v11171_v41  ;;  %v4255_v33 = vrot.slane %v4247_v1, %v11171_v41  ;;  %9366 = vmatprep.subr.bf16.mxu0 %v10563_v5  ;;  %9372 = vmatprep.subr.bf16.mxu1 %v10563_v5  ;;  %v4246_v34 = vrot.slane %v4232_v56, %v11171_v41  ;;  %v7334_v48 = vsel %vm7333_vm9, 4294967295, %v10577_v39 }
 0xf12   : > { %v4262_v35 = vrot.slane %v4248_v11, %v11171_v41 }
 0xf13   : > { %v4264_v10 = vcombine.high %v4239_v44, %v4255_v33  ;;  %v4263_v19 = vcombine.low %v4239_v44, %v4255_v33 }
 0xf14   : > { %v4266_v6 = vcombine.high %v4246_v34, %v4262_v35  ;;  %v4265_v21 = vcombine.low %v4246_v34, %v4262_v35 }
 0xf15   : > { %v6826_v42 = vpack.c.bf16 %v4264_v10, %v4264_v10  ;;  %v6825_v8 = vpack.c.bf16 %v4263_v19, %v4263_v19  ;;  %v12251_v10 = vsel %vm5403_vm7, %v7334_v48, 0 }
 0xf16   : > { %v6828_v4 = vpack.c.bf16 %v4266_v6, %v4266_v6  ;;  %v6827_v50 = vpack.c.bf16 %v4265_v21, %v4265_v21  ;;  %v8884_v6 = vld [vmem:[%s6078_s11] ss:$0 sm:$0xff]  ;;  %s12620_s11 = sld [smem:[#allocation61_spill]] }
 0xf17   : > { %9363 = vmatmul.mubr.msk.bf16.vlgmr.msra.gmra.mrb[84].mxu1 %vm2322_vm3, %v6826_v42  ;;  %9357 = vmatmul.mubr.msk.bf16.vlgmr.msra.gmra.mrb[84].mxu0 %vm2322_vm3, %v6825_v8  ;;  %v8906_v8 = vld [vmem:[#allocation7] ss:$0 sm:$0xff] }
 0xf18   : > { %9367 = vmatpush3.bf16.xpose.msra.mxu0 %v7117_v9  ;;  %9373 = vmatpush3.bf16.xpose.msra.mxu1 %v7163_v20 }
 0xf19   : > { %9374 = vmatprep.mubr.msk.bf16.mxu1 %vm10564_vm1, %v10563_v5  ;;  %9368 = vmatprep.mubr.msk.bf16.mxu0 %vm10564_vm1, %v10563_v5 }
 0xf1a   : > { %9378 = vmatprep.subr.bf16.mxu0 %v10563_v5  ;;  %9384 = vmatprep.subr.bf16.mxu1 %v10563_v5 }
 0xf1f   : > { %9375 = vmatmul.mubr.msk.bf16.vlgmr.msra.gmra.mrb[88].mxu1 %vm2322_vm3, %v6828_v4  ;;  %9369 = vmatmul.mubr.msk.bf16.vlgmr.msra.gmra.mrb[88].mxu0 %vm2322_vm3, %v6827_v50 }
 0xf20   : > { %9386 = vmatprep.mubr.msk.bf16.mxu1 %vm10564_vm1, %v10563_v5  ;;  %9380 = vmatprep.mubr.msk.bf16.mxu0 %vm10564_vm1, %v10563_v5 }
 0xf4d   : > { %v6593_v46 = vpop.permute.xlu1 %6592 }
 0xf51   : > { %v6601_v13 = vpop.permute.xlu0 %6600  ;;  %v6597_v36 = vpop.permute.xlu1 %6596 }
 0xf52   : > { %v6628_v29 = vcombine.low %v6593_v46, %v6601_v13  ;;  %v6629_v2 = vcombine.high %v6593_v46, %v6601_v13  ;;  %v6612_v37 = vcombine.low %v6589_v22, %v6597_v36  ;;  %v6613_v25 = vcombine.high %v6589_v22, %v6597_v36 }
 0xf54   : > { %v6636_v52 = vrot.slane %v6628_v29, %v11159_v32  ;;  %v6643_v61 = vrot.slane %v6629_v2, %v11159_v32  ;;  %v6620_v51 = vrot.slane %v6612_v37, %v11159_v32  ;;  %v6627_v23 = vrot.slane %v6613_v25, %v11159_v32 }
 0xf56   : > { %v6644_v54 = vcombine.low %v6620_v51, %v6636_v52  ;;  %v6645_v14 = vcombine.high %v6620_v51, %v6636_v52  ;;  %v6660_v17 = vcombine.low %v6627_v23, %v6643_v61  ;;  %v6661_v28 = vcombine.high %v6627_v23, %v6643_v61 }
 0xf58   : > { %v6652_v57 = vrot.slane %v6644_v54, %v11171_v41  ;;  %v6659_v7 = vrot.slane %v6645_v14, %v11171_v41  ;;  %v12230_v60 = vrot.slane %v6660_v17, %v11171_v41  ;;  %v12233_v47 = vrot.slane %v6661_v28, %v11171_v41 }
 0xf5a   : > { %v6704_v16 = vcombine.low %v6652_v57, %v6659_v7  ;;  %v8896_v45 = vcombine.high %v6652_v57, %v6659_v7  ;;  %v6726_v27 = vrot.slane %v12230_v60, %v11159_v32  ;;  %v8897_v63 = vcombine.high %v12230_v60, %v12233_v47 }
 0xf5c   : > { %v6711_v24 = vrot.slane %v6704_v16, %v11159_v32  ;;  %v6719_v59 = vrot.slane %v8896_v45, %v11159_v32  ;;  %v6743_v3 = vcombine.high %v6726_v27, %v10563_v5  ;;  %v6750_v53 = vrot.slane %v6726_v27, %v11171_v41 }
 0xf5e   : > { %v6727_v55 = vcombine.low %v6711_v24, %v6719_v59  ;;  %v6728_v58 = vcombine.high %v6711_v24, %v6719_v59  ;;  %v6757_v38 = vrot.slane %v6743_v3, %v11171_v41 }
 0xf60   : > { %v6735_v1 = vrot.slane %v6727_v55, %v11171_v41  ;;  %v6742_v62 = vrot.slane %v6728_v58, %v11171_v41  ;;  %v8907_v55 = vld [vmem:[#allocation7 + $0x1] ss:$0 sm:$0xff] }
 0xf62   : > { %v6758_v56 = vcombine.low %v6735_v1, %v6750_v53  ;;  %v6759_v11 = vcombine.high %v6735_v1, %v6750_v53  ;;  %v12246_v44 = vcombine.high %v6742_v62, %v6757_v38  ;;  %v12248_v33 = vcombine.low %v6742_v62, %v6757_v38 }
 0xf64   : > { %v7322_v19 = vpack.c.bf16 %v6758_v56, %v6758_v56  ;;  %v7323_v40 = vpack.c.bf16 %v6759_v11, %v6759_v11 }
 0xf66   : > { %v7337_v15 = vand.u32 %v12251_v10, %v7322_v19  ;;  %v7383_v42 = vand.u32 %v12251_v10, %v7323_v40 }
 0xf68   : > { %9379 = vmatpush3.bf16.msra.mxu0 %v7337_v15  ;;  %9385 = vmatpush3.bf16.msra.mxu1 %v7383_v42 }
 0xf69   : > { %9396 = vmatprep.subr.bf16.mxu1 %v10563_v5  ;;  %9390 = vmatprep.subr.bf16.mxu0 %v10563_v5 }
 0xfce   : > { %v6923_v34 = vpop.f32.mrb[76].mxu1 }
 0xfcf   : > { %v12257_v35 = vadd.f32 %v8906_v8, %v6923_v34  ;;  %v9340_v9 = vpop.f32.mrb[77].mxu1 }
 0xfd0   : > { %v6926_v20 = vpop.f32.mrb[78].mxu1 }
 0xfd1   : > { %v9341_v4 = vpop.f32.mrb[79].mxu1  ;;  %v7229_v50 = vsel %vm7225_vm10, %v12257_v35, -inf }
 0xfd2   : > { %v6135_v21 = vpop.f32.mrb[72].mxu0  ;;  %7230 = vmax.xlane.f32.xlu0 %v7229_v50 }
 0xfd3   : > { %v9320_v22 = vpop.f32.mrb[73].mxu0  ;;  %v12262_v13 = vadd.f32 %v8884_v6, %v6135_v21 }
 0xfd4   : > { %v6138_v46 = vpop.f32.mrb[74].mxu0 }
 0xfd5   : > { %v12264_v29 = vadd.f32 %v8884_v6, %v6138_v46  ;;  %v9321_v2 = vpop.f32.mrb[75].mxu0 }
 0xfd6   : > { %v7015_v37 = vpop.f32.mrb[80].mxu1 }
 0xfd7   : > { %v8087_v36 = vpack.c.bf16 %v12264_v29, %v12262_v13  ;;  %v9352_v25 = vpop.f32.mrb[81].mxu1  ;;  %v7220_v17 = vadd.f32 %v8906_v8, %v7015_v37 }
 0xfd8   : > { %v7018_v52 = vpop.f32.mrb[82].mxu1 }
 0xfd9   : > { %v9353_v51 = vpop.f32.mrb[83].mxu1  ;;  %v7235_v7 = vsel %vm7225_vm10, %v7220_v17, -inf }
 0xfda   : > { %v6877_v61 = vpop.f32.mrb[76].mxu0 }
 0xfdb   : > { %v7217_v23 = vadd.f32 %v8906_v8, %v6877_v61  ;;  %v9334_v54 = vpop.f32.mrb[77].mxu0 }
 0xfdc   : > { %v6880_v14 = vpop.f32.mrb[78].mxu0 }
 0xfdd   : > { %v9335_v28 = vpop.f32.mrb[79].mxu0  ;;  %v7226_v57 = vsel %vm7225_vm10, %v7217_v23, -inf }
 0xfde   : > { %7227 = vmax.xlane.f32.xlu1 %v7226_v57 }
 0xfe2   : > { %7236 = vmax.xlane.f32.xlu1 %v7235_v7  ;;  %v6969_v16 = vpop.f32.mrb[80].mxu0 }
 0xfe3   : > { %v7219_v45 = vadd.f32 %v8906_v8, %v6969_v16  ;;  %v9346_v27 = vpop.f32.mrb[81].mxu0 }
 0xfe4   : > { %v6972_v24 = vpop.f32.mrb[82].mxu0 }
 0xfe5   : > { %v9347_v59 = vpop.f32.mrb[83].mxu0  ;;  %v7232_v3 = vsel %vm7225_vm10, %v7219_v45, -inf }
 0xfe6   : > { %7233 = vmax.xlane.f32.xlu0 %v7232_v3 }
 0xfea   : > { %v7107_v58 = vpop.f32.mrb[84].mxu1  ;;  %v7061_v39 = vpop.f32.mrb[84].mxu0 }
 0xfeb   : > { %v7222_v48 = vadd.f32 %v8907_v55, %v7107_v58  ;;  %v7221_v53 = vadd.f32 %v8907_v55, %v7061_v39  ;;  %v9364_v1 = vpop.f32.mrb[85].mxu1  ;;  %v9358_v62 = vpop.f32.mrb[85].mxu0 }
 0xfec   : > { %v7110_v38 = vpop.f32.mrb[86].mxu1  ;;  %v7064_v56 = vpop.f32.mrb[86].mxu0 }
 0xfed   : > { %v9365_v11 = vpop.f32.mrb[87].mxu1  ;;  %v7241_v19 = vsel %vm7225_vm10, %v7222_v48, -inf  ;;  %v9359_v40 = vpop.f32.mrb[87].mxu0  ;;  %v7238_v15 = vsel %vm7225_vm10, %v7221_v53, -inf }
 0xfee   : > { %7242 = vmax.xlane.f32.xlu1 %v7241_v19  ;;  %7239 = vmax.xlane.f32.xlu0 %v7238_v15 }
 0xff2   : > { %v7199_v42 = vpop.f32.mrb[88].mxu1  ;;  %v7153_v8 = vpop.f32.mrb[88].mxu0 }
 0xff3   : > { %v12273_v34 = vadd.f32 %v8907_v55, %v7199_v42  ;;  %v7223_v9 = vadd.f32 %v8907_v55, %v7153_v8  ;;  %v9376_v20 = vpop.f32.mrb[89].mxu1  ;;  %v9370_v6 = vpop.f32.mrb[89].mxu0 }
 0xff4   : > { %v7202_v21 = vpop.f32.mrb[90].mxu1  ;;  %v7156_v4 = vpop.f32.mrb[90].mxu0 }
 0xff5   : > { %v9377_v50 = vpop.f32.mrb[91].mxu1  ;;  %v7247_v22 = vsel %vm7225_vm10, %v12273_v34, -inf  ;;  %v9371_v46 = vpop.f32.mrb[91].mxu0  ;;  %v7244_v2 = vsel %vm7225_vm10, %v7223_v9, -inf }
 0xff6   : > { %7248 = vmax.xlane.f32.xlu1 %v7247_v22  ;;  %7245 = vmax.xlane.f32.xlu0 %v7244_v2  ;;  %v7325_v22 = vpack.c.bf16 %v12246_v44, %v12246_v44  ;;  %v7324_v44 = vpack.c.bf16 %v12248_v33, %v12248_v33 }
0x1007   : > { %6594 = vrot.lane.b32.xlu1 %v12119_v30, %s10568_s18 }
0x100c   : > { %6590 = vrot.lane.b32.xlu0 %v12014_v18, %s10568_s18 }
0x105f   : > { %v7231_v37 = vpop.xlane.xlu0 %7230 }
0x1060   : > { %v7251_v25 = vsub.f32 %v12257_v35, %v7231_v37 }
0x1062   : > { %v7260_v52 = vmul.f32 1.442695, %v7251_v25  ;;  %v7475_v25 = vand.u32 %v12251_v10, %v7325_v22 }
0x1064   : > { %9873 = vpow2.f32 %v7260_v52 }
0x106b   : > { %v7228_v61 = vpop.xlane.xlu1 %7227 }
0x106c   : > { %v7250_v51 = vsub.f32 %v7217_v23, %v7228_v61 }
0x106e   : > { %v7258_v54 = vmul.f32 1.442695, %v7250_v51  ;;  %v9874_v14 = vpop.eup %9873 }
0x106f   : > { %v7237_v28 = vpop.xlane.xlu1 %7236  ;;  %v7277_v7 = vsel %vm7225_vm10, %v9874_v14, 0.0 }
0x1070   : > { %9875 = vpow2.f32 %v7258_v54  ;;  %v7253_v57 = vsub.f32 %v7220_v17, %v7237_v28  ;;  %7278 = vadd.xlane.f32.xlu1 %v7277_v7  ;;  %v7429_v28 = vand.u32 %v12251_v10, %v7324_v44 }
0x1072   : > { %v7264_v16 = vmul.f32 1.442695, %v7253_v57 }
0x1073   : > { %v7234_v30 = vpop.xlane.xlu0 %7233 }
0x1074   : > { %9877 = vpow2.f32 %v7264_v16  ;;  %v7252_v27 = vsub.f32 %v7219_v45, %v7234_v30 }
0x1076   : > { %v7262_v18 = vmul.f32 1.442695, %v7252_v27 }
0x1078   : > { %9879 = vpow2.f32 %v7262_v18 }
0x107a   : > { %v9876_v24 = vpop.eup %9875 }
0x107b   : > { %v7243_v35 = vpop.xlane.xlu1 %7242  ;;  %v7240_v59 = vpop.xlane.xlu0 %7239  ;;  %v7274_v3 = vsel %vm7225_vm10, %v9876_v24, 0.0 }
0x107c   : > { %v7255_v23 = vsub.f32 %v7222_v48, %v7243_v35  ;;  %v7254_v55 = vsub.f32 %v7221_v53, %v7240_v59  ;;  %7275 = vadd.xlane.f32.xlu0 %v7274_v3 }
0x107e   : > { %v9878_v58 = vpop.eup %9877  ;;  %v7268_v39 = vmul.f32 1.442695, %v7255_v23  ;;  %v7266_v17 = vmul.f32 1.442695, %v7254_v55 }
0x107f   : > { %v7283_v1 = vsel %vm7225_vm10, %v9878_v58, 0.0 }
0x1080   : > { %9881 = vpow2.f32 %v7268_v39  ;;  %7284 = vadd.xlane.f32.xlu0 %v7283_v1 }
0x1081   : > { %9883 = vpow2.f32 %v7266_v17 }
0x1082   : > { %v9880_v62 = vpop.eup %9879 }
0x1083   : > { %v7280_v45 = vsel %vm7225_vm10, %v9880_v62, 0.0  ;;  %v7246_v11 = vpop.xlane.xlu0 %7245  ;;  %v7249_v19 = vpop.xlane.xlu1 %7248 }
0x1084   : > { %7281 = vadd.xlane.f32.xlu1 %v7280_v45  ;;  %v7256_v40 = vsub.f32 %v7223_v9, %v7246_v11  ;;  %v7257_v15 = vsub.f32 %v12273_v34, %v7249_v19 }
0x1086   : > { %v7270_v42 = vmul.f32 1.442695, %v7256_v40  ;;  %v7272_v8 = vmul.f32 1.442695, %v7257_v15 }
0x1087   : > { %v6595_v9 = vpop.permute.xlu1 %6594  ;;  %v6591_v21 = vpop.permute.xlu0 %6590 }
0x1088   : > { %9885 = vpow2.f32 %v7270_v42 }
0x1089   : > { %9887 = vpow2.f32 %v7272_v8 }
0x108a   : > { %v12287_v38 = vpop.eup %9881 }
0x108b   : > { %v12289_v56 = vpop.eup %9883  ;;  %v7289_v48 = vsel %vm7225_vm10, %v12287_v38, 0.0 }
0x108c   : > { %7290 = vadd.xlane.f32.xlu1 %v7289_v48  ;;  %v7286_v53 = vsel %vm7225_vm10, %v12289_v56, 0.0 }
0x108d   : > { %7287 = vadd.xlane.f32.xlu0 %v7286_v53 }
0x1092   : > { %v12300_v20 = vpop.eup %9885 }
0x1093   : > { %v12302_v6 = vpop.eup %9887 }
0x109d   : > { %6598 = vrot.lane.b32.xlu1 %v12117_v0, %s10568_s18  ;;  %v7292_v0 = vsel %vm7225_vm10, %v12300_v20, 0.0 }
0x10a3   : > { %6602 = vrot.lane.b32.xlu0 %v12139_v49, %s10568_s18  ;;  %v7295_v49 = vsel %vm7225_vm10, %v12302_v6, 0.0  ;;  %s12310_s18 = scalar_lea.vmem %s12618_s23, %s11094_s10  ;;  %s8263_s23 = scalar_lea.vmem [#allocation28], %s11094_s10 }
0x10c1   : > { %7293 = vadd.xlane.f32.xlu1 %v7292_v0 }
0x10c2   : > { %7296 = vadd.xlane.f32.xlu0 %v7295_v49 }
0x10fd   : > { %v7279_v34 = vpop.xlane.xlu1 %7278 }
0x10fe   : > { %9889 = vrcp.f32 %v7279_v34 }
0x1108   : > { %v9890_v4 = vpop.eup %9889 }
0x1109   : > { %v7276_v50 = vpop.xlane.xlu0 %7275  ;;  %v7301_v46 = vmul.f32 %v9890_v4, %v9874_v14 }
0x110a   : > { %9891 = vrcp.f32 %v7276_v50 }
0x110b   : > { %v7315_v2 = vpack.c.bf16 %v7301_v46, %v7301_v46 }
0x110d   : > { %v7285_v37 = vpop.xlane.xlu0 %7284  ;;  %9387 = vmatmul.mubr.msk.bf16.vlgmr.msra.gmra.mrb[92].mxu1 %vm7225_vm10, %v7315_v2 }
0x110e   : > { %9893 = vrcp.f32 %v7285_v37  ;;  %9397 = vmatpush3.bf16.msra.mxu1 %v7475_v25  ;;  %9398 = vmatprep.mubr.msk.bf16.mxu1 %vm10564_vm1, %v10563_v5 }
0x110f   : > { %9408 = vmatprep.subr.bf16.mxu1 %v10563_v5 }
0x1111   : > { %v7282_v52 = vpop.xlane.xlu1 %7281 }
0x1112   : > { %9895 = vrcp.f32 %v7282_v52 }
0x1114   : > { %v9892_v61 = vpop.eup %9891 }
0x1115   : > { %v7299_v51 = vmul.f32 %v9892_v61, %v9876_v24 }
0x1117   : > { %v7314_v54 = vpack.c.bf16 %v7299_v51, %v7299_v51 }
0x1118   : > { %v9894_v14 = vpop.eup %9893 }
0x1119   : > { %v7305_v57 = vmul.f32 %v9894_v14, %v9878_v58  ;;  %v7291_v7 = vpop.xlane.xlu1 %7290  ;;  %9381 = vmatmul.mubr.msk.bf16.vlgmr.msra.gmra.mrb[92].mxu0 %vm7225_vm10, %v7314_v54 }
0x111a   : > { %9391 = vmatpush3.bf16.msra.mxu0 %v7429_v28  ;;  %v7288_v16 = vpop.xlane.xlu0 %7287  ;;  %9392 = vmatprep.mubr.msk.bf16.mxu0 %vm10564_vm1, %v10563_v5  ;;  %9897 = vrcp.f32 %v7291_v7 }
0x111b   : > { %v7317_v30 = vpack.c.bf16 %v7305_v57, %v7305_v57  ;;  %9402 = vmatprep.subr.bf16.mxu0 %v10563_v5  ;;  %9899 = vrcp.f32 %v7288_v16  ;;  %v9795_v57 = vld [vmem:[%s12310_s18] sm:$0xff]   ;;  %v9796_v16 = vld [vmem:[%s12310_s18 + $0x8] sm:$0xff]   ;;  %s12621_s18 = sld [smem:[#allocation62_spill]] }
0x111c   : > { %v9896_v27 = vpop.eup %9895 }
0x111d   : > { %v7303_v18 = vmul.f32 %v9896_v27, %v9880_v62  ;;  %v6599_v33 = vpop.permute.xlu1 %6598  ;;  %9399 = vmatmul.mubr.msk.bf16.vlgmr.msra.gmra.mrb[96].mxu1 %vm7225_vm10, %v7317_v30  ;;  %v6769_v62 = vrot.slane %v8897_v63, %v11159_v32 }
0x111e   : > { %v6680_v24 = vcombine.low %v6591_v21, %v6599_v33  ;;  %v6603_v35 = vpop.permute.xlu0 %6602  ;;  %9410 = vmatprep.mubr.msk.bf16.mxu1 %vm10564_vm1, %v10563_v5 }
0x111f   : > { %v6688_v59 = vcombine.low %v6595_v9, %v6603_v35  ;;  %v7316_v3 = vpack.c.bf16 %v7303_v18, %v7303_v18 }
0x1120   : > { %v6687_v23 = vrot.slane %v6680_v24, %v11159_v32 }
0x1121   : > { %v6695_v55 = vrot.slane %v6688_v59, %v11159_v32  ;;  %9393 = vmatmul.mubr.msk.bf16.vlgmr.msra.gmra.mrb[96].mxu0 %vm7225_vm10, %v7316_v3 }
0x1122   : > { %9404 = vmatprep.mubr.msk.bf16.mxu0 %vm10564_vm1, %v10563_v5 }
0x1123   : > { %v6696_v58 = vcombine.low %v6687_v23, %v6695_v55 }
0x1124   : > { %v9898_v0 = vpop.eup %9897 }
0x1125   : > { %v6703_v39 = vrot.slane %v6696_v58, %v11171_v41  ;;  %v9900_v49 = vpop.eup %9899  ;;  %v7309_v4 = vmul.f32 %v9898_v0, %v12287_v38 }
0x1126   : > { %v7307_v50 = vmul.f32 %v9900_v49, %v12289_v56 }
0x1127   : > { %v6770_v17 = vcombine.low %v12233_v47, %v6703_v39  ;;  %v6778_v1 = vcombine.high %v6703_v39, %v10563_v5  ;;  %v7319_v52 = vpack.c.bf16 %v7309_v4, %v7309_v4 }
0x1128   : > { %v7318_v25 = vpack.c.bf16 %v7307_v50, %v7307_v50 }
0x1129   : > { %v6777_v45 = vrot.slane %v6770_v17, %v11159_v32  ;;  %v6785_v48 = vrot.slane %v6778_v1, %v11159_v32 }
0x112b   : > { %v6786_v53 = vcombine.low %v6769_v62, %v6777_v45  ;;  %v6787_v11 = vcombine.high %v6769_v62, %v6777_v45  ;;  %v6802_v19 = vcombine.high %v6785_v48, %v10563_v5  ;;  %v6809_v15 = vrot.slane %v6785_v48, %v11171_v41 }
0x112d   : > { %v6794_v40 = vrot.slane %v6786_v53, %v11171_v41  ;;  %v6801_v42 = vrot.slane %v6787_v11, %v11171_v41  ;;  %v6816_v8 = vrot.slane %v6802_v19, %v11171_v41 }
0x112f   : > { %v6817_v60 = vcombine.low %v6794_v40, %v6809_v15  ;;  %v6818_v47 = vcombine.high %v6794_v40, %v6809_v15  ;;  %v6819_v63 = vcombine.low %v6801_v42, %v6816_v8  ;;  %v6820_v9 = vcombine.high %v6801_v42, %v6816_v8 }
0x1131   : > { %v7326_v34 = vpack.c.bf16 %v6817_v60, %v6817_v60  ;;  %v7327_v21 = vpack.c.bf16 %v6818_v47, %v6818_v47  ;;  %v7328_v2 = vpack.c.bf16 %v6819_v63, %v6819_v63  ;;  %v7329_v37 = vpack.c.bf16 %v6820_v9, %v6820_v9 }
0x1133   : > { %v7521_v22 = vand.u32 %v12251_v10, %v7326_v34  ;;  %v7567_v46 = vand.u32 %v12251_v10, %v7327_v21  ;;  %v7613_v61 = vand.u32 %v12251_v10, %v7328_v2  ;;  %v7659_v38 = vand.u32 %v12251_v10, %v7329_v37 }
0x1135   : > { %9403 = vmatpush3.bf16.msra.mxu0 %v7521_v22  ;;  %9409 = vmatpush3.bf16.msra.mxu1 %v7567_v46 }
0x1136   : > { %9414 = vmatprep.subr.bf16.mxu0 %v10563_v5  ;;  %9420 = vmatprep.subr.bf16.mxu1 %v10563_v5 }
0x1138   : > { %9405 = vmatmul.mubr.msk.bf16.vlgmr.msra.gmra.mrb[100].mxu0 %vm7225_vm10, %v7318_v25  ;;  %9411 = vmatmul.mubr.msk.bf16.vlgmr.msra.gmra.mrb[100].mxu1 %vm7225_vm10, %v7319_v52 }
0x1139   : > { %9415 = vmatpush3.bf16.msra.mxu0 %v7613_v61  ;;  %9421 = vmatpush3.bf16.msra.mxu1 %v7659_v38 }
0x113a   : > { %9416 = vmatprep.mubr.msk.bf16.mxu0 %vm10564_vm1, %v10563_v5  ;;  %9422 = vmatprep.mubr.msk.bf16.mxu1 %vm10564_vm1, %v10563_v5 }
0x113b   : > { %9434 = vmatprep.subr.bf16.mxu1 %v10563_v5  ;;  %9426 = vmatprep.subr.bf16.mxu0 %v10563_v5 }
0x114e   : > { %v7294_v56 = vpop.xlane.xlu1 %7293 }
0x114f   : > { %9901 = vrcp.f32 %v7294_v56  ;;  %v7297_v10 = vpop.xlane.xlu0 %7296 }
0x1150   : > { %9903 = vrcp.f32 %v7297_v10 }
0x1159   : > { %v9902_v44 = vpop.eup %9901 }
0x115a   : > { %v9904_v51 = vpop.eup %9903  ;;  %v7311_v54 = vmul.f32 %v9902_v44, %v12300_v20 }
0x115b   : > { %v7313_v14 = vmul.f32 %v9904_v51, %v12302_v6 }
0x115c   : > { %v7320_v28 = vpack.c.bf16 %v7311_v54, %v7311_v54 }
0x115d   : > { %v7321_v7 = vpack.c.bf16 %v7313_v14, %v7313_v14 }
0x115e   : > { %9417 = vmatmul.mubr.msk.bf16.vlgmr.msra.gmra.mrb[104].mxu0 %vm7225_vm10, %v7320_v28 }
0x115f   : > { %9423 = vmatmul.mubr.msk.bf16.vlgmr.msra.gmra.mrb[104].mxu1 %vm7225_vm10, %v7321_v7  ;;  %9430 = vmatprep.mubr.msk.bf16.mxu0 %vm10564_vm1, %v10563_v5 }
0x1160   : > { %9435 = vmatpush3.bf16.msra.mxu1 %v9795_v57  ;;  %9438 = vmatprep.mubr.msk.bf16.mxu1 %vm10564_vm1, %v10563_v5 }
0x1161   : > { %9436 = vmatprep.subr.bf16.mxu1 %v10563_v5 }
0x1164   : > { %9437 = vmatpush3.bf16.msra.mxu1 %v9796_v16 }
0x1165   : > { %9450 = vmatprep.subr.bf16.mxu1 %v10563_v5 }
0x1167   : > { %9439 = vmatmul.mubr.msk.bf16.vlgmr.msra.gmra.mrb[108].mxu1 %vm1377_vm2, %v8087_v36 }
0x1168   : > { %9454 = vmatprep.mubr.msk.bf16.mxu1 %vm10564_vm1, %v10563_v5 }
0x11e0   : > { %v7419_v20 = vpop.f32.mrb[92].mxu1 }
0x11e1   : > { %v9388_v6 = vpop.f32.mrb[93].mxu1 }
0x11e2   : > { %v7422_v30 = vpop.f32.mrb[94].mxu1 }
0x11e3   : > { %v9389_v27 = vpop.f32.mrb[95].mxu1 }
0x11ec   : > { %v7373_v18 = vpop.f32.mrb[92].mxu0 }
0x11ed   : > { %v9382_v33 = vpop.f32.mrb[93].mxu0 }
0x11ee   : > { %v7376_v24 = vpop.f32.mrb[94].mxu0 }
0x11ef   : > { %v9383_v35 = vpop.f32.mrb[95].mxu0 }
0x11f0   : > { %v7511_v59 = vpop.f32.mrb[96].mxu1 }
0x11f1   : > { %v7717_v3 = vcombine.low %v7419_v20, %v7511_v59  ;;  %v7718_v23 = vcombine.high %v7419_v20, %v7511_v59  ;;  %v9400_v55 = vpop.f32.mrb[97].mxu1 }
0x11f2   : > { %v7514_v58 = vpop.f32.mrb[98].mxu1 }
0x11f3   : > { %v9401_v39 = vpop.f32.mrb[99].mxu1  ;;  %v7725_v62 = vrot.slane %v7717_v3, %v11159_v32  ;;  %v7732_v45 = vrot.slane %v7718_v23, %v11159_v32 }
0x11f4   : > { %v7465_v13 = vpop.f32.mrb[96].mxu0 }
0x11f5   : > { %v7701_v29 = vcombine.low %v7373_v18, %v7465_v13  ;;  %v7702_v36 = vcombine.high %v7373_v18, %v7465_v13  ;;  %v9394_v17 = vpop.f32.mrb[97].mxu0 }
0x11f6   : > { %v7468_v1 = vpop.f32.mrb[98].mxu0 }
0x11f7   : > { %v7709_v48 = vrot.slane %v7701_v29, %v11159_v32  ;;  %v7716_v53 = vrot.slane %v7702_v36, %v11159_v32  ;;  %v9395_v11 = vpop.f32.mrb[99].mxu0 }
0x11f9   : > { %v7733_v19 = vcombine.low %v7709_v48, %v7725_v62  ;;  %v7734_v40 = vcombine.high %v7709_v48, %v7725_v62  ;;  %v7749_v15 = vcombine.low %v7716_v53, %v7732_v45  ;;  %v7750_v42 = vcombine.high %v7716_v53, %v7732_v45 }
0x11fb   : > { %v7741_v8 = vrot.slane %v7733_v19, %v11171_v41  ;;  %v7748_v0 = vrot.slane %v7734_v40, %v11171_v41  ;;  %v7757_v49 = vrot.slane %v7749_v15, %v11171_v41  ;;  %v7764_v60 = vrot.slane %v7750_v42, %v11171_v41 }
0x11fd   : > { %v7837_v47 = vcombine.low %v7741_v8, %v7748_v0  ;;  %v8916_v63 = vcombine.high %v7741_v8, %v7748_v0  ;;  %v7853_v9 = vcombine.low %v7757_v49, %v7764_v60  ;;  %v8917_v34 = vcombine.high %v7757_v49, %v7764_v60 }
0x11ff   : > { %v7844_v21 = vrot.slane %v7837_v47, %v11159_v32  ;;  %v7852_v4 = vrot.slane %v8916_v63, %v11159_v32  ;;  %v7860_v50 = vrot.slane %v7853_v9, %v11159_v32  ;;  %v7868_v22 = vrot.slane %v8917_v34, %v11159_v32 }
0x1201   : > { %v7870_v46 = vcombine.high %v7844_v21, %v7852_v4  ;;  %v7886_v2 = vcombine.high %v7860_v50, %v7868_v22  ;;  %v7869_v37 = vcombine.low %v7844_v21, %v7852_v4  ;;  %v7885_v25 = vcombine.low %v7860_v50, %v7868_v22  ;;  %v9797_v22 = vld [vmem:[%s8004_s26] sm:$0xff]  }
0x1202   : > { %9427 = vmatpush3.bf16.msra.mxu0 %v9797_v22 }
0x1203   : > { %v12395_v52 = vrot.slane %v7870_v46, %v11171_v41  ;;  %v12398_v61 = vrot.slane %v7886_v2, %v11171_v41  ;;  %v12401_v38 = vrot.slane %v7869_v37, %v11171_v41  ;;  %v12404_v56 = vrot.slane %v7885_v25, %v11171_v41  ;;  %9428 = vmatprep.subr.bf16.mxu0 %v10563_v5 }
0x1205   : > { %v7903_v10 = vcombine.low %v12395_v52, %v12398_v61  ;;  %v7902_v44 = vcombine.high %v12401_v38, %v12404_v56  ;;  %v7904_v51 = vcombine.high %v12395_v52, %v12398_v61  ;;  %v7901_v54 = vcombine.low %v12401_v38, %v12404_v56 }
0x120b   : > { %v7557_v14 = vpop.f32.mrb[100].mxu0  ;;  %v7603_v28 = vpop.f32.mrb[100].mxu1 }
0x120c   : > { %v9406_v57 = vpop.f32.mrb[101].mxu0  ;;  %v9412_v7 = vpop.f32.mrb[101].mxu1 }
0x120d   : > { %v7560_v16 = vpop.f32.mrb[102].mxu0  ;;  %v7606_v20 = vpop.f32.mrb[102].mxu1 }
0x120e   : > { %v9407_v6 = vpop.f32.mrb[103].mxu0  ;;  %v9413_v30 = vpop.f32.mrb[103].mxu1  ;;  %v9798_v16 = vld [vmem:[%s8004_s26 + $0x8] sm:$0xff]   ;;  %s8216_s26 = scalar_lea.vmem %s12620_s11, %s10497_s28 }
0x120f   : > { %9429 = vmatpush3.bf16.msra.mxu0 %v9798_v16 }
0x1210   : > { %9442 = vmatprep.subr.bf16.mxu0 %v10563_v5 }
0x1231   : > { %v7649_v27 = vpop.f32.mrb[104].mxu0 }
0x1232   : > { %v7769_v18 = vcombine.low %v7557_v14, %v7649_v27  ;;  %v7770_v33 = vcombine.high %v7557_v14, %v7649_v27  ;;  %v9418_v24 = vpop.f32.mrb[105].mxu0  ;;  %v7695_v35 = vpop.f32.mrb[104].mxu1 }
0x1233   : > { %v7785_v59 = vcombine.low %v7603_v28, %v7695_v35  ;;  %v7786_v3 = vcombine.high %v7603_v28, %v7695_v35  ;;  %v7652_v23 = vpop.f32.mrb[106].mxu0  ;;  %v9424_v55 = vpop.f32.mrb[105].mxu1 }
0x1234   : > { %v7777_v58 = vrot.slane %v7769_v18, %v11159_v32  ;;  %v7784_v39 = vrot.slane %v7770_v33, %v11159_v32  ;;  %v9419_v13 = vpop.f32.mrb[107].mxu0  ;;  %v7698_v29 = vpop.f32.mrb[106].mxu1 }
0x1235   : > { %v7793_v36 = vrot.slane %v7785_v59, %v11159_v32  ;;  %v7800_v17 = vrot.slane %v7786_v3, %v11159_v32  ;;  %v9425_v1 = vpop.f32.mrb[107].mxu1 }
0x1237   : > { %v7801_v62 = vcombine.low %v7777_v58, %v7793_v36  ;;  %v7802_v45 = vcombine.high %v7777_v58, %v7793_v36  ;;  %v7817_v48 = vcombine.low %v7784_v39, %v7800_v17  ;;  %v7818_v53 = vcombine.high %v7784_v39, %v7800_v17 }
0x1239   : > { %v7809_v11 = vrot.slane %v7801_v62, %v11171_v41  ;;  %v7816_v19 = vrot.slane %v7802_v45, %v11171_v41  ;;  %v7825_v40 = vrot.slane %v7817_v48, %v11171_v41  ;;  %v7832_v15 = vrot.slane %v7818_v53, %v11171_v41 }
0x123a   : > { %v12422_v42 = vpop.f32.mrb[108].mxu1 }
0x123b   : > { %v7905_v8 = vcombine.low %v7809_v11, %v7816_v19  ;;  %v8918_v0 = vcombine.high %v7809_v11, %v7816_v19  ;;  %v7921_v49 = vcombine.low %v7825_v40, %v7832_v15  ;;  %v8919_v60 = vcombine.high %v7825_v40, %v7832_v15  ;;  %v9440_v47 = vpop.f32.mrb[109].mxu1 }
0x123c   : > { %v12424_v63 = vpop.f32.mrb[110].mxu1 }
0x123d   : > { %v7912_v9 = vrot.slane %v7905_v8, %v11159_v32  ;;  %v7920_v34 = vrot.slane %v8918_v0, %v11159_v32  ;;  %v7928_v21 = vrot.slane %v7921_v49, %v11159_v32  ;;  %v7936_v4 = vrot.slane %v8919_v60, %v11159_v32  ;;  %v9441_v50 = vpop.f32.mrb[111].mxu1 }
0x123f   : > { %v7938_v46 = vcombine.high %v7912_v9, %v7920_v34  ;;  %v7954_v2 = vcombine.high %v7928_v21, %v7936_v4  ;;  %v7937_v37 = vcombine.low %v7912_v9, %v7920_v34  ;;  %v7953_v25 = vcombine.low %v7928_v21, %v7936_v4 }
0x1241   : > { %v7952_v14 = vrot.slane %v7938_v46, %v11171_v41  ;;  %v7968_v28 = vrot.slane %v7954_v2, %v11171_v41  ;;  %v7945_v57 = vrot.slane %v7937_v37, %v11171_v41  ;;  %v7961_v7 = vrot.slane %v7953_v25, %v11171_v41 }
0x1243   : > { %v7971_v32 = vcombine.low %v7952_v14, %v7968_v28  ;;  %v7970_v20 = vcombine.high %v7945_v57, %v7961_v7  ;;  %v7972_v6 = vcombine.high %v7952_v14, %v7968_v28  ;;  %v7969_v30 = vcombine.low %v7945_v57, %v7961_v7  ;;  %v9801_v57 = vld [vmem:[%s8263_s23] sm:$0xff]   ;;  %v9802_v7 = vld [vmem:[%s8263_s23 + $0x8] sm:$0xff]   ;;  %s12622_s23 = sadd.s32 4294967295, %s10505_s2  }
0x1244   : > { %9451 = vmatpush3.bf16.msra.mxu1 %v9801_v57  ;;  %p12505_p7 = scmp.eq.s32.totalorder %s12622_s23, 1 }
0x1245   : > { %v9769_v27 = vpack.i.bf16 %v7971_v32, %v7903_v10  ;;  %v9764_v18 = vpack.i.bf16 %v7970_v20, %v7902_v44  ;;  %v9774_v41 = vpack.i.bf16 %v7972_v6, %v7904_v51  ;;  %9452 = vmatprep.subr.bf16.mxu1 %v10563_v5 }
0x1247   : > { %9770 = vrot.lane.b32.xlu1 %v9769_v27, %s10573_s8  ;;  %9765 = vrot.lane.b32.xlu0 %v9764_v18, %s10574_s6  ;;  %s8075_s8 = scalar_lea.vmem [#allocation26], %s11094_s10 }
0x1248   : > { %v9799_v38 = vld [vmem:[%s8075_s8] sm:$0xff]   ;;  %v9800_v56 = vld [vmem:[%s8075_s8 + $0x8] sm:$0xff]   ;;  %9453 = vmatpush3.bf16.msra.mxu1 %v9802_v7  ;;  %s8218_s8 = scalar_lea.vmem %s12621_s18, %s10497_s28 }
0x124b   : > { %9775 = vrot.lane.b32.xlu1 %v9774_v41, %s12617_s0  ;;  %s8200_s0 = scalar_lea.vmem %s12619_s22, %s10497_s28  ;;  %s8336_s22 = scalar_lea.vmem [#allocation29], %s11094_s10 }
0x124c   : > { %v8933_v19 = vld [vmem:[%s8200_s0] ss:$0 sm:$0xff]  ;;  %s8342_s10 = scalar_lea.vmem %s10743_s27, %s10497_s28  ;;  %s10578_s0 = smov [#allocation31]  }
0x124d   : > { %s8419_s11 = sshll.u32 %s10578_s0, 4  ;;  %s8420_s11 = int_to_ptr.vmem [resolvable:$true] %s8419_s11 }
0x124e   : > { %p10420_p11 = scmp.lt.s32.totalorder %s8420_s11, %s8420_s11 }
0x12b9   : > { %v9771_v33 = vpop.permute.xlu1 %9770  ;;  %v9766_v24 = vpop.permute.xlu0 %9765 }
0x12ba   : > { %v9768_v35 = vunpack.i.h.bf16 %v9766_v24  ;;  %v9767_v59 = vunpack.i.l.bf16 %v9766_v24  ;;  %v9773_v10 = vunpack.i.h.bf16 %v9771_v33  ;;  %v9772_v3 = vunpack.i.l.bf16 %v9771_v33  ;;  %v8934_v33 = vld [vmem:[%s8216_s26] ss:$0 sm:$0xff] }
0x12bc   : > { %v7997_v44 = vsel %vm2322_vm3, %v7901_v54, %v9767_v59  ;;  %v7998_v52 = vsel %vm2322_vm3, %v7969_v30, %v9768_v35  ;;  %v8921_v54 = vld [vmem:[%s8010_s5] ss:$0 sm:$0xff]  ;;  %s8269_s5 = scalar_lea.vmem %s10733_s3, %s10497_s28  ;;  %s10413_s28 = scalar_lea.vmem %s8420_s11, 256 }
0x12bd   : > { %v9776_v61 = vpop.permute.xlu1 %9775  ;;  %v7999_v55 = vsel %vm3470_vm5, %v7997_v44, %v9772_v3  ;;  %v8000_v58 = vsel %vm3470_vm5, %v7998_v52, %v9773_v10  ;;  %v8935_v10 = vld [vmem:[%s8218_s8] ss:$0 sm:$0xff]  ;;  %p10414_p3 = scmp.ne.s32.totalorder %s8420_s11, %s10413_s28  ;;  %p10421_p12 = scmp.lt.s32.totalorder %s10413_s28, %s10413_s28 }
0x12be   : > { %v9778_v51 = vunpack.i.h.bf16 %v9776_v61  ;;  %v9777_v23 = vunpack.i.l.bf16 %v9776_v61 }
0x12bf   : > { %p10415_p9 = pnand %p10414_p3, %p12505_p7  ;;  %p10422_p13 = por %p10421_p12, %p10420_p11 }
0x12c0   : > { %v8001_v39 = vsel %vm3473_vm6, %v7999_v55, %v9777_v23  ;;  %v8002_v13 = vsel %vm3473_vm6, %v8000_v58, %v9778_v51  ;;  %v9803_v51 = vld [vmem:[%s8336_s22] sm:$0xff]   ;;  %v9804_v23 = vld [vmem:[%s8336_s22 + $0x8] sm:$0xff]  }
0x12c1   : > { %v8009_v29 = vpack.c.bf16 %v8002_v13, %v8001_v39  ;;  %v8937_v55 = vld [vmem:[%s8269_s5] ss:$0 sm:$0xff]  ;;  %p10416_p10 = pneg %p10415_p9 }
0x12c3   : > { %9431 = vmatmul.mubr.msk.bf16.vlgmr.msra.gmra.mrb[108].mxu0 %vm1377_vm2, %v8009_v29  ;;  %p10423_p0 = pnand %p10422_p13, %p10416_p10 }
0x12c4   : > { %9446 = vmatprep.mubr.msk.bf16.mxu0 %vm10564_vm1, %v10563_v5  ;;  %9443 = vmatpush3.bf16.msra.mxu0 %v9799_v38 }
0x12c5   : > { %9444 = vmatprep.subr.bf16.mxu0 %v10563_v5 }
0x12c8   : > { %9445 = vmatpush3.bf16.msra.mxu0 %v9800_v56 }
0x12c9   : > { %9458 = vmatprep.subr.bf16.mxu0 %v10563_v5 }
0x1396   : > { %v8067_v36 = vpop.f32.mrb[108].mxu0 }
0x1397   : > { %v9432_v17 = vpop.f32.mrb[109].mxu0  ;;  %v8068_v62 = vadd.f32 %v8921_v54, %v8067_v36 }
0x1398   : > { %v8070_v1 = vpop.f32.mrb[110].mxu0 }
0x1399   : > { %v8071_v45 = vadd.f32 %v8921_v54, %v8070_v1  ;;  %v9433_v48 = vpop.f32.mrb[111].mxu0  ;;  %v8942_v1 = vld [vmem:[%s8342_s10] ss:$0 sm:$0xff] }
0x139b   : > { %v8080_v53 = vpack.c.bf16 %v8071_v45, %v8068_v62 }
0x139d   : > { %9447 = vmatmul.mubr.msk.bf16.vlgmr.msra.gmra.mrb[112].mxu0 %vm1377_vm2, %v8080_v53 }
0x139e   : > { %9462 = vmatprep.mubr.msk.bf16.mxu0 %vm10564_vm1, %v10563_v5  ;;  %9459 = vmatpush3.bf16.msra.mxu0 %v9803_v51 }
0x139f   : > { %9460 = vmatprep.subr.bf16.mxu0 %v10563_v5 }
0x13a2   : > { %9461 = vmatpush3.bf16.msra.mxu0 %v9804_v23 }
0x1470   : > { %v8193_v11 = vpop.f32.mrb[112].mxu0 }
0x1471   : > { %v8194_v40 = vadd.f32 %v8193_v11, %v12422_v42  ;;  %v9448_v15 = vpop.f32.mrb[113].mxu0 }
0x1472   : > { %v8196_v8 = vpop.f32.mrb[114].mxu0 }
0x1473   : > { %v8208_v0 = vadd.f32 %v8933_v19, %v8194_v40  ;;  %v8197_v49 = vadd.f32 %v8196_v8, %v12424_v63  ;;  %v9449_v60 = vpop.f32.mrb[115].mxu0 }
0x1475   : > { %v8210_v47 = vmax.f32 %v8208_v0, 0.0  ;;  %v8209_v9 = vadd.f32 %v8933_v19, %v8197_v49 }
0x1477   : > { %v8212_v34 = vmul.f32 %v8210_v47, %v11538_v43  ;;  %v8211_v21 = vmax.f32 %v8209_v9, 0.0 }
0x1479   : > { %v8213_v4 = vmul.f32 %v8211_v21, %v11540_v12  ;;  %v12475_v50 = vadd.f32 %v8212_v34, %v11544_v26 }
0x147b   : > { %v8220_v22 = vsel %vm1377_vm2, %v12475_v50, 0.0  ;;  %v12480_v42 = vadd.f32 %v8213_v4, %v11548_v31 }
0x147c   : > { %8221 = vadd.xlane.f32.xlu0 %v8220_v22 }
0x147d   : > { %v8223_v63 = vsel %vm1377_vm2, %v12480_v42, 0.0 }
0x147e   : > { %8224 = vadd.xlane.f32.xlu1 %v8223_v63 }
0x1509   : > { %v8222_v46 = vpop.xlane.xlu0 %8221 }
0x150a   : > { %v8226_v43 = vmul.f32 0.03125, %v8222_v46 }
0x150b   : > { %v8225_v2 = vpop.xlane.xlu1 %8224 }
0x150c   : > { %v8228_v12 = vsub.f32 %v12475_v50, %v8226_v43  ;;  %v8227_v37 = vmul.f32 0.03125, %v8225_v2 }
0x150e   : > { %v8229_v26 = vsub.f32 %v12480_v42, %v8227_v37  ;;  %v8230_v25 = vmul.f32 %v8228_v12, %v8228_v12 }
0x1510   : > { %v8232_v14 = vsel %vm1377_vm2, %v8230_v25, 0.0  ;;  %v8231_v28 = vmul.f32 %v8229_v26, %v8229_v26 }
0x1511   : > { %8233 = vadd.xlane.f32.xlu0 %v8232_v14 }
0x1512   : > { %v8235_v31 = vsel %vm1377_vm2, %v8231_v28, 0.0 }
0x1515   : > { %8236 = vadd.xlane.f32.xlu0 %v8235_v31 }
0x159e   : > { %v8234_v16 = vpop.xlane.xlu0 %8233 }
0x159f   : > { %v8238_v32 = vmul.f32 0.03125, %v8234_v16 }
0x15a1   : > { %v8240_v20 = vadd.f32 1e-05, %v8238_v32 }
0x15a2   : > { %v8237_v6 = vpop.xlane.xlu0 %8236 }
0x15a3   : > { %9905 = vrsqrt.f32 %v8240_v20  ;;  %v8239_v30 = vmul.f32 0.03125, %v8237_v6 }
0x15a5   : > { %v8241_v27 = vadd.f32 1e-05, %v8239_v30 }
0x15a7   : > { %9907 = vrsqrt.f32 %v8241_v27 }
0x15ad   : > { %v9906_v18 = vpop.eup %9905 }
0x15ae   : > { %v8244_v41 = vmul.f32 %v9906_v18, %v8228_v12 }
0x15b0   : > { %v8252_v35 = vmul.f32 %v8934_v33, %v8244_v41 }
0x15b1   : > { %v9908_v24 = vpop.eup %9907 }
0x15b2   : > { %v8245_v59 = vmul.f32 %v9908_v24, %v8229_v26  ;;  %v8260_v44 = vadd.f32 %v8935_v10, %v8252_v35 }
0x15b4   : > { %v8253_v3 = vmul.f32 %v8934_v33, %v8245_v59 }
0x15b6   : > { %v8261_v52 = vadd.f32 %v8935_v10, %v8253_v3 }
0x15b8   : > { %v8268_v61 = vpack.c.bf16 %v8261_v52, %v8260_v44 }
0x15ba   : > { %9455 = vmatmul.mubr.msk.bf16.vlgmr.msra.gmra.mrb[112].mxu1 %vm1377_vm2, %v8268_v61 }
0x168d   : > { %v8326_v58 = vpop.f32.mrb[112].mxu1 }
0x168e   : > { %v8327_v39 = vadd.f32 %v8937_v55, %v8326_v58  ;;  %v9456_v13 = vpop.f32.mrb[113].mxu1 }
0x168f   : > { %v8329_v29 = vpop.f32.mrb[114].mxu1 }
0x1690   : > { %v8330_v38 = vadd.f32 %v8937_v55, %v8329_v29  ;;  %v9457_v56 = vpop.f32.mrb[115].mxu1  ;;  %v8333_v54 = vmax.f32 %v8327_v39, 0.0 }
0x1692   : > { %v8334_v36 = vmax.f32 %v8330_v38, 0.0 }
0x1694   : > { %v8341_v17 = vpack.c.bf16 %v8334_v36, %v8333_v54 }
0x1696   : > { %9463 = vmatmul.mubr.msk.bf16.vlgmr.msra.gmra.mrb[116].mxu0 %vm1377_vm2, %v8341_v17 }
0x1769   : > { %v8399_v62 = vpop.f32.mrb[116].mxu0 }
0x176a   : > { %v8400_v45 = vadd.f32 %v8942_v1, %v8399_v62  ;;  %v9464_v5 = vpop.f32.mrb[117].mxu0 }
0x176b   : > { %v8402_v48 = vpop.f32.mrb[118].mxu0 }
0x176c   : > { %v8406_v53 = vadd.f32 %v8400_v45, %v12475_v50  ;;  %v8403_v11 = vadd.f32 %v8942_v1, %v8402_v48  ;;  %v9465_v19 = vpop.f32.mrb[119].mxu0 }
0x176e   : > { %8408 = vst.msk [vmem:[#allocation31] sm:$0xff] %vm1377_vm2, %v8406_v53  ;;  %v8407_v40 = vadd.f32 %v8403_v11, %v12480_v42 }
0x1770   : > { %8409 = vst.msk [vmem:[#allocation31 + $0x8] sm:$0xff] %vm1377_vm2, %v8407_v40 }
0x1771   : > { %10426 = shalt.err (!%p10423_p0)
}
0x1772   : > { %s12624_s26 = sld [smem:[#allocation64_spill]] }
0x1778   : > { %s10427_s8 = scalar_lea.hbm %s12624_s26, 256 }
0x1779   : > { %p10428_p1 = scmp.ne.s32.totalorder %s12624_s26, %s10427_s8  ;;  %p10433_p8 = scmp.lt.u32.totalorder %s10427_s8, %s12624_s26 }
0x177b   : > { %p10429_p4 = pnand %p10428_p1, %p12505_p7 }
0x177d   : > { %p10430_p6 = pneg %p10429_p4 }
0x177f   : > { %p10435_p2 = pnand %p10433_p8, %p10430_p6 }
0x1781   : > { %10438 = shalt.err (!%p10435_p2)
}
0x1782   : > { %s10579_s22 = smov 128  }
0x1783   : > { %9539 = dma.vmem_to_hbm [thread:$0]  (%p12505_p7), %s8420_s11, 256, %s12624_s26, [#allocation4], %s10579_s22, %s10579_s22, %s10574_s6  }
0x1784   : > { %10492 = dma.done.wait (%p12505_p7), [#allocation4], 256  }
0x1785   : > { %10494 = vsyncadd (%p12505_p7), [#allocation4], 4294967040 }
0x1786 PF: > { %s86_s2 = sadd.s32 1, %s10505_s2   ;;  %s12625_s28 = smov %s10501_s1 }
0x1787   : > { %p83_p5 = scmp.ge.s32.totalorder %s86_s2, 4   ;;  %s12626_s1 = smov %s12628_s16 }
0x1789   :  { %85 = sbr.rel (!%p83_p5) target bundleno = 73 (0x49), region = 319 }
0x1790   :  { %8435 = vsyncpa [#allocation3], 1 }
0x1791   :  { %8437 = vsyncpa [#allocation3 + $0x1], 1 }
0x1792   :  { %8438 = vsyncpa [#allocation6], 1 }
0x1793   :  { %8439 = vsyncpa [#allocation9], 1 }
0x1794   :  { %8440 = vsyncpa [#allocation12], 1 }
0x1795   :  { %8441 = vsyncpa [#allocation15], 1 }
0x1796   :  { %8442 = vsyncpa [#allocation18], 1 }
0x1797   :  { %8443 = vsyncpa [#allocation21], 1 }
0x1798   :  { %8444 = vsyncpa [#allocation24], 1 }
0x1799   :  { %8445 = vsyncpa [#allocation27], 1 }
0x179a   :  { %8446 = vsyncpa [#allocation30], 1 }
0x179b   :  { %8447 = vsyncpa [#allocation4], 1 }
0x179c   :  { %8449 = vsyncpa [#allocation4 + $0x1], 1 }

</bundles_post_ra>
